<compile_context>
chip_gen: v7x
topology: tpu7x:2x2x1
jax: 0.10.0
libtpu: 0.0.40
codegen_flags: <defaults>
</compile_context>

<pallas_src>
import functools

import jax
import jax.numpy as jnp
from jax.experimental import pallas as pl
from jax.experimental.pallas import tpu as pltpu


# ---------------------------------------------------------------------------
# Helpers
# ---------------------------------------------------------------------------

def _sublane_min(dtype) -> int:
    """Minimum sublane multiple for this dtype: 8 (f32), 16 (bf16), 32 (int8)."""
    return max(8, 32 // jnp.dtype(dtype).itemsize)


def _choose_tile(dim: int, base: int, target: int) -> int:
    """Largest multiple of `base` that divides `dim` and is <= max(base, target).

    Falls back to the full dim (always a legal block size) when `dim` is not a
    multiple of `base`.
    """
    if dim % base != 0:
        return dim
    t = max(base, (min(target, dim) // base) * base)
    while dim % t != 0:
        t -= base
    return t


def _reference_subpixel_shuffle(signal, ratio=2):
    """Pure-JAX reference (identical math to the PyTorch module)."""
    b, c, d = signal.shape
    out_c = c // ratio
    x = signal.reshape(b, out_c, ratio, d)
    x = jnp.transpose(x, (0, 1, 3, 2))
    return x.reshape(b, out_c, d * ratio)


# ---------------------------------------------------------------------------
# Kernels
# ---------------------------------------------------------------------------

def _shuffle_kernel_strided(x_ref, o_ref, *, ratio):
    """Lane-dense interleave: per residue r, one sublane-strided load and one
    lane-strided store.  Never materializes a (..., ratio)-minor intermediate."""
    # x_ref block: (1, tc, td)    o_ref block: (1, tc // ratio, td * ratio)
    tc, td = x_ref.shape[1], x_ref.shape[2]
    tco = tc // ratio
    for r in range(ratio):  # ratio is a small static int -> unrolled
        # rows {r, r+ratio, ...}  ->  output columns {r, r+ratio, ...}
        xr = x_ref[0, pl.ds(r, tco, stride=ratio), :]          # (tco, td)
        o_ref[0, :, pl.ds(r, td, stride=ratio)] = xr


def _shuffle_kernel_transpose(x_ref, o_ref, *, ratio):
    """Fallback interleave: whole-tile reshape -> transpose -> reshape.

    This creates a (tco, td, ratio) intermediate whose minor dim is `ratio`, so the
    wrapper caps tc on this path to keep the padded intermediate bounded in VMEM.
    """
    x = x_ref[0]                                               # (tc, td)
    tc, td = x.shape
    tco = tc // ratio
    y = jnp.transpose(x.reshape(tco, ratio, td), (0, 2, 1))
    o_ref[0] = y.reshape(tco, td * ratio)                      # dense, lane-wide store


# ---------------------------------------------------------------------------
# Tiling plan + pallas_call wrapper
# ---------------------------------------------------------------------------

def _plan_tiles(b, c, d, dtype, ratio, strided):
    itemsize = jnp.dtype(dtype).itemsize
    sub = _sublane_min(dtype)
    c_base = sub * ratio  # keeps the output channel tile (tc // ratio) sublane-aligned

    # Per-block input budget: ~2 MiB on the strided path (amortizes the ~0.35 us
    # per-grid-step cost, lengthens contiguous DMA rows).  Smaller on the transpose
    # fallback so its padded (tco, td, ratio) intermediate stays bounded.
    in_budget = (2 << 20) if strided else (1 << 19)

    # Prefer growing the spatial tile to the full D first (single large DMA descriptor
    # per row, sequential writeback along out_d).
    max_td = max(128, in_budget // (itemsize * c_base))
    td = _choose_tile(d, 128, max_td)

    max_tc = max(c_base, in_budget // (itemsize * td))
    if not strided:
        # Cap the relayout intermediate (~ tco * ceil(td / sub) vregs of 4 KiB) to ~4 MiB.
        inter_vregs_per_row = max(1, -(-td // sub))
        max_inter_tco = max(1, (4 << 20) // (4096 * inter_vregs_per_row))
        max_tc = min(max_tc, max_inter_tco * ratio)
        max_tc = max(c_base, (max_tc // c_base) * c_base)
    tc = _choose_tile(c, c_base, max_tc)

    # v7x megacore: make sure there are >= 2 blocks along some parallel axis so the
    # second TensorCore is never idle (no effect on single-TC v5e/v6e).
    if b * (c // tc) * (d // td) < 2:
        if td % 256 == 0:
            td //= 2
        elif tc % (2 * c_base) == 0:
            tc //= 2
    return tc, td


def _pallas_shuffle(signal, ratio, strided):
    b, c, d = signal.shape
    dtype = signal.dtype
    itemsize = jnp.dtype(dtype).itemsize
    out_c, out_d = c // ratio, d * ratio

    tc, td = _plan_tiles(b, c, d, dtype, ratio, strided)
    tco = tc // ratio

    kernel = functools.partial(
        _shuffle_kernel_strided if strided else _shuffle_kernel_transpose, ratio=ratio)

    # Real VMEM need: double-buffered input + output blocks (+ fallback-path relayout
    # intermediate) plus headroom.  Block budgets keep this well under v7x's 64 MiB
    # physical VMEM (and the 32 MiB scoped default elsewhere).
    block_bytes = tc * td * itemsize  # output block has the same byte count
    inter_bytes = 0 if strided else tco * max(1, -(-td // _sublane_min(dtype))) * 4096
    vmem_limit = int(min(max(4 * block_bytes + inter_bytes + (4 << 20), 16 << 20),
                         56 << 20))

    return pl.pallas_call(
        kernel,
        out_shape=jax.ShapeDtypeStruct((b, out_c, out_d), dtype),
        grid=(b, c // tc, d // td),
        in_specs=[pl.BlockSpec((1, tc, td), lambda bi, ci, di: (bi, ci, di))],
        out_specs=pl.BlockSpec((1, tco, td * ratio), lambda bi, ci, di: (bi, ci, di)),
        compiler_params=pltpu.CompilerParams(
            # Every grid point writes a distinct output block -> all axes parallel.
            dimension_semantics=("parallel", "parallel", "parallel"),
            vmem_limit_bytes=vmem_limit,
        ),
        # Pure mem-bound copy: tell the XLA scheduler so surrounding ops overlap.
        cost_estimate=pl.CostEstimate(
            flops=0, transcendentals=0, bytes_accessed=2 * b * c * d * itemsize),
    )(signal)


# ---------------------------------------------------------------------------
# One-time capability probe for the lane-strided-store fast path
# ---------------------------------------------------------------------------

_STRIDED_OK = None


def _strided_path_supported() -> bool:
    """Compile + run a tiny aligned case of the strided-interleave kernel once and
    validate it bit-exactly against the reference.  Falls back to the transpose
    kernel if Mosaic rejects (or mis-lowers) lane-strided stores on this setup."""
    global _STRIDED_OK
    if _STRIDED_OK is None:
        try:
            x = jnp.arange(2 * 16 * 1024, dtype=jnp.float32).reshape(2, 16, 1024)
            got = jax.block_until_ready(_pallas_shuffle(x, 2, strided=True))
            _STRIDED_OK = bool(jnp.array_equal(got, _reference_subpixel_shuffle(x, 2)))
        except Exception:
            _STRIDED_OK = False
    return _STRIDED_OK


# ---------------------------------------------------------------------------
# Public entry point (module-equivalent forward)
# ---------------------------------------------------------------------------

def subpixel_shuffle(signal, ratio=2):
    """1-D subpixel shuffle: (B, C, D) -> (B, C//ratio, D*ratio)."""
    b, c, d = signal.shape
    assert c % ratio == 0, "in_filters must be divisible by ratio"
    sub = _sublane_min(signal.dtype)
    aligned = (c % (sub * ratio) == 0) and (d % 128 == 0)
    if not aligned:
        # Pure layout op on shapes that don't meet TPU (8,128) tiling (or are tiny):
        # let XLA fuse the reshape/transpose instead of forcing padded Pallas blocks.
        return _reference_subpixel_shuffle(signal, ratio)
    return _pallas_shuffle(signal, ratio, strided=_strided_path_supported())


# ---------------------------------------------------------------------------
# Self-test
# ---------------------------------------------------------------------------

if __name__ == "__main__":
    key = jax.random.PRNGKey(0)
    k1, k2, k3 = jax.random.split(key, 3)
    ratio = 2

    # Small, TPU-aligned shape consistent with the module's (batch, num_filters,
    # spatial_dim) forward — runs the Pallas kernel (one block per batch element).
    x1 = jax.random.normal(k1, (2, 16, 256), dtype=jnp.float32)
    out1 = jax.block_until_ready(
        _pallas_shuffle(x1, ratio, strided=_strided_path_supported()))
    ref1 = _reference_subpixel_shuffle(x1, ratio)
    assert out1.shape == (2, 16 // ratio, 256 * ratio), out1.shape
    assert jnp.array_equal(out1, ref1), "mismatch vs reference (small aligned)"

    # Larger shape exercising the tiled multi-block grid through the public wrapper.
    x2 = jax.random.normal(k2, (2, 64, 1024), dtype=jnp.float32)
    out2 = jax.block_until_ready(subpixel_shuffle(x2, ratio))
    assert out2.shape == (2, 32, 2048), out2.shape
    assert jnp.array_equal(out2, _reference_subpixel_shuffle(x2, ratio)), "mismatch (tiled)"

    # Tiny non-(8,128)-aligned shape from the module docstring — intentionally routed
    # to the XLA layout path by the dispatcher.
    x3 = jax.random.normal(k3, (2, 4, 16), dtype=jnp.float32)
    out3 = jax.block_until_ready(subpixel_shuffle(x3, ratio))
    assert out3.shape == (2, 2, 32), out3.shape
    assert jnp.array_equal(out3, _reference_subpixel_shuffle(x3, ratio)), "mismatch (tiny)"

    print("KERNEL_OK")
</pallas_src>

<mosaic_0001>
module attributes {stable_mosaic.version = 11 : i64} {
  func.func @_shuffle_kernel_strided(%arg0: i32, %arg1: i32, %arg2: i32, %arg3: memref<1x16x1024xf32, #tpu.memory_space<vmem>>, %arg4: memref<1x8x2048xf32, #tpu.memory_space<vmem>>) attributes {dimension_semantics = [#tpu.dimension_semantics<parallel>, #tpu.dimension_semantics<parallel>, #tpu.dimension_semantics<parallel>], iteration_bounds = array<i64: 2, 1, 1>, scalar_prefetch = 0 : i64, scratch_operands = 0 : i64, tpu.core_type = #tpu.core_type<tc>, window_params = [{transform_indices = @transform_0, window_bounds = array<i64: 1, 16, 1024>}, {transform_indices = @transform_1, window_bounds = array<i64: 1, 8, 2048>}]} {
    %c0 = arith.constant 0 : index
    %c0_0 = arith.constant 0 : index
    %c0_1 = arith.constant 0 : index
    %0 = tpu.strided_load %arg3[%c0, %c0_0, %c0_1] {strides = array<i32: 1, 2, 1>} : memref<1x16x1024xf32, #tpu.memory_space<vmem>>, vector<1x8x1024xf32>
    %1 = vector.shape_cast %0 : vector<1x8x1024xf32> to vector<8x1024xf32>
    %c0_2 = arith.constant 0 : index
    %c0_3 = arith.constant 0 : index
    %c0_4 = arith.constant 0 : index
    %2 = tpu.strided_load %arg4[%c0_2, %c0_3, %c0_4] {strides = array<i32: 1, 1, 2>} : memref<1x8x2048xf32, #tpu.memory_space<vmem>>, vector<1x8x1024xf32>
    %3 = vector.shape_cast %2 : vector<1x8x1024xf32> to vector<8x1024xf32>
    %4 = vector.shape_cast %1 : vector<8x1024xf32> to vector<1x8x1024xf32>
    tpu.strided_store %arg4[%c0_2, %c0_3, %c0_4], %4 {strides = array<i32: 1, 1, 2>} : memref<1x8x2048xf32, #tpu.memory_space<vmem>>, vector<1x8x1024xf32>
    %c0_5 = arith.constant 0 : index
    %c1 = arith.constant 1 : index
    %c0_6 = arith.constant 0 : index
    %5 = tpu.strided_load %arg3[%c0_5, %c1, %c0_6] {strides = array<i32: 1, 2, 1>} : memref<1x16x1024xf32, #tpu.memory_space<vmem>>, vector<1x8x1024xf32>
    %6 = vector.shape_cast %5 : vector<1x8x1024xf32> to vector<8x1024xf32>
    %c0_7 = arith.constant 0 : index
    %c0_8 = arith.constant 0 : index
    %c1_9 = arith.constant 1 : index
    %7 = tpu.strided_load %arg4[%c0_7, %c0_8, %c1_9] {strides = array<i32: 1, 1, 2>} : memref<1x8x2048xf32, #tpu.memory_space<vmem>>, vector<1x8x1024xf32>
    %8 = vector.shape_cast %7 : vector<1x8x1024xf32> to vector<8x1024xf32>
    %9 = vector.shape_cast %6 : vector<8x1024xf32> to vector<1x8x1024xf32>
    tpu.strided_store %arg4[%c0_7, %c0_8, %c1_9], %9 {strides = array<i32: 1, 1, 2>} : memref<1x8x2048xf32, #tpu.memory_space<vmem>>, vector<1x8x1024xf32>
    return
  }
  func.func @transform_0(%arg0: i32, %arg1: i32, %arg2: i32) -> (i32, i32, i32) {
    %c0_i32 = arith.constant 0 : i32
    return %arg0, %arg1, %arg2 : i32, i32, i32
  }
  func.func @transform_1(%arg0: i32, %arg1: i32, %arg2: i32) -> (i32, i32, i32) {
    %c0_i32 = arith.constant 0 : i32
    return %arg0, %arg1, %arg2 : i32, i32, i32
  }
}

module attributes {stable_mosaic.version = 11 : i64} {
  func.func @_shuffle_kernel_transpose(%arg0: i32, %arg1: i32, %arg2: i32, %arg3: memref<1x16x256xf32, #tpu.memory_space<vmem>>, %arg4: memref<1x8x512xf32, #tpu.memory_space<vmem>>) attributes {dimension_semantics = [#tpu.dimension_semantics<parallel>, #tpu.dimension_semantics<parallel>, #tpu.dimension_semantics<parallel>], iteration_bounds = array<i64: 2, 1, 1>, scalar_prefetch = 0 : i64, scratch_operands = 0 : i64, tpu.core_type = #tpu.core_type<tc>, window_params = [{transform_indices = @transform_0, window_bounds = array<i64: 1, 16, 256>}, {transform_indices = @transform_1, window_bounds = array<i64: 1, 8, 512>}]} {
    %c0 = arith.constant 0 : index
    %c0_0 = arith.constant 0 : index
    %c0_1 = arith.constant 0 : index
    %0 = vector.load %arg3[%c0, %c0_0, %c0_1] : memref<1x16x256xf32, #tpu.memory_space<vmem>>, vector<1x16x256xf32>
    %1 = vector.shape_cast %0 : vector<1x16x256xf32> to vector<16x256xf32>
    %2 = vector.shape_cast %1 : vector<16x256xf32> to vector<8x2x256xf32>
    %3 = tpu.transpose %2, [0, 2, 1] : vector<8x2x256xf32> -> vector<8x256x2xf32>
    %4 = vector.shape_cast %3 : vector<8x256x2xf32> to vector<8x512xf32>
    %c0_2 = arith.constant 0 : index
    %c0_3 = arith.constant 0 : index
    %c0_4 = arith.constant 0 : index
    %5 = vector.load %arg4[%c0_2, %c0_3, %c0_4] : memref<1x8x512xf32, #tpu.memory_space<vmem>>, vector<1x8x512xf32>
    %6 = vector.shape_cast %5 : vector<1x8x512xf32> to vector<8x512xf32>
    %7 = vector.shape_cast %4 : vector<8x512xf32> to vector<1x8x512xf32>
    tpu.vector_store %arg4[%c0_2, %c0_3, %c0_4], %7 {strides = array<i32>} : memref<1x8x512xf32, #tpu.memory_space<vmem>>, vector<1x8x512xf32>,
    return
  }
  func.func @transform_0(%arg0: i32, %arg1: i32, %arg2: i32) -> (i32, i32, i32) {
    %c0_i32 = arith.constant 0 : i32
    return %arg0, %arg1, %arg2 : i32, i32, i32
  }
  func.func @transform_1(%arg0: i32, %arg1: i32, %arg2: i32) -> (i32, i32, i32) {
    %c0_i32 = arith.constant 0 : i32
    return %arg0, %arg1, %arg2 : i32, i32, i32
  }
}

</mosaic_0001>

<bundles_post_ra>
// kernel: tpu_custom_call.1
= control target key start
LH: loop header
LB: loop body
LE: loop exit
PB: predicated region body
PF: predicated region fallthrough
CT: control target
= control target key end

     0   :  { %s10191_s0 = inlined_call_operand.hbm [shape: f32[2,16,256], index: 0, kind: input, shape index: {}]   ;;  %s10192_s1 = inlined_call_operand.hbm [shape: f32[2,8,512], index: 1, kind: output, shape index: {}]  }
   0x1   :  { %10741 = sst [smem:[#allocation200_spill]] %s10191_s0 }
   0x2   :  { %10742 = sst [smem:[#allocation201_spill]] %s10192_s1 }
   0x3   :  { %6 = vsyncpa [#allocation3], 0 }
   0x4   :  { %8 = vsyncpa [#allocation3 + $0x1], 0 }
   0x5   :  { %9 = vsyncpa [#allocation4], 0 }
   0x6   :  { %11 = vsyncpa [#allocation4 + $0x1], 0  ;;  %s6941_s6 = smov 0   ;;  %s6943_s7 = smov 0  }
   0x7   :  { %s6945_s8 = smov 0   ;;  %s6947_s9 = smov 0  }
   0x8   :  { %s6949_s10 = smov 0   ;;  %s6951_s11 = smov 0  }
   0x9 LB: > { %10743 = sst [smem:[#allocation8_spill]] %s6840_s6  ;;  %s6595_s12 = sadd.s32 4294967295, %s6860_s11   ;;  %s6860_s11 = sphi %s6951_s11, %s17_s11   ;;  %s6856_s10 = sphi %s6949_s10, %s11655_s10   ;;  %s6852_s9 = sphi %s6947_s9, %s11654_s9   ;;  %s6848_s8 = sphi %s6945_s8, %s11653_s8   ;;  %s6844_s7 = sphi %s6943_s7, %s11652_s7   ;;  %s6840_s6 = sphi %s6941_s6, %s11651_s6  }
   0xa   : > { %10744 = sst [smem:[#allocation9_spill]] %s6844_s7  ;;  %s6596_s13 = sadd.s32 4294967294, %s6860_s11  }
   0xb   : > { %10745 = sst [smem:[#allocation10_spill]] %s6848_s8  ;;  %s36_s14 = sadd.s32 1, %s6856_s10 }
   0xc   : > { %10746 = sst [smem:[#allocation11_spill]] %s6852_s9  ;;  %s47_s15 = sadd.s32 1, %s6848_s8 }
   0xd   : > { %10747 = sst [smem:[#allocation12_spill]] %s6856_s10  ;;  %p38_p0 = scmp.ge.s32.totalorder %s36_s14, 2 }
   0xe   : > { %10748 = sst [smem:[#allocation13_spill]] %s6860_s11  ;;  %p54_p1 = scmp.ne.s32.totalorder %s6848_s8, %s6844_s7 }
   0xf   : > { %p55_p2 = scmp.eq.s32.totalorder %s6860_s11, 0  ;;  %p60_p3 = scmp.ne.s32.totalorder %s6844_s7, %s6840_s6 }
  0x10   : > { %s11657_s14 = smov (%p38_p0, %s36_s14), 0  ;;  %p61_p5 = scmp.eq.s32.totalorder %s6595_s12, 0 }
  0x11   : > { %10749 = sst [smem:[#allocation14_spill]] %s11657_s14  ;;  %p6982_p4 = por %p55_p2, %p54_p1 }
  0x12   : > { %s40_s17 = ssub.s32 %s6856_s10, %s11657_s14  ;;  %p88_p6 = scmp.eq.s32.totalorder %s6595_s12, 1 }
  0x13   : > { %p45_p7 = scmp.eq.s32.totalorder %s40_s17, 0  ;;  %p6988_p8 = por %p61_p5, %p60_p3 }
  0x14   : > { %p6992_p9 = por %p88_p6, %p54_p1  ;;  %p94_p10 = scmp.eq.s32.totalorder %s6596_s13, 1 }
  0x15   : > { %s6997_s20 = scalar_select %p45_p7, %s6848_s8, %s47_s15  }
  0x16   : > { %s10752_s19 = scalar_select %p6992_p9, 1, 0 }
  0x17   : > { %10754 = sst [smem:[#allocation16_spill]] %s6997_s20  ;;  %p6999_p11 = por %p94_p10, %p60_p3 }
  0x18   : > { %10753 = sst [smem:[#allocation15_spill]] %s10752_s19  ;;  %p6624_p13 = scmp.lt.s32.totalorder %s6860_s11, 2 }
  0x19   : > { %s10755_s21 = scalar_select %p6999_p11, 1, 0 }
  0x1a   : > { %s114_s22 = sand.u32 1, %s6848_s8   ;;  %s6610_s24 = sshll.u32 %s6856_s10, 9 }
  0x1b   : > { %10756 = sst [smem:[#allocation17_spill]] %s10755_s21  ;;  %s6599_s23 = sshll.u32 %s114_s22, 5 }
  0x1c   : > { %s10757_s0 = sld [smem:[#allocation200_spill]]  ;;  %s118_s28 = scalar_lea.vmem [#allocation2], %s6599_s23 }
  0x1d   : > { %s130_s29 = sshll.u32 %s118_s28, 4  ;;  %p7016_p0 = pnand %p6624_p13, %p6982_p4  ;;  %s7012_s29 = int_to_ptr.vmem [resolvable:$true] %s130_s29 }
  0x1e   : > { %s7021_s2 = scalar_lea.sflag [#allocation3], %s114_s22 }
  0x1f   : > { %p6750_p3 = pneg %p7016_p0 }
  0x22   : > { %s7010_s27 = scalar_lea.hbm %s10757_s0, %s6610_s24  ;;  %s6753_s12 = scalar_lea.hbm %s10757_s0, 1024 }
  0x23   : > { %s6748_s3 = scalar_lea.hbm %s7010_s27, 512  ;;  %p6754_p4 = scmp.lt.u32.totalorder %s7010_s27, %s10757_s0 }
  0x24   : > { %p6749_p2 = scmp.ne.s32.totalorder %s7010_s27, %s6748_s3  ;;  %p6755_p7 = scmp.lt.u32.totalorder %s6753_s12, %s6748_s3 }
  0x25   : > { %p6757_p13 = scmp.lt.u32.totalorder %s6748_s3, %s7010_s27 }
  0x26   : > { %p6751_p5 = pnand %p6750_p3, %p6749_p2  ;;  %p6756_p10 = por %p6755_p7, %p6754_p4 }
  0x28   : > { %p6752_p6 = pneg %p6751_p5  ;;  %p6758_p12 = por %p6757_p13, %p6756_p10 }
  0x2a   : > { %p6759_p1 = pnand %p6758_p12, %p6752_p6 }
  0x2c   : > { %6762 = shalt.err (!%p6759_p1)
}
  0x2d   : > { %s6763_s16 = scalar_lea.vmem %s7012_s29, 512  ;;  %s6862_s17 = smov [#allocation2]  }
  0x2e   : > { %p6764_p2 = scmp.ne.s32.totalorder %s7012_s29, %s6763_s16  ;;  %s6768_s22 = sshll.u32 %s6862_s17, 4  ;;  %s6769_s22 = int_to_ptr.vmem [resolvable:$false] %s6768_s22 }
  0x2f   : > { %s6770_s23 = scalar_lea.vmem %s6769_s22, 1024  ;;  %p6771_p9 = scmp.lt.s32.totalorder %s7012_s29, %s6769_s22 }
  0x30   : > { %p6766_p5 = pnand %p6764_p2, %p6750_p3  ;;  %p6772_p4 = scmp.lt.s32.totalorder %s6770_s23, %s6763_s16 }
  0x32   : > { %p6767_p11 = pneg %p6766_p5  ;;  %p6773_p7 = por %p6772_p4, %p6771_p9 }
  0x34   : > { %p6774_p10 = pnand %p6773_p7, %p6767_p11 }
  0x36   : > { %6777 = shalt.err (!%p6774_p10)
}
  0x37   : > { %s6863_s24 = smov 256   ;;  %s6864_s25 = smov 16  }
  0x38   : > { %6619 = dma.hbm_to_vmem [thread:$0]  (!%p7016_p0), %s7010_s27, 512, %s7012_s29, %s7021_s2, %s6863_s24, %s6863_s24, %s6864_s25  }
  0x39   : > { %p138_p12 = scmp.lt.s32.totalorder %s6860_s11, 3  ;;  %p10759_p1 = scmp.ge.s32.totalorder %s6860_s11, 1 }
  0x3b   : > { %p139_p3 = pnand %p10759_p1, %p138_p12 }
  0x3d   : > { %142 = sbr.rel (%p139_p3) target bundleno = 1306 (0x51a), region = 24 }
  0x44   : > { %s7053_s26 = sand.u32 1, %s6844_s7  }
  0x45   : > { %10760 = sst [smem:[#allocation18_spill]] %s7053_s26  ;;  %s10542_s28 = sshll.u32 %s7053_s26, 5 }
  0x46   : > { %s145_s3 = scalar_lea.sflag [#allocation3], %s7053_s26  ;;  %s7059_s4 = scalar_lea.vmem [#allocation2], %s10542_s28 }
  0x47   : > { %6831 = dma.done.wait (%p6988_p8), %s145_s3, 512  }
  0x48   : > { %6833 = vsyncadd (%p6988_p8), %s145_s3, 4294966784  ;;  %v183_v0 = vlaneseq  ;;  %v6865_v1 = vmov 1983009808   ;;  %v6742_v6 = vld [vmem:[%s7059_s4] ss:$8 sps:$4 sm:$0xff]   ;;  %s10631_s18 = smov 2  }
  0x49   : > { %v181_v2 = vunpack.c.l.s4 %v6865_v1  ;;  %v6744_v13 = vld [vmem:[%s7059_s4 + $0x4] ss:$8 sps:$4 sm:$0xff]   ;;  %s10676_s27 = smov 4   ;;  %s10670_s29 = smov 12   ;;  %vm6166_vm0 = vcmask 15360   ;;  %vm6168_vm1 = vcmask 31744  }
  0x4a   : > { %v7065_v3 = vshrl.u32 %v183_v0, 7  ;;  %s10667_s30 = smov 6   ;;  %s10664_s2 = smov 16   ;;  %vm6170_vm2 = vcmask 48128   ;;  %vm6172_vm3 = vcmask 64512   ;;  %vm6174_vm4 = vcmask 80896  }
  0x4b   : > { %v182_v4 = vunpack.c.0.s8 %v181_v2  ;;  %s10673_s5 = smov 8   ;;  %s10661_s12 = smov 10   ;;  %vm6176_vm5 = vcmask 97280   ;;  %vm6178_vm6 = vcmask 113664   ;;  %vm6180_vm7 = vcmask 130048  }
  0x4c   : > { %10761 = vst [vmem:[#allocation19_spill] sm:$0xff] %v7065_v3  ;;  %s10658_s13 = smov 20   ;;  %s10652_s15 = smov 24   ;;  %vm6182_vm8 = vcmask 146432   ;;  %vm10740_vm9 = vcmask 162816   ;;  %vm10728_vm10 = vcmask 179200  }
  0x4d   : > { %v7068_v5 = vsub.s32 %v182_v4, %v7065_v3  ;;  %s10655_s16 = smov 14   ;;  %s10649_s17 = smov 18   ;;  %vm10729_vm11 = vcmask 195584   ;;  %vm10633_vm12 = vcmask 211968   ;;  %vm10635_vm13 = vcmask 228352  }
  0x4e   : > { %s10549_s22 = smov 28   ;;  %s10646_s23 = smov 22   ;;  %vm10634_vm14 = vcmask 244736   ;;  %vm10639_vm15 = vcmask 261120  }
  0x4f   : > { %v186_v7 = vrot.slane %v6742_v6, %v7068_v5  ;;  %v193_v14 = vrot.slane %v6744_v13, %v7068_v5  ;;  %s10547_s24 = smov 32   ;;  %s10643_s25 = smov 26  }
  0x50   : > { %s10543_s3 = smov 36   ;;  %s10545_s28 = smov 40  }
  0x51   : > { %v220_v8 = vrot.slane %v186_v7, %v7068_v5  ;;  %v194_v9 = vcombine.high %v186_v7, %v186_v7  ;;  %v236_v15 = vrot.slane %v193_v14, %v7068_v5  ;;  %v195_v40 = vcombine.high %v193_v14, %v193_v14  ;;  %s11186_s0 = smov 64   ;;  %s11188_s14 = smov 74  }
  0x52   : > { %s11189_s10 = smov 68   ;;  %s11193_s20 = smov 78  }
  0x53   : > { %294 = vxpose.xlu0.b32.start.end [1/1] (short) %v220_v8, 128  ;;  %v228_v10 = vrot.slane %v194_v9, %v7068_v5  ;;  %v221_v11 = vcombine.high %v220_v8, %v220_v8  ;;  %v237_v16 = vcombine.high %v236_v15, %v236_v15  ;;  %v244_v44 = vrot.slane %v195_v40, %v7068_v5  ;;  %s11197_s8 = smov 72   ;;  %s11199_s7 = smov 82  }
  0x54   : > { %s11200_s11 = smov 76   ;;  %s11204_s21 = smov 86  }
  0x55   : > { %358 = vxpose.xlu1.b32.start.end [1/1] (short) %v228_v10, 128  ;;  %v229_v12 = vcombine.high %v228_v10, %v228_v10  ;;  %v245_v47 = vcombine.high %v244_v44, %v244_v44  ;;  %s11205_s6 = smov 80   ;;  %s11207_s1 = smov 90  }
  0x56   : > { %s11208_s19 = smov 84   ;;  %s11209_s9 = smov 94  }
  0x90   : > { %326 = vxpose.xlu0.b32.start.end [1/1] (short) %v221_v11, 128 }
  0x92   : > { %390 = vxpose.xlu1.b32.start.end [1/1] (short) %v229_v12, 128  ;;  %v6745_v12 = vld [vmem:[%s7059_s4 + $0x10] ss:$8 sps:$4 sm:$0xff]  }
  0xcd   : > { %422 = vxpose.xlu0.b32.start.end [1/1] (short) %v236_v15, 128  ;;  %v7192_v15 = vrot.slane %v6745_v12, %v7068_v5 }
  0xcf   : > { %454 = vxpose.xlu1.b32.start.end [1/1] (short) %v237_v16, 128 }
  0xd3   : > { %v7077_v17 = vpop.trf.xlu0 }
  0xd5   : > { %v7079_v18 = vpop.trf.xlu1 }
  0xd7   : > { %v7081_v19 = vpop.trf.xlu0 }
  0xd9   : > { %v7083_v20 = vpop.trf.xlu1 }
  0xdb   : > { %v7085_v21 = vpop.trf.xlu0 }
  0xdd   : > { %v7087_v22 = vpop.trf.xlu1 }
  0xdf   : > { %v7089_v23 = vpop.trf.xlu0 }
  0xe1   : > { %v7091_v24 = vpop.trf.xlu1 }
  0xe3   : > { %v7093_v25 = vpop.trf.xlu0 }
  0xe5   : > { %v7095_v26 = vpop.trf.xlu1 }
  0xe7   : > { %v7097_v27 = vpop.trf.xlu0 }
  0xe9   : > { %v7099_v28 = vpop.trf.xlu1 }
  0xeb   : > { %v7101_v29 = vpop.trf.xlu0 }
  0xed   : > { %v7103_v30 = vpop.trf.xlu1 }
  0xef   : > { %v7105_v31 = vpop.trf.xlu0 }
  0xf1   : > { %v7107_v32 = vpop.trf.xlu1 }
  0xf3   : > { %v7109_v33 = vpop.trf.xlu0 }
  0xf4   : > { %10762 = vst [vmem:[#allocation20_spill] sm:$0xff] %v7109_v33 }
  0xf5   : > { %v7111_v34 = vpop.trf.xlu1 }
  0xf6   : > { %10763 = vst [vmem:[#allocation21_spill] sm:$0xff] %v7111_v34 }
  0xf7   : > { %v7113_v35 = vpop.trf.xlu0 }
  0xf8   : > { %10764 = vst [vmem:[#allocation22_spill] sm:$0xff] %v7113_v35 }
  0xf9   : > { %v7115_v36 = vpop.trf.xlu1 }
  0xfa   : > { %10765 = vst [vmem:[#allocation23_spill] sm:$0xff] %v7115_v36 }
  0xfb   : > { %v7117_v37 = vpop.trf.xlu0 }
  0xfc   : > { %10766 = vst [vmem:[#allocation24_spill] sm:$0xff] %v7117_v37 }
  0xfd   : > { %v7119_v38 = vpop.trf.xlu1 }
  0xfe   : > { %10767 = vst [vmem:[#allocation25_spill] sm:$0xff] %v7119_v38 }
  0xff   : > { %v7121_v39 = vpop.trf.xlu0 }
 0x100   : > { %10768 = vst [vmem:[#allocation26_spill] sm:$0xff] %v7121_v39 }
 0x101   : > { %v7123_v41 = vpop.trf.xlu1 }
 0x102   : > { %10769 = vst [vmem:[#allocation27_spill] sm:$0xff] %v7123_v41 }
 0x103   : > { %v7125_v42 = vpop.trf.xlu0 }
 0x104   : > { %10770 = vst [vmem:[#allocation28_spill] sm:$0xff] %v7125_v42 }
 0x105   : > { %v7127_v43 = vpop.trf.xlu1 }
 0x106   : > { %10771 = vst [vmem:[#allocation29_spill] sm:$0xff] %v7127_v43 }
 0x107   : > { %v7130_v45 = vpop.trf.xlu0 }
 0x108   : > { %10772 = vst [vmem:[#allocation30_spill] sm:$0xff] %v7130_v45 }
 0x109   : > { %v7132_v46 = vpop.trf.xlu1 }
 0x10a   : > { %10773 = vst [vmem:[#allocation31_spill] sm:$0xff] %v7132_v46 }
 0x10b   : > { %v7134_v48 = vpop.trf.xlu0  ;;  %486 = vxpose.xlu0.b32.start.end [1/1] (short) %v244_v44, 128  ;;  %v252_v44 = vrot.slane %v7192_v15, %v7068_v5 }
 0x10c   : > { %10774 = vst [vmem:[#allocation32_spill] sm:$0xff] %v7134_v48 }
 0x10d   : > { %v7136_v49 = vpop.trf.xlu1  ;;  %518 = vxpose.xlu1.b32.start.end [1/1] (short) %v245_v47, 128 }
 0x10e   : > { %10775 = vst [vmem:[#allocation33_spill] sm:$0xff] %v7136_v49 }
 0x10f   : > { %v7138_v50 = vpop.trf.xlu0 }
 0x110   : > { %10776 = vst [vmem:[#allocation34_spill] sm:$0xff] %v7138_v50 }
 0x111   : > { %v7140_v51 = vpop.trf.xlu1 }
 0x112   : > { %10777 = vst [vmem:[#allocation35_spill] sm:$0xff] %v7140_v51  ;;  %v253_v51 = vcombine.high %v252_v44, %v252_v44 }
 0x113   : > { %v7142_v52 = vpop.trf.xlu0 }
 0x115   : > { %v7144_v53 = vpop.trf.xlu1 }
 0x117   : > { %v7146_v54 = vpop.trf.xlu0 }
 0x119   : > { %v7148_v55 = vpop.trf.xlu1 }
 0x11b   : > { %v7150_v56 = vpop.trf.xlu0 }
 0x11d   : > { %v7152_v57 = vpop.trf.xlu1 }
 0x11f   : > { %v7154_v58 = vpop.trf.xlu0 }
 0x121   : > { %v7156_v59 = vpop.trf.xlu1 }
 0x123   : > { %v7158_v60 = vpop.trf.xlu0 }
 0x125   : > { %v7160_v61 = vpop.trf.xlu1 }
 0x127   : > { %v7162_v62 = vpop.trf.xlu0 }
 0x129   : > { %v7164_v63 = vpop.trf.xlu1 }
 0x12b   : > { %v7166_v0 = vpop.trf.xlu0 }
 0x12d   : > { %v7168_v1 = vpop.trf.xlu1 }
 0x12f   : > { %v7170_v2 = vpop.trf.xlu0 }
 0x130   : > { %10778 = vst [vmem:[#allocation36_spill] sm:$0xff] %v7170_v2 }
 0x131   : > { %v7172_v4 = vpop.trf.xlu1 }
 0x132   : > { %10779 = vst [vmem:[#allocation37_spill] sm:$0xff] %v7172_v4 }
 0x133   : > { %v7174_v6 = vpop.trf.xlu0 }
 0x134   : > { %10780 = vst [vmem:[#allocation38_spill] sm:$0xff] %v7174_v6 }
 0x135   : > { %v7176_v7 = vpop.trf.xlu1 }
 0x136   : > { %10781 = vst [vmem:[#allocation39_spill] sm:$0xff] %v7176_v7 }
 0x137   : > { %v7178_v8 = vpop.trf.xlu0 }
 0x138   : > { %10782 = vst [vmem:[#allocation40_spill] sm:$0xff] %v7178_v8 }
 0x139   : > { %v7180_v9 = vpop.trf.xlu1 }
 0x13a   : > { %10783 = vst [vmem:[#allocation41_spill] sm:$0xff] %v7180_v9 }
 0x13b   : > { %v7182_v10 = vpop.trf.xlu0 }
 0x13c   : > { %10784 = vst [vmem:[#allocation42_spill] sm:$0xff] %v7182_v10 }
 0x13d   : > { %v7184_v11 = vpop.trf.xlu1 }
 0x13e   : > { %10785 = vst [vmem:[#allocation43_spill] sm:$0xff] %v7184_v11 }
 0x13f   : > { %v7187_v13 = vpop.trf.xlu0 }
 0x140   : > { %10786 = vst [vmem:[#allocation44_spill] sm:$0xff] %v7187_v13 }
 0x141   : > { %v7189_v14 = vpop.trf.xlu1 }
 0x142   : > { %10787 = vst [vmem:[#allocation45_spill] sm:$0xff] %v7189_v14 }
 0x143   : > { %v7194_v16 = vpop.trf.xlu0 }
 0x144   : > { %10788 = vst [vmem:[#allocation46_spill] sm:$0xff] %v7194_v16 }
 0x145   : > { %v7196_v40 = vpop.trf.xlu1 }
 0x146   : > { %10789 = vst [vmem:[#allocation47_spill] sm:$0xff] %v7196_v40 }
 0x147   : > { %v7200_v47 = vpop.trf.xlu0 }
 0x148   : > { %10790 = vst [vmem:[#allocation48_spill] sm:$0xff] %v7200_v47 }
 0x149   : > { %v7202_v3 = vpop.trf.xlu1 }
 0x14a   : > { %10791 = vst [vmem:[#allocation49_spill] sm:$0xff] %v7202_v3 }
 0x14b   : > { %v7204_v50 = vpop.trf.xlu0  ;;  %550 = vxpose.xlu0.b32.start.end [1/1] (short) %v252_v44, 128 }
 0x14c   : > { %10792 = vst [vmem:[#allocation50_spill] sm:$0xff] %v7204_v50 }
 0x14d   : > { %v7206_v49 = vpop.trf.xlu1  ;;  %582 = vxpose.xlu1.b32.start.end [1/1] (short) %v253_v51, 128  ;;  %v212_v51 = vcombine.high %v7192_v15, %v7192_v15 }
 0x14e   : > { %10793 = vst [vmem:[#allocation51_spill] sm:$0xff] %v7206_v49 }
 0x14f   : > { %v7208_v12 = vpop.trf.xlu0  ;;  %v260_v45 = vrot.slane %v212_v51, %v7068_v5 }
 0x150   : > { %10794 = vst [vmem:[#allocation52_spill] sm:$0xff] %v7208_v12 }
 0x151   : > { %v7210_v48 = vpop.trf.xlu1 }
 0x152   : > { %10795 = vst [vmem:[#allocation53_spill] sm:$0xff] %v7210_v48  ;;  %v261_v48 = vcombine.high %v260_v45, %v260_v45 }
 0x153   : > { %v7212_v46 = vpop.trf.xlu0 }
 0x155   : > { %v7214_v40 = vpop.trf.xlu1 }
 0x157   : > { %v7220_v43 = vpop.trf.xlu0 }
 0x159   : > { %v7222_v44 = vpop.trf.xlu1 }
 0x15b   : > { %v7228_v49 = vpop.trf.xlu0 }
 0x15d   : > { %v7230_v50 = vpop.trf.xlu1 }
 0x15f   : > { %v7236_v14 = vpop.trf.xlu0 }
 0x161   : > { %v7238_v42 = vpop.trf.xlu1 }
 0x163   : > { %v7244_v41 = vpop.trf.xlu0 }
 0x165   : > { %v7246_v11 = vpop.trf.xlu1 }
 0x167   : > { %v7252_v39 = vpop.trf.xlu0 }
 0x169   : > { %v7254_v38 = vpop.trf.xlu1 }
 0x16b   : > { %v7260_v9 = vpop.trf.xlu0 }
 0x16d   : > { %v7262_v37 = vpop.trf.xlu1 }
 0x16f   : > { %v7268_v36 = vpop.trf.xlu0 }
 0x171   : > { %v7270_v7 = vpop.trf.xlu1 }
 0x172   : > { %10796 = vst [vmem:[#allocation54_spill] sm:$0xff] %v7270_v7 }
 0x173   : > { %v7276_v35 = vpop.trf.xlu0 }
 0x175   : > { %v7278_v34 = vpop.trf.xlu1 }
 0x176   : > { %10797 = vst [vmem:[#allocation55_spill] sm:$0xff] %v7278_v34 }
 0x177   : > { %v7284_v4 = vpop.trf.xlu0 }
 0x179   : > { %v7286_v33 = vpop.trf.xlu1 }
 0x17a   : > { %10798 = vst [vmem:[#allocation56_spill] sm:$0xff] %v7286_v33 }
 0x17b   : > { %v7292_v7 = vpop.trf.xlu0 }
 0x17c   : > { %10799 = vst [vmem:[#allocation57_spill] sm:$0xff] %v7292_v7 }
 0x17d   : > { %v7294_v2 = vpop.trf.xlu1 }
 0x17e   : > { %10800 = vst [vmem:[#allocation58_spill] sm:$0xff] %v7294_v2  ;;  %v806_v2 = vcombine.low %v7077_v17, %v7212_v46 }
 0x17f   : > { %v7300_v34 = vpop.trf.xlu0 }
 0x181   : > { %v7302_v6 = vpop.trf.xlu1 }
 0x182   : > { %10801 = vst [vmem:[#allocation59_spill] sm:$0xff] %v7302_v6 }
 0x183   : > { %v7310_v8 = vpop.trf.xlu0 }
 0x185   : > { %v7312_v7 = vpop.trf.xlu1 }
 0x186   : > { %10802 = vst [vmem:[#allocation60_spill] sm:$0xff] %v7312_v7  ;;  %v807_v7 = vcombine.high %v7077_v17, %v7212_v46  ;;  %v942_v17 = vcombine.low %v7081_v19, %v7220_v43  ;;  %v943_v46 = vcombine.high %v7081_v19, %v7220_v43  ;;  %v10810_v19 = vcombine.high %v7142_v52, %v7214_v40 }
 0x187   : > { %v7319_v10 = vpop.trf.xlu0 }
 0x188   : > { %v7373_v43 = vrot.slane %v10810_v19, %v7068_v5  ;;  %v7392_v47 = vrot.slane %v942_v17, %v7068_v5  ;;  %v7395_v12 = vrot.slane %v943_v46, %v7068_v5  ;;  %v10816_v17 = vcombine.high %v7146_v54, %v7222_v44 }
 0x189   : > { %v7321_v15 = vpop.trf.xlu1 }
 0x18a   : > { %10803 = vst [vmem:[#allocation61_spill] sm:$0xff] %v7321_v15  ;;  %v7349_v15 = vrot.slane %v807_v7, %v7068_v5  ;;  %v10808_v7 = vcombine.low %v7142_v52, %v7214_v40  ;;  %10811 = vst [vmem:[#allocation67_spill] sm:$0xff] %v7373_v43 }
 0x18b   : > { %v7327_v13 = vpop.trf.xlu0  ;;  %614 = vxpose.xlu0.b32.start.end [1/1] (short) %v260_v45, 128 }
 0x18d   : > { %v7329_v51 = vpop.trf.xlu1  ;;  %646 = vxpose.xlu1.b32.start.end [1/1] (short) %v261_v48, 128 }
 0x18e   : > { %10804 = vst [vmem:[#allocation62_spill] sm:$0xff] %v7329_v51 }
 0x18f   : > { %v7331_v3 = vpop.trf.xlu0 }
 0x190   : > { %10805 = vst [vmem:[#allocation63_spill] sm:$0xff] %v7331_v3  ;;  %v7346_v3 = vrot.slane %v806_v2, %v7068_v5 }
 0x191   : > { %v7337_v16 = vpop.trf.xlu1 }
 0x192   : > { %10806 = vst [vmem:[#allocation64_spill] sm:$0xff] %v7337_v16 }
 0x193   : > { %v502_v45 = vpop.trf.xlu0 }
 0x194   : > { %v822_v51 = vcombine.low %v7079_v18, %v502_v45  ;;  %v823_v48 = vcombine.high %v7079_v18, %v502_v45  ;;  %v7367_v45 = vrot.slane %v10808_v7, %v7068_v5 }
 0x195   : > { %v534_v33 = vpop.trf.xlu1 }
 0x196   : > { %v7356_v6 = vrot.slane %v822_v51, %v7068_v5  ;;  %v7359_v16 = vrot.slane %v823_v48, %v7068_v5  ;;  %v2998_v18 = vcombine.low %v7144_v53, %v534_v33  ;;  %v2999_v2 = vcombine.high %v7144_v53, %v534_v33  ;;  %10809 = vst [vmem:[#allocation66_spill] sm:$0xff] %v7367_v45 }
 0x197   : > { %v503_v51 = vpop.trf.xlu0  ;;  %v1078_v33 = vcombine.low %v7085_v21, %v7228_v49 }
 0x198   : > { %10807 = vst [vmem:[#allocation65_spill] sm:$0xff] %v7359_v16  ;;  %v7384_v7 = vrot.slane %v2998_v18, %v7068_v5  ;;  %v7387_v52 = vrot.slane %v2999_v2, %v7068_v5  ;;  %v958_v40 = vcombine.low %v7083_v20, %v503_v51  ;;  %v959_v19 = vcombine.high %v7083_v20, %v503_v51 }
 0x199   : > { %v535_v48 = vpop.trf.xlu1  ;;  %v1079_v18 = vcombine.high %v7085_v21, %v7228_v49  ;;  %v10814_v2 = vcombine.low %v7146_v54, %v7222_v44  ;;  %v7427_v20 = vrot.slane %v10816_v17, %v7068_v5  ;;  %v7446_v43 = vrot.slane %v1078_v33, %v7068_v5 }
 0x19a   : > { %10812 = vst [vmem:[#allocation68_spill] sm:$0xff] %v7384_v7  ;;  %10813 = vst [vmem:[#allocation69_spill] sm:$0xff] %v7387_v52  ;;  %v7410_v51 = vrot.slane %v958_v40, %v7068_v5  ;;  %v7413_v16 = vrot.slane %v959_v19, %v7068_v5  ;;  %v3134_v21 = vcombine.low %v7148_v55, %v535_v48 }
 0x19b   : > { %v504_v46 = vpop.trf.xlu0  ;;  %v3135_v49 = vcombine.high %v7148_v55, %v535_v48  ;;  %v7421_v53 = vrot.slane %v10814_v2, %v7068_v5  ;;  %10817 = vst [vmem:[#allocation71_spill] sm:$0xff] %v7427_v20  ;;  %v7449_v52 = vrot.slane %v1079_v18, %v7068_v5  ;;  %v1214_v48 = vcombine.low %v7089_v23, %v7236_v14 }
 0x19c   : > { %v7438_v2 = vrot.slane %v3134_v21, %v7068_v5  ;;  %v1094_v44 = vcombine.low %v7087_v22, %v504_v46  ;;  %v1095_v17 = vcombine.high %v7087_v22, %v504_v46  ;;  %v1215_v21 = vcombine.high %v7089_v23, %v7236_v14 }
 0x19d   : > { %10815 = vst [vmem:[#allocation70_spill] sm:$0xff] %v7421_v53  ;;  %v536_v40 = vpop.trf.xlu1  ;;  %v7441_v54 = vrot.slane %v3135_v49, %v7068_v5  ;;  %v10820_v55 = vcombine.low %v7150_v56, %v7230_v50  ;;  %v10822_v33 = vcombine.high %v7150_v56, %v7230_v50  ;;  %v7500_v20 = vrot.slane %v1214_v48, %v7068_v5  ;;  %v10875_v53 = vld [vmem:[#allocation38_spill] sm:$0xff] }
 0x19e   : > { %10818 = vst [vmem:[#allocation72_spill] sm:$0xff] %v7438_v2  ;;  %v7464_v46 = vrot.slane %v1094_v44, %v7068_v5  ;;  %v7467_v7 = vrot.slane %v1095_v17, %v7068_v5  ;;  %v3270_v23 = vcombine.low %v7152_v57, %v536_v40  ;;  %v3271_v14 = vcombine.high %v7152_v57, %v536_v40 }
 0x19f   : > { %10819 = vst [vmem:[#allocation73_spill] sm:$0xff] %v7441_v54  ;;  %v505_v19 = vpop.trf.xlu0  ;;  %v7475_v49 = vrot.slane %v10820_v55, %v7068_v5  ;;  %v7481_v22 = vrot.slane %v10822_v33, %v7068_v5  ;;  %v7503_v54 = vrot.slane %v1215_v21, %v7068_v5  ;;  %v1350_v40 = vcombine.low %v7093_v25, %v7244_v41 }
 0x1a0   : > { %v7492_v55 = vrot.slane %v3270_v23, %v7068_v5  ;;  %v7495_v50 = vrot.slane %v3271_v14, %v7068_v5  ;;  %v1230_v56 = vcombine.low %v7091_v24, %v505_v19  ;;  %v1231_v33 = vcombine.high %v7091_v24, %v505_v19 }
 0x1a1   : > { %v537_v18 = vpop.trf.xlu1  ;;  %10821 = vst [vmem:[#allocation74_spill] sm:$0xff] %v7475_v49  ;;  %10823 = vst [vmem:[#allocation75_spill] sm:$0xff] %v7481_v22  ;;  %v1351_v23 = vcombine.high %v7093_v25, %v7244_v41  ;;  %v10826_v57 = vcombine.low %v7154_v58, %v7238_v42  ;;  %v10828_v19 = vcombine.high %v7154_v58, %v7238_v42 }
 0x1a2   : > { %10824 = vst [vmem:[#allocation76_spill] sm:$0xff] %v7492_v55  ;;  %10825 = vst [vmem:[#allocation77_spill] sm:$0xff] %v7495_v50  ;;  %v7518_v21 = vrot.slane %v1230_v56, %v7068_v5  ;;  %v7521_v2 = vrot.slane %v1231_v33, %v7068_v5  ;;  %v3406_v25 = vcombine.low %v7156_v59, %v537_v18 }
 0x1a3   : > { %v506_v44 = vpop.trf.xlu0  ;;  %v3407_v41 = vcombine.high %v7156_v59, %v537_v18  ;;  %v7529_v14 = vrot.slane %v10826_v57, %v7068_v5  ;;  %v7535_v24 = vrot.slane %v10828_v19, %v7068_v5  ;;  %v7556_v50 = vrot.slane %v1350_v40, %v7068_v5 }
 0x1a4   : > { %v7546_v57 = vrot.slane %v3406_v25, %v7068_v5  ;;  %v1366_v58 = vcombine.low %v7095_v26, %v506_v44  ;;  %v1367_v19 = vcombine.high %v7095_v26, %v506_v44  ;;  %v7559_v59 = vrot.slane %v1351_v23, %v7068_v5 }
 0x1a5   : > { %v538_v17 = vpop.trf.xlu1  ;;  %10827 = vst [vmem:[#allocation78_spill] sm:$0xff] %v7529_v14  ;;  %10829 = vst [vmem:[#allocation79_spill] sm:$0xff] %v7535_v24  ;;  %v7549_v42 = vrot.slane %v3407_v41, %v7068_v5  ;;  %v1486_v18 = vcombine.low %v7097_v27, %v7252_v39  ;;  %v1487_v25 = vcombine.high %v7097_v27, %v7252_v39 }
 0x1a6   : > { %10830 = vst [vmem:[#allocation80_spill] sm:$0xff] %v7546_v57  ;;  %v7576_v22 = vrot.slane %v1366_v58, %v7068_v5  ;;  %v7579_v55 = vrot.slane %v1367_v19, %v7068_v5  ;;  %v3542_v27 = vcombine.low %v7160_v61, %v538_v17  ;;  %v3543_v39 = vcombine.high %v7160_v61, %v538_v17 }
 0x1a7   : > { %v507_v48 = vpop.trf.xlu0  ;;  %10831 = vst [vmem:[#allocation81_spill] sm:$0xff] %v7549_v42  ;;  %v10832_v26 = vcombine.low %v7158_v60, %v7246_v11  ;;  %v10834_v40 = vcombine.high %v7158_v60, %v7246_v11  ;;  %v7616_v61 = vrot.slane %v1486_v18, %v7068_v5  ;;  %v7619_v17 = vrot.slane %v1487_v25, %v7068_v5 }
 0x1a8   : > { %v7606_v42 = vrot.slane %v3542_v27, %v7068_v5  ;;  %v7609_v60 = vrot.slane %v3543_v39, %v7068_v5  ;;  %v1502_v11 = vcombine.low %v7099_v28, %v507_v48  ;;  %v1623_v27 = vcombine.high %v7101_v29, %v7260_v9 }
 0x1a9   : > { %v539_v56 = vpop.trf.xlu1  ;;  %v7587_v44 = vrot.slane %v10832_v26, %v7068_v5  ;;  %v7593_v41 = vrot.slane %v10834_v40, %v7068_v5  ;;  %v1503_v40 = vcombine.high %v7099_v28, %v507_v48  ;;  %10838 = vst [vmem:[#allocation86_spill] sm:$0xff] %v7619_v17  ;;  %v1622_v26 = vcombine.low %v7101_v29, %v7260_v9 }
 0x1aa   : > { %10836 = vst [vmem:[#allocation84_spill] sm:$0xff] %v7606_v42  ;;  %10837 = vst [vmem:[#allocation85_spill] sm:$0xff] %v7609_v60  ;;  %v7636_v24 = vrot.slane %v1502_v11, %v7068_v5  ;;  %v3678_v9 = vcombine.low %v7164_v63, %v539_v56  ;;  %v3679_v39 = vcombine.high %v7164_v63, %v539_v56  ;;  %v6747_v63 = vld [vmem:[%s7059_s4 + $0x14] ss:$8 sps:$4 sm:$0xff]   ;;  %s10637_s4 = smov 30  }
 0x1ab   : > { %v7553_v33 = vpop.trf.xlu0  ;;  %10833 = vst [vmem:[#allocation82_spill] sm:$0xff] %v7587_v44  ;;  %10835 = vst [vmem:[#allocation83_spill] sm:$0xff] %v7593_v41  ;;  %v7639_v29 = vrot.slane %v1503_v40, %v7068_v5  ;;  %v10840_v48 = vcombine.low %v7162_v62, %v7254_v38  ;;  %v10842_v18 = vcombine.high %v7162_v62, %v7254_v38 }
 0x1ac   : > { %v7666_v41 = vrot.slane %v3678_v9, %v7068_v5  ;;  %v7669_v38 = vrot.slane %v3679_v39, %v7068_v5  ;;  %v1638_v62 = vcombine.low %v7103_v30, %v7553_v33  ;;  %v7679_v56 = vrot.slane %v1622_v26, %v7068_v5 }
 0x1ad   : > { %v7573_v23 = vpop.trf.xlu1  ;;  %10839 = vst [vmem:[#allocation87_spill] sm:$0xff] %v7639_v29  ;;  %v7647_v28 = vrot.slane %v10840_v48, %v7068_v5  ;;  %v7653_v11 = vrot.slane %v10842_v18, %v7068_v5  ;;  %v1639_v18 = vcombine.high %v7103_v30, %v7553_v33  ;;  %v7682_v48 = vrot.slane %v1623_v27, %v7068_v5 }
 0x1ae   : > { %10844 = vst [vmem:[#allocation90_spill] sm:$0xff] %v7666_v41  ;;  %10845 = vst [vmem:[#allocation91_spill] sm:$0xff] %v7669_v38  ;;  %v1758_v9 = vcombine.low %v7105_v31, %v7268_v36  ;;  %v1759_v39 = vcombine.high %v7105_v31, %v7268_v36  ;;  %v7699_v44 = vrot.slane %v1638_v62, %v7068_v5 }
 0x1af   : > { %v7595_v58 = vpop.trf.xlu0  ;;  %10841 = vst [vmem:[#allocation88_spill] sm:$0xff] %v7647_v28  ;;  %10843 = vst [vmem:[#allocation89_spill] sm:$0xff] %v7653_v11  ;;  %v7702_v57 = vrot.slane %v1639_v18, %v7068_v5  ;;  %v3814_v31 = vcombine.low %v7168_v1, %v7573_v23  ;;  %v3815_v36 = vcombine.high %v7168_v1, %v7573_v23  ;;  %v10862_v11 = vld [vmem:[#allocation36_spill] sm:$0xff] }
 0x1b0   : > { %10846 = vst [vmem:[#allocation92_spill] sm:$0xff] %v7679_v56  ;;  %10847 = vst [vmem:[#allocation93_spill] sm:$0xff] %v7682_v48  ;;  %v10850_v33 = vcombine.low %v7166_v0, %v7262_v37  ;;  %v10852_v62 = vcombine.high %v7166_v0, %v7262_v37  ;;  %v7723_v42 = vrot.slane %v6747_v63, %v7068_v5 }
 0x1b1   : > { %v7613_v19 = vpop.trf.xlu1  ;;  %10848 = vst [vmem:[#allocation94_spill] sm:$0xff] %v7699_v44  ;;  %10849 = vst [vmem:[#allocation95_spill] sm:$0xff] %v7702_v57  ;;  %v7734_v37 = vrot.slane %v3814_v31, %v7068_v5  ;;  %v7737_v0 = vrot.slane %v3815_v36, %v7068_v5  ;;  %v1774_v63 = vcombine.low %v7107_v32, %v7595_v58  ;;  %v10858_v31 = vld [vmem:[#allocation20_spill] sm:$0xff]  ;;  %v11057_v44 = vld [vmem:[#allocation19_spill] sm:$0xff] }
 0x1b2   : > { %v7712_v30 = vrot.slane %v10850_v33, %v7068_v5  ;;  %v7718_v26 = vrot.slane %v10852_v62, %v7068_v5  ;;  %v1775_v62 = vcombine.high %v7107_v32, %v7595_v58  ;;  %v7746_v23 = vrot.slane %v1758_v9, %v7068_v5  ;;  %v10863_v58 = vld [vmem:[#allocation54_spill] sm:$0xff] }
 0x1b3   : > { %v7633_v25 = vpop.trf.xlu0  ;;  %10854 = vst [vmem:[#allocation98_spill] sm:$0xff] %v7734_v37  ;;  %10855 = vst [vmem:[#allocation99_spill] sm:$0xff] %v7737_v0  ;;  %v7749_v33 = vrot.slane %v1759_v39, %v7068_v5  ;;  %v1894_v38 = vcombine.low %v10858_v31, %v7276_v35  ;;  %v1895_v36 = vcombine.high %v10858_v31, %v7276_v35  ;;  %v10861_v35 = vld [vmem:[#allocation37_spill] sm:$0xff] }
 0x1b4   : > { %10851 = vst [vmem:[#allocation96_spill] sm:$0xff] %v7712_v30  ;;  %10853 = vst [vmem:[#allocation97_spill] sm:$0xff] %v7718_v26  ;;  %v7766_v41 = vrot.slane %v1774_v63, %v7068_v5  ;;  %v7769_v28 = vrot.slane %v1775_v62, %v7068_v5  ;;  %v3950_v31 = vcombine.low %v10861_v35, %v7613_v19 }
 0x1b5   : > { %v7655_v60 = vpop.trf.xlu1  ;;  %10856 = vst [vmem:[#allocation100_spill] sm:$0xff] %v7746_v23  ;;  %10857 = vst [vmem:[#allocation101_spill] sm:$0xff] %v7749_v33  ;;  %v3951_v32 = vcombine.high %v10861_v35, %v7613_v19  ;;  %v10864_v37 = vcombine.low %v10862_v11, %v10863_v58  ;;  %v10866_v63 = vcombine.high %v10862_v11, %v10863_v58 }
 0x1b6   : > { %10859 = vst [vmem:[#allocation20_spill] sm:$0xff] %v7766_v41  ;;  %10860 = vst [vmem:[#allocation102_spill] sm:$0xff] %v7769_v28  ;;  %v268_v0 = vrot.slane %v7723_v42, %v7068_v5  ;;  %v7800_v11 = vrot.slane %v3950_v31, %v7068_v5  ;;  %v7812_v35 = vrot.slane %v1894_v38, %v7068_v5  ;;  %v10872_v31 = vld [vmem:[#allocation22_spill] sm:$0xff] }
 0x1b7   : > { %v7675_v40 = vpop.trf.xlu0  ;;  %v7779_v30 = vrot.slane %v10864_v37, %v7068_v5  ;;  %v7785_v9 = vrot.slane %v10866_v63, %v7068_v5  ;;  %v7803_v58 = vrot.slane %v3951_v32, %v7068_v5  ;;  %v10870_v63 = vld [vmem:[#allocation21_spill] sm:$0xff]  ;;  %v7815_v37 = vrot.slane %v1895_v36, %v7068_v5 }
 0x1b8   : > { %10868 = vst [vmem:[#allocation54_spill] sm:$0xff] %v7800_v11  ;;  %v1910_v14 = vcombine.low %v10870_v63, %v7633_v25  ;;  %v1911_v19 = vcombine.high %v10870_v63, %v7633_v25  ;;  %v2030_v26 = vcombine.low %v10872_v31, %v7284_v4  ;;  %v2031_v32 = vcombine.high %v10872_v31, %v7284_v4  ;;  %v10874_v4 = vld [vmem:[#allocation39_spill] sm:$0xff] }
 0x1b9   : > { %v7696_v27 = vpop.trf.xlu1  ;;  %10865 = vst [vmem:[#allocation37_spill] sm:$0xff] %v7779_v30  ;;  %10867 = vst [vmem:[#allocation36_spill] sm:$0xff] %v7785_v9  ;;  %v4086_v31 = vcombine.low %v10874_v4, %v7655_v60  ;;  %v4087_v25 = vcombine.high %v10874_v4, %v7655_v60  ;;  %v10876_v63 = vld [vmem:[#allocation55_spill] sm:$0xff] }
 0x1ba   : > { %10869 = vst [vmem:[#allocation103_spill] sm:$0xff] %v7803_v58  ;;  %10871 = vst [vmem:[#allocation21_spill] sm:$0xff] %v7815_v37  ;;  %v7832_v45 = vrot.slane %v1910_v14, %v7068_v5  ;;  %v7835_v28 = vrot.slane %v1911_v19, %v7068_v5  ;;  %v10877_v11 = vcombine.low %v10875_v53, %v10876_v63 }
 0x1bb   : > { %v7720_v18 = vpop.trf.xlu0  ;;  %v10879_v14 = vcombine.high %v10875_v53, %v10876_v63  ;;  %v269_v58 = vcombine.high %v268_v0, %v268_v0  ;;  %v7864_v33 = vrot.slane %v4086_v31, %v7068_v5  ;;  %v7867_v53 = vrot.slane %v4087_v25, %v7068_v5  ;;  %v10883_v63 = vld [vmem:[#allocation23_spill] sm:$0xff]  ;;  %v10887_v31 = vld [vmem:[#allocation24_spill] sm:$0xff] }
 0x1bc   : > { %10873 = vst [vmem:[#allocation22_spill] sm:$0xff] %v7835_v28  ;;  %v7845_v30 = vrot.slane %v10877_v11, %v7068_v5  ;;  %v2047_v9 = vcombine.high %v10883_v63, %v7675_v40  ;;  %v7876_v60 = vrot.slane %v2030_v26, %v7068_v5  ;;  %v7879_v4 = vrot.slane %v2031_v32, %v7068_v5  ;;  %v10886_v11 = vld [vmem:[#allocation57_spill] sm:$0xff] }
 0x1bd   : > { %v7743_v1 = vpop.trf.xlu1  ;;  %v7851_v38 = vrot.slane %v10879_v14, %v7068_v5  ;;  %10881 = vst [vmem:[#allocation55_spill] sm:$0xff] %v7864_v33  ;;  %10882 = vst [vmem:[#allocation104_spill] sm:$0xff] %v7867_v53  ;;  %v2046_v14 = vcombine.low %v10883_v63, %v7675_v40  ;;  %v2166_v28 = vcombine.low %v10887_v31, %v10886_v11  ;;  %v10891_v63 = vld [vmem:[#allocation40_spill] sm:$0xff] }
 0x1be   : > { %10878 = vst [vmem:[#allocation39_spill] sm:$0xff] %v7845_v30  ;;  %10884 = vst [vmem:[#allocation23_spill] sm:$0xff] %v7876_v60  ;;  %v2167_v25 = vcombine.high %v10887_v31, %v10886_v11  ;;  %v7899_v11 = vrot.slane %v2047_v9, %v7068_v5  ;;  %v10890_v31 = vld [vmem:[#allocation41_spill] sm:$0xff]  ;;  %v10892_v33 = vld [vmem:[#allocation56_spill] sm:$0xff] }
 0x1bf   : > { %v7763_v39 = vpop.trf.xlu0  ;;  %10880 = vst [vmem:[#allocation38_spill] sm:$0xff] %v7851_v38  ;;  %10885 = vst [vmem:[#allocation105_spill] sm:$0xff] %v7879_v4  ;;  %v7896_v23 = vrot.slane %v2046_v14, %v7068_v5  ;;  %v4222_v37 = vcombine.low %v10890_v31, %v7696_v27  ;;  %v4223_v40 = vcombine.high %v10890_v31, %v7696_v27 }
 0x1c0   : > { %10889 = vst [vmem:[#allocation24_spill] sm:$0xff] %v7899_v11  ;;  %v10893_v30 = vcombine.low %v10891_v63, %v10892_v33  ;;  %v7940_v27 = vrot.slane %v2166_v28, %v7068_v5  ;;  %v7943_v31 = vrot.slane %v2167_v25, %v7068_v5  ;;  %v10906_v11 = vld [vmem:[#allocation42_spill] sm:$0xff] }
 0x1c1   : > { %v7787_v62 = vpop.trf.xlu1  ;;  %10888 = vst [vmem:[#allocation57_spill] sm:$0xff] %v7896_v23  ;;  %v7928_v38 = vrot.slane %v4222_v37, %v7068_v5  ;;  %v10902_v37 = vld [vmem:[#allocation26_spill] sm:$0xff] }
 0x1c2   : > { %v7909_v26 = vrot.slane %v10893_v30, %v7068_v5  ;;  %10901 = vst [vmem:[#allocation107_spill] sm:$0xff] %v7943_v31  ;;  %v2302_v30 = vcombine.low %v10902_v37, %v7300_v34 }
 0x1c3   : > { %v7809_v49 = vpop.trf.xlu0  ;;  %10897 = vst [vmem:[#allocation56_spill] sm:$0xff] %v7928_v38 }
 0x1c4   : > { %10894 = vst [vmem:[#allocation41_spill] sm:$0xff] %v7909_v26 }
 0x1c5   : > { %v7829_v36 = vpop.trf.xlu1 }
 0x1c7   : > { %v7853_v19 = vpop.trf.xlu0 }
 0x1c9   : > { %v7873_v41 = vpop.trf.xlu1 }
 0x1cb   : > { %v7893_v32 = vpop.trf.xlu0  ;;  %678 = vxpose.xlu0.b32.start.end [1/1] (short) %v268_v0, 128  ;;  %v10895_v0 = vcombine.high %v10891_v63, %v10892_v33  ;;  %v7931_v33 = vrot.slane %v4223_v40, %v7068_v5  ;;  %v2303_v40 = vcombine.high %v10902_v37, %v7300_v34  ;;  %v10905_v34 = vld [vmem:[#allocation43_spill] sm:$0xff] }
 0x1cc   : > { %v4358_v37 = vcombine.low %v10905_v34, %v7743_v1 }
 0x1cd   : > { %v7915_v14 = vrot.slane %v10895_v0, %v7068_v5  ;;  %v7917_v9 = vpop.trf.xlu1  ;;  %710 = vxpose.xlu1.b32.start.end [1/1] (short) %v269_v58, 128  ;;  %10898 = vst [vmem:[#allocation106_spill] sm:$0xff] %v7931_v33  ;;  %v10899_v58 = vld [vmem:[#allocation25_spill] sm:$0xff] }
 0x1ce   : > { %v2182_v63 = vcombine.low %v10899_v58, %v7720_v18  ;;  %v2183_v0 = vcombine.high %v10899_v58, %v7720_v18  ;;  %10900 = vst [vmem:[#allocation25_spill] sm:$0xff] %v7940_v27  ;;  %v4359_v18 = vcombine.high %v10905_v34, %v7743_v1  ;;  %v10907_v58 = vld [vmem:[#allocation58_spill] sm:$0xff]  ;;  %v8004_v1 = vrot.slane %v2302_v30, %v7068_v5 }
 0x1cf   : > { %10896 = vst [vmem:[#allocation40_spill] sm:$0xff] %v7915_v14  ;;  %v7937_v53 = vpop.trf.xlu0  ;;  %v10908_v38 = vcombine.low %v10906_v11, %v10907_v58  ;;  %v7992_v14 = vrot.slane %v4358_v37, %v7068_v5  ;;  %v8007_v34 = vrot.slane %v2303_v40, %v7068_v5  ;;  %v10918_v37 = vld [vmem:[#allocation28_spill] sm:$0xff] }
 0x1d0   : > { %v7960_v4 = vrot.slane %v2182_v63, %v7068_v5  ;;  %v7963_v23 = vrot.slane %v2183_v0, %v7068_v5  ;;  %v10910_v63 = vcombine.high %v10906_v11, %v10907_v58  ;;  %v7995_v11 = vrot.slane %v4359_v18, %v7068_v5  ;;  %v10914_v58 = vld [vmem:[#allocation27_spill] sm:$0xff]  ;;  %10916 = vst [vmem:[#allocation110_spill] sm:$0xff] %v8004_v1 }
 0x1d1   : > { %v7957_v25 = vpop.trf.xlu1  ;;  %v7973_v26 = vrot.slane %v10908_v38, %v7068_v5  ;;  %10912 = vst [vmem:[#allocation58_spill] sm:$0xff] %v7992_v14  ;;  %v2319_v33 = vcombine.high %v10914_v58, %v7763_v39  ;;  %10917 = vst [vmem:[#allocation111_spill] sm:$0xff] %v8007_v34  ;;  %v2438_v38 = vcombine.low %v10918_v37, %v7310_v8 }
 0x1d2   : > { %10903 = vst [vmem:[#allocation26_spill] sm:$0xff] %v7960_v4  ;;  %10904 = vst [vmem:[#allocation108_spill] sm:$0xff] %v7963_v23  ;;  %v7979_v28 = vrot.slane %v10910_v63, %v7068_v5  ;;  %v2318_v63 = vcombine.low %v10914_v58, %v7763_v39  ;;  %v2439_v18 = vcombine.high %v10918_v37, %v7310_v8  ;;  %v10921_v8 = vld [vmem:[#allocation45_spill] sm:$0xff]  ;;  %v10922_v23 = vld [vmem:[#allocation44_spill] sm:$0xff] }
 0x1d3   : > { %10909 = vst [vmem:[#allocation43_spill] sm:$0xff] %v7973_v26  ;;  %v7981_v0 = vpop.trf.xlu0  ;;  %10913 = vst [vmem:[#allocation109_spill] sm:$0xff] %v7995_v11  ;;  %v8027_v31 = vrot.slane %v2319_v33, %v7068_v5  ;;  %v4494_v37 = vcombine.low %v10921_v8, %v7787_v62  ;;  %v4495_v39 = vcombine.high %v10921_v8, %v7787_v62  ;;  %v10923_v58 = vld [vmem:[#allocation59_spill] sm:$0xff] }
 0x1d4   : > { %10911 = vst [vmem:[#allocation42_spill] sm:$0xff] %v7979_v28  ;;  %v10924_v14 = vcombine.low %v10922_v23, %v10923_v58  ;;  %v8068_v62 = vrot.slane %v2438_v38, %v7068_v5  ;;  %v8071_v8 = vrot.slane %v2439_v18, %v7068_v5 }
 0x1d5   : > { %v8001_v60 = vpop.trf.xlu1  ;;  %10920 = vst [vmem:[#allocation112_spill] sm:$0xff] %v8027_v31  ;;  %v8056_v28 = vrot.slane %v4494_v37, %v7068_v5  ;;  %v10934_v37 = vld [vmem:[#allocation30_spill] sm:$0xff] }
 0x1d6   : > { %10915 = vst [vmem:[#allocation27_spill] sm:$0xff] %v8001_v60  ;;  %v8024_v60 = vrot.slane %v2318_v63, %v7068_v5  ;;  %v8037_v26 = vrot.slane %v10924_v14, %v7068_v5  ;;  %v10926_v63 = vcombine.high %v10922_v23, %v10923_v58  ;;  %v8059_v23 = vrot.slane %v4495_v39, %v7068_v5  ;;  %v10931_v58 = vld [vmem:[#allocation29_spill] sm:$0xff]  ;;  %v10939_v31 = vld [vmem:[#allocation46_spill] sm:$0xff] }
 0x1d7   : > { %v8021_v40 = vpop.trf.xlu0  ;;  %10929 = vst [vmem:[#allocation113_spill] sm:$0xff] %v8056_v28  ;;  %v2455_v11 = vcombine.high %v10931_v58, %v7809_v49  ;;  %10932 = vst [vmem:[#allocation29_spill] sm:$0xff] %v8068_v62  ;;  %v2574_v14 = vcombine.low %v10934_v37, %v7319_v10  ;;  %v2575_v39 = vcombine.high %v10934_v37, %v7319_v10  ;;  %v10938_v10 = vld [vmem:[#allocation47_spill] sm:$0xff] }
 0x1d8   : > { %10919 = vst [vmem:[#allocation28_spill] sm:$0xff] %v8024_v60  ;;  %10925 = vst [vmem:[#allocation45_spill] sm:$0xff] %v8037_v26  ;;  %v8043_v30 = vrot.slane %v10926_v63, %v7068_v5  ;;  %v2454_v63 = vcombine.low %v10931_v58, %v7809_v49  ;;  %v4630_v37 = vcombine.low %v10938_v10, %v7829_v36  ;;  %v10940_v58 = vld [vmem:[#allocation60_spill] sm:$0xff] }
 0x1d9   : > { %v8045_v33 = vpop.trf.xlu1  ;;  %10930 = vst [vmem:[#allocation114_spill] sm:$0xff] %v8059_v23  ;;  %10933 = vst [vmem:[#allocation115_spill] sm:$0xff] %v8071_v8  ;;  %v8091_v60 = vrot.slane %v2455_v11, %v7068_v5  ;;  %v4631_v49 = vcombine.high %v10938_v10, %v7829_v36  ;;  %v10941_v28 = vcombine.low %v10939_v31, %v10940_v58 }
 0x1da   : > { %10927 = vst [vmem:[#allocation44_spill] sm:$0xff] %v8043_v30  ;;  %10928 = vst [vmem:[#allocation59_spill] sm:$0xff] %v8045_v33  ;;  %v8088_v34 = vrot.slane %v2454_v63, %v7068_v5  ;;  %v10943_v63 = vcombine.high %v10939_v31, %v10940_v58  ;;  %v8120_v30 = vrot.slane %v4630_v37, %v7068_v5  ;;  %v10947_v58 = vld [vmem:[#allocation31_spill] sm:$0xff]  ;;  %v10951_v37 = vld [vmem:[#allocation32_spill] sm:$0xff] }
 0x1db   : > { %v8065_v33 = vpop.trf.xlu0  ;;  %10937 = vst [vmem:[#allocation117_spill] sm:$0xff] %v8091_v60  ;;  %v8101_v26 = vrot.slane %v10941_v28, %v7068_v5  ;;  %v8123_v31 = vrot.slane %v4631_v49, %v7068_v5  ;;  %v2591_v23 = vcombine.high %v10947_v58, %v7853_v19  ;;  %v8132_v36 = vrot.slane %v2574_v14, %v7068_v5  ;;  %v10955_v60 = vld [vmem:[#allocation48_spill] sm:$0xff] }
 0x1dc   : > { %10936 = vst [vmem:[#allocation116_spill] sm:$0xff] %v8088_v34  ;;  %v8107_v38 = vrot.slane %v10943_v63, %v7068_v5  ;;  %10945 = vst [vmem:[#allocation60_spill] sm:$0xff] %v8120_v30  ;;  %v2590_v63 = vcombine.low %v10947_v58, %v7853_v19  ;;  %v8135_v10 = vrot.slane %v2575_v39, %v7068_v5  ;;  %v10956_v58 = vld [vmem:[#allocation61_spill] sm:$0xff] }
 0x1dd   : > { %v8085_v18 = vpop.trf.xlu1  ;;  %10942 = vst [vmem:[#allocation47_spill] sm:$0xff] %v8101_v26  ;;  %10946 = vst [vmem:[#allocation118_spill] sm:$0xff] %v8123_v31  ;;  %v2710_v28 = vcombine.low %v10951_v37, %v7327_v13  ;;  %v2711_v49 = vcombine.high %v10951_v37, %v7327_v13  ;;  %v8155_v8 = vrot.slane %v2591_v23, %v7068_v5  ;;  %v10954_v13 = vld [vmem:[#allocation49_spill] sm:$0xff]  ;;  %v10961_v23 = vld [vmem:[#allocation62_spill] sm:$0xff] }
 0x1de   : > { %10935 = vst [vmem:[#allocation30_spill] sm:$0xff] %v8085_v18  ;;  %10944 = vst [vmem:[#allocation46_spill] sm:$0xff] %v8107_v38  ;;  %v4766_v37 = vcombine.low %v10954_v13, %v7873_v41  ;;  %v4767_v19 = vcombine.high %v10954_v13, %v7873_v41  ;;  %v10957_v30 = vcombine.low %v10955_v60, %v10956_v58  ;;  %v10962_v31 = vld [vmem:[#allocation50_spill] sm:$0xff] }
 0x1df   : > { %v8109_v11 = vpop.trf.xlu0  ;;  %10949 = vst [vmem:[#allocation119_spill] sm:$0xff] %v8132_v36  ;;  %10950 = vst [vmem:[#allocation120_spill] sm:$0xff] %v8135_v10  ;;  %v4886_v38 = vcombine.low %v10962_v31, %v10961_v23  ;;  %v4887_v34 = vcombine.high %v10962_v31, %v10961_v23  ;;  %v10966_v31 = vld [vmem:[#allocation33_spill] sm:$0xff]  ;;  %v8203_v13 = vrot.slane %v2711_v49, %v7068_v5 }
 0x1e0   : > { %10953 = vst [vmem:[#allocation121_spill] sm:$0xff] %v8155_v8  ;;  %v8165_v26 = vrot.slane %v10957_v30, %v7068_v5  ;;  %v2726_v23 = vcombine.low %v10966_v31, %v7893_v32  ;;  %v2727_v41 = vcombine.high %v10966_v31, %v7893_v32  ;;  %v8200_v30 = vrot.slane %v2710_v28, %v7068_v5 }
 0x1e1   : > { %v8129_v18 = vpop.trf.xlu1  ;;  %10968 = vst [vmem:[#allocation122_spill] sm:$0xff] %v8203_v13  ;;  %v8230_v10 = vrot.slane %v4886_v38, %v7068_v5  ;;  %v8233_v31 = vrot.slane %v4887_v34, %v7068_v5 }
 0x1e2   : > { %10948 = vst [vmem:[#allocation31_spill] sm:$0xff] %v8129_v18  ;;  %v8152_v18 = vrot.slane %v2590_v63, %v7068_v5  ;;  %10958 = vst [vmem:[#allocation49_spill] sm:$0xff] %v8165_v26  ;;  %v10959_v63 = vcombine.high %v10955_v60, %v10956_v58  ;;  %v8188_v58 = vrot.slane %v4766_v37, %v7068_v5  ;;  %v10969_v60 = vld [vmem:[#allocation63_spill] sm:$0xff]  ;;  %v10970_v37 = vld [vmem:[#allocation34_spill] sm:$0xff] }
 0x1e3   : > { %v8149_v39 = vpop.trf.xlu0  ;;  %10967 = vst [vmem:[#allocation33_spill] sm:$0xff] %v8200_v30  ;;  %v2846_v8 = vcombine.low %v10970_v37, %v10969_v60  ;;  %v8223_v36 = vrot.slane %v2727_v41, %v7068_v5  ;;  %10976 = vst [vmem:[#allocation124_spill] sm:$0xff] %v8233_v31 }
 0x1e4   : > { %10952 = vst [vmem:[#allocation32_spill] sm:$0xff] %v8152_v18  ;;  %v8171_v14 = vrot.slane %v10959_v63, %v7068_v5  ;;  %10964 = vst [vmem:[#allocation62_spill] sm:$0xff] %v8188_v58  ;;  %v8191_v63 = vrot.slane %v4767_v19, %v7068_v5  ;;  %v2847_v19 = vcombine.high %v10970_v37, %v10969_v60  ;;  %v10974_v60 = vld [vmem:[#allocation51_spill] sm:$0xff] }
 0x1e5   : > { %v8177_v62 = vpop.trf.xlu1  ;;  %v8220_v18 = vrot.slane %v2726_v23, %v7068_v5  ;;  %10973 = vst [vmem:[#allocation123_spill] sm:$0xff] %v8223_v36  ;;  %v4902_v37 = vcombine.low %v10974_v60, %v7917_v9  ;;  %v4903_v32 = vcombine.high %v10974_v60, %v7917_v9  ;;  %10975 = vst [vmem:[#allocation51_spill] sm:$0xff] %v8230_v10  ;;  %v10980_v60 = vld [vmem:[#allocation35_spill] sm:$0xff] }
 0x1e6   : > { %10960 = vst [vmem:[#allocation48_spill] sm:$0xff] %v8171_v14  ;;  %10963 = vst [vmem:[#allocation61_spill] sm:$0xff] %v8177_v62  ;;  %v2862_v14 = vcombine.low %v10980_v60, %v7937_v53  ;;  %v2863_v23 = vcombine.high %v10980_v60, %v7937_v53  ;;  %v8258_v41 = vrot.slane %v2846_v8, %v7068_v5  ;;  %v10990_v53 = vld [vmem:[#allocation52_spill] sm:$0xff] }
 0x1e7   : > { %10965 = vst [vmem:[#allocation50_spill] sm:$0xff] %v8191_v63  ;;  %v8197_v62 = vpop.trf.xlu0  ;;  %10972 = vst [vmem:[#allocation34_spill] sm:$0xff] %v8220_v18  ;;  %v8246_v38 = vrot.slane %v4902_v37, %v7068_v5  ;;  %v8249_v34 = vrot.slane %v4903_v32, %v7068_v5  ;;  %v8261_v63 = vrot.slane %v2847_v19, %v7068_v5  ;;  %v10984_v37 = vld [vmem:[#allocation53_spill] sm:$0xff]  ;;  %v10991_v60 = vld [vmem:[#allocation64_spill] sm:$0xff] }
 0x1e8   : > { %10982 = vst [vmem:[#allocation128_spill] sm:$0xff] %v8258_v41  ;;  %v5038_v9 = vcombine.low %v10984_v37, %v7957_v25  ;;  %v5039_v32 = vcombine.high %v10984_v37, %v7957_v25  ;;  %v10992_v26 = vcombine.low %v10990_v53, %v10991_v60 }
 0x1e9   : > { %v8217_v49 = vpop.trf.xlu1  ;;  %10978 = vst [vmem:[#allocation126_spill] sm:$0xff] %v8246_v38  ;;  %10979 = vst [vmem:[#allocation127_spill] sm:$0xff] %v8249_v34 }
 0x1ea   : > { %10971 = vst [vmem:[#allocation63_spill] sm:$0xff] %v8217_v49  ;;  %10983 = vst [vmem:[#allocation129_spill] sm:$0xff] %v8261_v63  ;;  %v8281_v49 = vrot.slane %v2863_v23, %v7068_v5  ;;  %v8284_v25 = vrot.slane %v5038_v9, %v7068_v5  ;;  %v8287_v37 = vrot.slane %v5039_v32, %v7068_v5 }
 0x1eb   : > { %v8235_v28 = vpop.trf.xlu0  ;;  %v8293_v38 = vrot.slane %v10992_v26, %v7068_v5 }
 0x1ec   : > { %10977 = vst [vmem:[#allocation125_spill] sm:$0xff] %v8235_v28  ;;  %10987 = vst [vmem:[#allocation131_spill] sm:$0xff] %v8281_v49 }
 0x1ed   : > { %v8255_v58 = vpop.trf.xlu1  ;;  %10988 = vst [vmem:[#allocation132_spill] sm:$0xff] %v8284_v25  ;;  %10989 = vst [vmem:[#allocation133_spill] sm:$0xff] %v8287_v37 }
 0x1ee   : > { %10981 = vst [vmem:[#allocation35_spill] sm:$0xff] %v8255_v58  ;;  %v8278_v58 = vrot.slane %v2862_v14, %v7068_v5  ;;  %10993 = vst [vmem:[#allocation52_spill] sm:$0xff] %v8293_v38  ;;  %v10994_v14 = vcombine.high %v10990_v53, %v10991_v60  ;;  %v213_v60 = vcombine.high %v7723_v42, %v7723_v42 }
 0x1ef   : > { %v8275_v19 = vpop.trf.xlu0 }
 0x1f0   : > { %10985 = vst [vmem:[#allocation53_spill] sm:$0xff] %v8275_v19  ;;  %10986 = vst [vmem:[#allocation130_spill] sm:$0xff] %v8278_v58  ;;  %v8299_v8 = vrot.slane %v10994_v14, %v7068_v5 }
 0x1f1   : > { %v8301_v23 = vpop.trf.xlu1 }
 0x1f2   : > { %10995 = vst [vmem:[#allocation64_spill] sm:$0xff] %v8299_v8  ;;  %10996 = vst [vmem:[#allocation134_spill] sm:$0xff] %v8301_v23  ;;  %v276_v8 = vrot.slane %v213_v60, %v7068_v5 }
 0x1f3   : > { %v8319_v9 = vpop.trf.xlu0 }
 0x1f5   : > { %v8321_v32 = vpop.trf.xlu1 }
 0x1f6   : > { %10997 = vst [vmem:[#allocation135_spill] sm:$0xff] %v8321_v32 }
 0x1f7   : > { %v8323_v34 = vpop.trf.xlu0 }
 0x1f8   : > { %10998 = vst [vmem:[#allocation136_spill] sm:$0xff] %v8323_v34 }
 0x1f9   : > { %v8325_v10 = vpop.trf.xlu1 }
 0x1fa   : > { %10999 = vst [vmem:[#allocation137_spill] sm:$0xff] %v8325_v10  ;;  %v277_v10 = vcombine.high %v276_v8, %v276_v8 }
 0x1fb   : > { %v8327_v26 = vpop.trf.xlu0 }
 0x1fc   : > { %11000 = vst [vmem:[#allocation138_spill] sm:$0xff] %v8327_v26 }
 0x1fd   : > { %v8329_v31 = vpop.trf.xlu1 }
 0x1fe   : > { %11001 = vst [vmem:[#allocation139_spill] sm:$0xff] %v8329_v31 }
 0x1ff   : > { %v8331_v23 = vpop.trf.xlu0 }
 0x200   : > { %11002 = vst [vmem:[#allocation140_spill] sm:$0xff] %v8331_v23 }
 0x201   : > { %v8333_v53 = vpop.trf.xlu1 }
 0x202   : > { %11003 = vst [vmem:[#allocation141_spill] sm:$0xff] %v8333_v53 }
 0x203   : > { %v8337_v14 = vpop.trf.xlu0 }
 0x204   : > { %11004 = vst [vmem:[#allocation142_spill] sm:$0xff] %v8337_v14 }
 0x205   : > { %v8339_v37 = vpop.trf.xlu1 }
 0x206   : > { %11005 = vst [vmem:[#allocation143_spill] sm:$0xff] %v8339_v37 }
 0x207   : > { %v8342_v25 = vpop.trf.xlu0 }
 0x208   : > { %11006 = vst [vmem:[#allocation144_spill] sm:$0xff] %v8342_v25 }
 0x209   : > { %v8344_v38 = vpop.trf.xlu1 }
 0x20a   : > { %11007 = vst [vmem:[#allocation145_spill] sm:$0xff] %v8344_v38 }
 0x20b   : > { %v8346_v32 = vpop.trf.xlu0  ;;  %742 = vxpose.xlu0.b32.start.end [1/1] (short) %v276_v8, 128 }
 0x20c   : > { %11008 = vst [vmem:[#allocation146_spill] sm:$0xff] %v8346_v32 }
 0x20d   : > { %v8348_v31 = vpop.trf.xlu1  ;;  %774 = vxpose.xlu1.b32.start.end [1/1] (short) %v277_v10, 128 }
 0x20e   : > { %11009 = vst [vmem:[#allocation147_spill] sm:$0xff] %v8348_v31 }
 0x20f   : > { %v8350_v53 = vpop.trf.xlu0 }
 0x210   : > { %11010 = vst [vmem:[#allocation148_spill] sm:$0xff] %v8350_v53 }
 0x211   : > { %v8352_v42 = vpop.trf.xlu1 }
 0x212   : > { %11011 = vst [vmem:[#allocation149_spill] sm:$0xff] %v8352_v42 }
 0x213   : > { %v8354_v49 = vpop.trf.xlu0 }
 0x215   : > { %v8356_v37 = vpop.trf.xlu1 }
 0x216   : > { %11012 = vst [vmem:[#allocation150_spill] sm:$0xff] %v8356_v37 }
 0x217   : > { %v8358_v60 = vpop.trf.xlu0 }
 0x219   : > { %v8360_v63 = vpop.trf.xlu1 }
 0x21a   : > { %11013 = vst [vmem:[#allocation151_spill] sm:$0xff] %v8360_v63 }
 0x21b   : > { %v8362_v38 = vpop.trf.xlu0 }
 0x21d   : > { %v8364_v58 = vpop.trf.xlu1 }
 0x21e   : > { %11014 = vst [vmem:[#allocation152_spill] sm:$0xff] %v8364_v58 }
 0x21f   : > { %v8366_v8 = vpop.trf.xlu0 }
 0x221   : > { %v8368_v31 = vpop.trf.xlu1 }
 0x222   : > { %11015 = vst [vmem:[#allocation153_spill] sm:$0xff] %v8368_v31 }
 0x223   : > { %v8370_v10 = vpop.trf.xlu0 }
 0x225   : > { %v8372_v41 = vpop.trf.xlu1 }
 0x226   : > { %11016 = vst [vmem:[#allocation154_spill] sm:$0xff] %v8372_v41 }
 0x227   : > { %v8374_v42 = vpop.trf.xlu0 }
 0x229   : > { %v8376_v36 = vpop.trf.xlu1 }
 0x22a   : > { %11017 = vst [vmem:[#allocation155_spill] sm:$0xff] %v8376_v36 }
 0x22b   : > { %v8378_v37 = vpop.trf.xlu0 }
 0x22c   : > { %11018 = vst [vmem:[#allocation156_spill] sm:$0xff] %v8378_v37 }
 0x22d   : > { %v8380_v13 = vpop.trf.xlu1 }
 0x22e   : > { %11019 = vst [vmem:[#allocation157_spill] sm:$0xff] %v8380_v13 }
 0x22f   : > { %v8382_v63 = vpop.trf.xlu0 }
 0x230   : > { %11020 = vst [vmem:[#allocation158_spill] sm:$0xff] %v8382_v63 }
 0x231   : > { %v8384_v53 = vpop.trf.xlu1 }
 0x232   : > { %11021 = vst [vmem:[#allocation159_spill] sm:$0xff] %v8384_v53 }
 0x233   : > { %v8386_v58 = vpop.trf.xlu0 }
 0x235   : > { %v8388_v18 = vpop.trf.xlu1 }
 0x236   : > { %11022 = vst [vmem:[#allocation160_spill] sm:$0xff] %v8388_v18 }
 0x237   : > { %v8390_v31 = vpop.trf.xlu0 }
 0x238   : > { %11023 = vst [vmem:[#allocation161_spill] sm:$0xff] %v8390_v31 }
 0x239   : > { %v8392_v30 = vpop.trf.xlu1 }
 0x23a   : > { %11024 = vst [vmem:[#allocation162_spill] sm:$0xff] %v8392_v30 }
 0x23b   : > { %v8394_v41 = vpop.trf.xlu0 }
 0x23c   : > { %11025 = vst [vmem:[#allocation163_spill] sm:$0xff] %v8394_v41 }
 0x23d   : > { %v8396_v32 = vpop.trf.xlu1 }
 0x23e   : > { %11026 = vst [vmem:[#allocation164_spill] sm:$0xff] %v8396_v32 }
 0x23f   : > { %v8398_v36 = vpop.trf.xlu0 }
 0x240   : > { %11027 = vst [vmem:[#allocation165_spill] sm:$0xff] %v8398_v36 }
 0x241   : > { %v8400_v25 = vpop.trf.xlu1 }
 0x242   : > { %11028 = vst [vmem:[#allocation166_spill] sm:$0xff] %v8400_v25 }
 0x243   : > { %v8402_v13 = vpop.trf.xlu0 }
 0x244   : > { %11029 = vst [vmem:[#allocation167_spill] sm:$0xff] %v8402_v13 }
 0x245   : > { %v8404_v14 = vpop.trf.xlu1 }
 0x246   : > { %11030 = vst [vmem:[#allocation168_spill] sm:$0xff] %v8404_v14 }
 0x247   : > { %v8406_v53 = vpop.trf.xlu0 }
 0x248   : > { %11031 = vst [vmem:[#allocation169_spill] sm:$0xff] %v8406_v53 }
 0x249   : > { %v8408_v1 = vpop.trf.xlu1 }
 0x24a   : > { %11032 = vst [vmem:[#allocation170_spill] sm:$0xff] %v8408_v1 }
 0x24b   : > { %v8410_v18 = vpop.trf.xlu0 }
 0x24c   : > { %11033 = vst [vmem:[#allocation171_spill] sm:$0xff] %v8410_v18 }
 0x24d   : > { %v8412_v23 = vpop.trf.xlu1 }
 0x24e   : > { %11034 = vst [vmem:[#allocation172_spill] sm:$0xff] %v8412_v23 }
 0x24f   : > { %v8414_v30 = vpop.trf.xlu0 }
 0x250   : > { %11035 = vst [vmem:[#allocation173_spill] sm:$0xff] %v8414_v30 }
 0x251   : > { %v8416_v4 = vpop.trf.xlu1 }
 0x252   : > { %11036 = vst [vmem:[#allocation174_spill] sm:$0xff] %v8416_v4 }
 0x253   : > { %v694_v32 = vpop.trf.xlu0 }
 0x255   : > { %v8418_v36 = vpop.trf.xlu1 }
 0x256   : > { %11037 = vst [vmem:[#allocation175_spill] sm:$0xff] %v8418_v36 }
 0x257   : > { %v8420_v25 = vpop.trf.xlu0 }
 0x259   : > { %v8424_v14 = vpop.trf.xlu1 }
 0x25a   : > { %11038 = vst [vmem:[#allocation176_spill] sm:$0xff] %v8424_v14 }
 0x25b   : > { %v8422_v13 = vpop.trf.xlu0 }
 0x25d   : > { %v8428_v1 = vpop.trf.xlu1 }
 0x25e   : > { %11039 = vst [vmem:[#allocation177_spill] sm:$0xff] %v8428_v1 }
 0x25f   : > { %v8426_v53 = vpop.trf.xlu0 }
 0x261   : > { %v8434_v30 = vpop.trf.xlu1 }
 0x262   : > { %11040 = vst [vmem:[#allocation178_spill] sm:$0xff] %v8434_v30 }
 0x263   : > { %v8430_v18 = vpop.trf.xlu0 }
 0x265   : > { %v8438_v27 = vpop.trf.xlu1 }
 0x266   : > { %11042 = vst [vmem:[#allocation180_spill] sm:$0xff] %v8438_v27 }
 0x267   : > { %v8432_v23 = vpop.trf.xlu0 }
 0x269   : > { %v8444_v41 = vpop.trf.xlu1 }
 0x26a   : > { %11044 = vst [vmem:[#allocation182_spill] sm:$0xff] %v8444_v41  ;;  %v6866_v41 = vmov 1934713408  }
 0x26b   : > { %v8436_v4 = vpop.trf.xlu0 }
 0x26c   : > { %11041 = vst [vmem:[#allocation179_spill] sm:$0xff] %v8436_v4 }
 0x26d   : > { %v8448_v34 = vpop.trf.xlu1 }
 0x26e   : > { %11046 = vst [vmem:[#allocation184_spill] sm:$0xff] %v8448_v34 }
 0x26f   : > { %v8440_v36 = vpop.trf.xlu0 }
 0x270   : > { %11043 = vst [vmem:[#allocation181_spill] sm:$0xff] %v8440_v36 }
 0x271   : > { %v8454_v57 = vpop.trf.xlu1 }
 0x272   : > { %11049 = vst [vmem:[#allocation187_spill] sm:$0xff] %v8454_v57 }
 0x273   : > { %v8442_v26 = vpop.trf.xlu0 }
 0x275   : > { %v8458_v48 = vpop.trf.xlu1 }
 0x276   : > { %11051 = vst [vmem:[#allocation189_spill] sm:$0xff] %v8458_v48 }
 0x277   : > { %v8446_v14 = vpop.trf.xlu0 }
 0x278   : > { %11045 = vst [vmem:[#allocation183_spill] sm:$0xff] %v8446_v14  ;;  %v873_v14 = vunpack.c.l.s4 %v6866_v41 }
 0x279   : > { %v8464_v36 = vpop.trf.xlu1 }
 0x27a   : > { %11054 = vst [vmem:[#allocation192_spill] sm:$0xff] %v8464_v36  ;;  %v874_v34 = vunpack.c.0.s8 %v873_v14 }
 0x27b   : > { %v8450_v1 = vpop.trf.xlu0 }
 0x27c   : > { %11047 = vst [vmem:[#allocation185_spill] sm:$0xff] %v8450_v1  ;;  %v838_v1 = vcombine.low %v7981_v0, %v694_v32  ;;  %v8473_v48 = vsub.s32 %v874_v34, %v11057_v44  ;;  %v839_v44 = vcombine.high %v7981_v0, %v694_v32  ;;  %v11062_v0 = vcombine.high %v7346_v3, %v7356_v6 }
 0x27f   : > { %v8452_v31 = vpop.trf.xlu0 }
 0x280   : > { %11048 = vst [vmem:[#allocation186_spill] sm:$0xff] %v8452_v31  ;;  %v8469_v31 = vpop.trf.xlu1 }
 0x281   : > { %11056 = vst [vmem:[#allocation194_spill] sm:$0xff] %v8469_v31  ;;  %v11059_v31 = vcombine.low %v7346_v3, %v7356_v6 }
 0x283   : > { %v8456_v30 = vpop.trf.xlu0  ;;  %v8484_v29 = vrot.slane %v11059_v31, %v8473_v48  ;;  %v885_v31 = vrot.slane %v11062_v0, %v8473_v48 }
 0x284   : > { %11050 = vst [vmem:[#allocation188_spill] sm:$0xff] %v8456_v30 }
 0x285   : > { %11060 = vst [vmem:[#allocation195_spill] sm:$0xff] %v8484_v29 }
 0x287   : > { %v8460_v27 = vpop.trf.xlu0 }
 0x288   : > { %11052 = vst [vmem:[#allocation190_spill] sm:$0xff] %v8460_v27  ;;  %v846_v27 = vrot.slane %v838_v1, %v7068_v5 }
 0x28b   : > { %v8462_v19 = vpop.trf.xlu0 }
 0x28c   : > { %11053 = vst [vmem:[#allocation191_spill] sm:$0xff] %v8462_v19 }
 0x28f   : > { %v8466_v63 = vpop.trf.xlu0 }
 0x290   : > { %11055 = vst [vmem:[#allocation193_spill] sm:$0xff] %v8466_v63  ;;  %v8478_v63 = vpop.trf.xlu1 }
 0x291   : > { %11058 = vst [vmem:[#allocation19_spill] sm:$0xff] %v8478_v63 }
 0x293   : > { %v758_v57 = vpop.trf.xlu0 }
 0x294   : > { %v854_v30 = vcombine.low %v8354_v49, %v758_v57  ;;  %v855_v41 = vcombine.high %v8354_v49, %v758_v57  ;;  %v853_v49 = vrot.slane %v839_v44, %v7068_v5 }
 0x296   : > { %v862_v19 = vrot.slane %v854_v30, %v7068_v5  ;;  %v869_v30 = vrot.slane %v855_v41, %v7068_v5  ;;  %v974_v41 = vcombine.low %v8021_v40, %v8420_v25 }
 0x297   : > { %v759_v36 = vpop.trf.xlu0 }
 0x298   : > { %v902_v56 = vcombine.low %v846_v27, %v862_v19  ;;  %v903_v14 = vcombine.high %v846_v27, %v862_v19  ;;  %v990_v19 = vcombine.low %v8358_v60, %v759_v36  ;;  %v919_v63 = vcombine.high %v853_v49, %v869_v30 }
 0x299   : > { %v982_v6 = vrot.slane %v974_v41, %v7068_v5  ;;  %v918_v28 = vcombine.low %v853_v49, %v869_v30  ;;  %v975_v41 = vcombine.high %v8021_v40, %v8420_v25 }
 0x29a   : > { %v8488_v34 = vrot.slane %v902_v56, %v8473_v48  ;;  %v917_v27 = vrot.slane %v903_v14, %v8473_v48  ;;  %v8502_v56 = vpop.trf.xlu1  ;;  %v998_v44 = vrot.slane %v990_v19, %v7068_v5  ;;  %v933_v0 = vrot.slane %v919_v63, %v8473_v48 }
 0x29b   : > { %v8490_v1 = vpop.trf.xlu0  ;;  %11063 = vst [vmem:[#allocation197_spill] sm:$0xff] %v8502_v56  ;;  %v11064_v56 = vld [vmem:[#allocation65_spill] sm:$0xff]  ;;  %v989_v49 = vrot.slane %v975_v41, %v7068_v5 }
 0x29c   : > { %11061 = vst [vmem:[#allocation196_spill] sm:$0xff] %v8488_v34  ;;  %v935_v14 = vcombine.high %v8484_v29, %v8488_v34  ;;  %v936_v57 = vcombine.low %v885_v31, %v917_v27  ;;  %v11065_v17 = vcombine.high %v7349_v15, %v11064_v56  ;;  %v1038_v19 = vcombine.low %v982_v6, %v998_v44 }
 0x29d   : > { %v937_v37 = vcombine.high %v885_v31, %v917_v27  ;;  %v11066_v63 = vcombine.low %v7349_v15, %v11064_v56  ;;  %v11069_v56 = vcombine.high %v7392_v47, %v7410_v51 }
 0x29e   : > { %5159 = vrot.lane.b32.xlu0 %v935_v14, %s10631_s18  ;;  %5163 = vrot.lane.b32.xlu1 %v936_v57, %s10676_s27  ;;  %v901_v34 = vrot.slane %v11065_v17, %v8473_v48  ;;  %v8521_v29 = vpop.trf.xlu1  ;;  %v991_v14 = vcombine.high %v8358_v60, %v759_v36  ;;  %v1046_v17 = vrot.slane %v1038_v19, %v8473_v48 }
 0x29f   : > { %v8504_v32 = vpop.trf.xlu0  ;;  %v894_v36 = vrot.slane %v11066_v63, %v8473_v48  ;;  %v11067_v60 = vcombine.low %v7392_v47, %v7410_v51  ;;  %v11071_v47 = vcombine.low %v7395_v12, %v7413_v16 }
 0x2a0   : > { %v940_v4 = vcombine.low %v901_v34, %v933_v0  ;;  %v1005_v40 = vrot.slane %v991_v14, %v7068_v5  ;;  %v1021_v14 = vrot.slane %v11069_v56, %v8473_v48 }
 0x2a1   : > { %v1014_v30 = vrot.slane %v11067_v60, %v8473_v48  ;;  %v1126_v60 = vcombine.low %v8362_v38, %v8490_v1  ;;  %v1030_v51 = vrot.slane %v11071_v47, %v8473_v48 }
 0x2a2   : > { %5179 = vrot.lane.b32.xlu0 %v940_v4, %s10670_s29  ;;  %5167 = vrot.lane.b32.xlu1 %v937_v37, %s10667_s30  ;;  %v8539_v27 = vpop.trf.xlu1  ;;  %v926_v4 = vrot.slane %v918_v28, %v8473_v48  ;;  %v1039_v37 = vcombine.high %v982_v6, %v998_v44  ;;  %v1054_v15 = vcombine.low %v989_v49, %v1005_v40 }
 0x2a3   : > { %v8513_v3 = vpop.trf.xlu0  ;;  %11068 = vst [vmem:[#allocation65_spill] sm:$0xff] %v8539_v27  ;;  %v1070_v31 = vcombine.low %v1014_v30, %v1046_v17 }
 0x2a4   : > { %v938_v19 = vcombine.low %v894_v36, %v926_v4  ;;  %v1053_v28 = vrot.slane %v1039_v37, %v8473_v48  ;;  %v939_v44 = vcombine.high %v894_v36, %v926_v4  ;;  %v1110_v36 = vcombine.low %v8065_v33, %v8422_v13 }
 0x2a5   : > { %v1055_v4 = vcombine.high %v989_v49, %v1005_v40  ;;  %v1071_v49 = vcombine.high %v1014_v30, %v1046_v17 }
 0x2a6   : > { %5187 = vrot.lane.b32.xlu0 %v1070_v31, %s10664_s2  ;;  %5171 = vrot.lane.b32.xlu1 %v938_v19, %s10673_s5  ;;  %v8553_v63 = vpop.trf.xlu1  ;;  %v1072_v41 = vcombine.low %v1021_v14, %v1053_v28  ;;  %v1062_v31 = vrot.slane %v1054_v15, %v8473_v48  ;;  %v941_v19 = vcombine.high %v901_v34, %v933_v0 }
 0x2a7   : > { %v8524_v57 = vpop.trf.xlu0  ;;  %11070 = vst [vmem:[#allocation198_spill] sm:$0xff] %v8553_v63  ;;  %v1926_v15 = vcombine.low %v8319_v9, %v8442_v26  ;;  %v1069_v40 = vrot.slane %v1055_v4, %v8473_v48  ;;  %v11072_v34 = vcombine.high %v7395_v12, %v7413_v16  ;;  %v1111_v12 = vcombine.high %v8065_v33, %v8422_v13 }
 0x2a8   : > { %v1074_v37 = vcombine.low %v1030_v51, %v1062_v31  ;;  %v1073_v4 = vcombine.high %v1021_v14, %v1053_v28 }
 0x2a9   : > { %v1037_v0 = vrot.slane %v11072_v34, %v8473_v48  ;;  %v8586_v27 = vrot.slane %v1926_v15, %v7068_v5  ;;  %v11074_v15 = vcombine.low %v7812_v35, %v7832_v45 }
 0x2aa   : > { %5175 = vrot.lane.b32.xlu1 %v939_v44, %s10661_s12  ;;  %5195 = vrot.lane.b32.xlu0 %v1072_v41, %s10658_s13  ;;  %v8568_v56 = vpop.trf.xlu1  ;;  %v1134_v44 = vrot.slane %v1126_v60, %v7068_v5  ;;  %v1118_v41 = vrot.slane %v1110_v36, %v7068_v5 }
 0x2ab   : > { %v8543_v25 = vpop.trf.xlu0  ;;  %v8610_v34 = vrot.slane %v11074_v15, %v8473_v48 }
 0x2ac   : > { %v1174_v47 = vcombine.low %v1118_v41, %v1134_v44 }
 0x2ae   : > { %5203 = vrot.lane.b32.xlu0 %v1074_v37, %s10652_s15  ;;  %5183 = vrot.lane.b32.xlu1 %v941_v19, %s10655_s16  ;;  %v1127_v37 = vcombine.high %v8362_v38, %v8490_v1  ;;  %v1076_v19 = vcombine.low %v1037_v0, %v1069_v40  ;;  %v8594_v16 = vpop.trf.xlu1  ;;  %v11073_v38 = vcombine.low %v7446_v43, %v7464_v46 }
 0x2af   : > { %v8555_v6 = vpop.trf.xlu0  ;;  %v1182_v30 = vrot.slane %v1174_v47, %v8473_v48 }
 0x2b0   : > { %v1150_v1 = vrot.slane %v11073_v38, %v8473_v48  ;;  %v1141_v33 = vrot.slane %v1127_v37, %v7068_v5  ;;  %v11075_v37 = vcombine.high %v7446_v43, %v7464_v46  ;;  %v1246_v38 = vcombine.low %v8109_v11, %v8426_v53 }
 0x2b1   : > { %v11076_v43 = vcombine.low %v7449_v52, %v7467_v7 }
 0x2b2   : > { %5191 = vrot.lane.b32.xlu1 %v1071_v49, %s10649_s17  ;;  %5211 = vrot.lane.b32.xlu0 %v1076_v19, %s10549_s22  ;;  %v1175_v49 = vcombine.high %v1118_v41, %v1134_v44  ;;  %v1125_v19 = vrot.slane %v1111_v12, %v7068_v5  ;;  %v8620_v28 = vpop.trf.xlu1  ;;  %v1157_v44 = vrot.slane %v11075_v37, %v8473_v48  ;;  %s10555_s22 = smov 38  }
 0x2b3   : > { %v8571_v63 = vpop.trf.xlu0  ;;  %v1262_v41 = vcombine.low %v8366_v8, %v8504_v32  ;;  %v1075_v12 = vcombine.high %v1030_v51, %v1062_v31  ;;  %v1166_v46 = vrot.slane %v11076_v43, %v8473_v48  ;;  %v1077_v31 = vcombine.high %v1037_v0, %v1069_v40 }
 0x2b4   : > { %v1942_v60 = vcombine.low %v8386_v58, %v8571_v63  ;;  %v1190_v47 = vcombine.low %v1125_v19, %v1141_v33  ;;  %v1191_v51 = vcombine.high %v1125_v19, %v1141_v33  ;;  %v1263_v0 = vcombine.high %v8366_v8, %v8504_v32 }
 0x2b6   : > { %v8592_v36 = vrot.slane %v1942_v60, %v7068_v5  ;;  %v1206_v60 = vcombine.low %v1150_v1, %v1182_v30  ;;  %5199 = vrot.lane.b32.xlu1 %v1073_v4, %s10646_s23  ;;  %v1198_v15 = vrot.slane %v1190_v47, %v8473_v48  ;;  %v8639_v37 = vpop.trf.xlu1  ;;  %v1205_v43 = vrot.slane %v1191_v51, %v8473_v48 }
 0x2b7   : > { %v1398_v51 = vcombine.low %v8370_v10, %v8513_v3 }
 0x2b8   : > { %v1990_v17 = vcombine.low %v8586_v27, %v8592_v36  ;;  %5219 = vrot.lane.b32.xlu0 %v1206_v60, %s10547_s24  ;;  %v1270_v60 = vrot.slane %v1262_v41, %v7068_v5  ;;  %v1210_v14 = vcombine.low %v1166_v46, %v1198_v15  ;;  %v11077_v41 = vcombine.high %v7449_v52, %v7467_v7  ;;  %s10551_s24 = smov 48  }
 0x2b9   : > { %v1247_v52 = vcombine.high %v8109_v11, %v8426_v53 }
 0x2ba   : > { %v8614_v13 = vrot.slane %v1990_v17, %v8473_v48  ;;  %v1189_v17 = vrot.slane %v1175_v49, %v8473_v48  ;;  %5207 = vrot.lane.b32.xlu1 %v1075_v12, %s10643_s25  ;;  %v1254_v49 = vrot.slane %v1246_v38, %v7068_v5  ;;  %v1173_v12 = vrot.slane %v11077_v41, %v8473_v48  ;;  %v8650_v40 = vpop.trf.xlu1 }
 0x2bb   : > { %v1406_v41 = vrot.slane %v1398_v51, %v7068_v5 }
 0x2bc   : > { %v1208_v4 = vcombine.low %v1157_v44, %v1189_v17  ;;  %v1310_v47 = vcombine.low %v1254_v49, %v1270_v60  ;;  %v1212_v33 = vcombine.low %v1173_v12, %v1205_v43  ;;  %v1311_v8 = vcombine.high %v1254_v49, %v1270_v60 }
 0x2bd   : > { %v1209_v38 = vcombine.high %v1157_v44, %v1189_v17  ;;  %v11079_v60 = vcombine.high %v7500_v20, %v7518_v21  ;;  %v1382_v44 = vcombine.low %v8149_v39, %v8430_v18  ;;  %v1211_v17 = vcombine.high %v1166_v46, %v1198_v15 }
 0x2be   : > { %5227 = vrot.lane.b32.xlu0 %v1208_v4, %s10543_s3  ;;  %5215 = vrot.lane.b32.xlu1 %v1077_v31, %s10637_s4  ;;  %v1207_v4 = vcombine.high %v1150_v1, %v1182_v30  ;;  %s10640_s3 = smov 34   ;;  %v1318_v19 = vrot.slane %v1310_v47, %v8473_v48  ;;  %v1277_v1 = vrot.slane %v1263_v0, %v7068_v5  ;;  %v8664_v30 = vpop.trf.xlu1 }
 0x2bf   : > { %v1261_v31 = vrot.slane %v1247_v52, %v7068_v5  ;;  %v1325_v53 = vrot.slane %v1311_v8, %v8473_v48  ;;  %v1293_v49 = vrot.slane %v11079_v60, %v8473_v48  ;;  %v1213_v15 = vcombine.high %v1173_v12, %v1205_v43 }
 0x2c0   : > { %v1399_v46 = vcombine.high %v8370_v10, %v8513_v3 }
 0x2c1   : > { %v1326_v11 = vcombine.low %v1261_v31, %v1277_v1  ;;  %v1327_v47 = vcombine.high %v1261_v31, %v1277_v1  ;;  %v1344_v0 = vcombine.low %v1293_v49, %v1325_v53  ;;  %v1383_v31 = vcombine.high %v8149_v39, %v8430_v18 }
 0x2c2   : > { %5235 = vrot.lane.b32.xlu0 %v1210_v14, %s10545_s28  ;;  %5223 = vrot.lane.b32.xlu1 %v1207_v4, %s10640_s3  ;;  %v11078_v14 = vcombine.low %v7500_v20, %v7518_v21  ;;  %s10553_s28 = smov 44   ;;  %v8679_v4 = vpop.trf.xlu1  ;;  %v11080_v20 = vcombine.low %v7503_v54, %v7521_v2  ;;  %v1413_v3 = vrot.slane %v1399_v46, %v7068_v5 }
 0x2c3   : > { %v1341_v8 = vrot.slane %v1327_v47, %v8473_v48  ;;  %v1397_v18 = vrot.slane %v1383_v31, %v7068_v5  ;;  %v1345_v39 = vcombine.high %v1293_v49, %v1325_v53  ;;  %v11083_v47 = vcombine.high %v7556_v50, %v7576_v22 }
 0x2c4   : > { %v1286_v7 = vrot.slane %v11078_v14, %v8473_v48  ;;  %v1302_v21 = vrot.slane %v11080_v20, %v8473_v48  ;;  %v1390_v14 = vrot.slane %v1382_v44, %v7068_v5  ;;  %v1518_v53 = vcombine.low %v8197_v62, %v8432_v23 }
 0x2c6   : > { %5243 = vrot.lane.b32.xlu0 %v1212_v33, %s10553_s28  ;;  %v1342_v32 = vcombine.low %v1286_v7, %v1318_v19  ;;  %5231 = vrot.lane.b32.xlu1 %v1209_v38, %s10555_s22  ;;  %v1334_v33 = vrot.slane %v1326_v11, %v8473_v48  ;;  %s10557_s28 = smov 52   ;;  %v1446_v52 = vcombine.low %v1390_v14, %v1406_v41  ;;  %s10559_s22 = smov 46   ;;  %v8699_v51 = vpop.trf.xlu1 }
 0x2c7   : > { %v1343_v10 = vcombine.high %v1286_v7, %v1318_v19  ;;  %v1447_v12 = vcombine.high %v1390_v14, %v1406_v41  ;;  %v1462_v19 = vcombine.low %v1397_v18, %v1413_v3  ;;  %v1534_v7 = vcombine.low %v8374_v42, %v8524_v57 }
 0x2c8   : > { %v1346_v1 = vcombine.low %v1302_v21, %v1334_v33  ;;  %v1454_v11 = vrot.slane %v1446_v52, %v8473_v48  ;;  %v1429_v41 = vrot.slane %v11083_v47, %v8473_v48  ;;  %v1347_v49 = vcombine.high %v1302_v21, %v1334_v33  ;;  %v8732_v52 = vpop.trf.xlu0 }
 0x2c9   : > { %v1542_v20 = vrot.slane %v1534_v7, %v7068_v5  ;;  %v1526_v46 = vrot.slane %v1518_v53, %v7068_v5  ;;  %v1535_v21 = vcombine.high %v8374_v42, %v8524_v57  ;;  %v11088_v47 = vcombine.high %v7616_v61, %v7636_v24 }
 0x2ca   : > { %5251 = vrot.lane.b32.xlu0 %v1342_v32, %s10551_s24  ;;  %s10561_s24 = smov 42   ;;  %v11081_v32 = vcombine.high %v7503_v54, %v7521_v2  ;;  %v11082_v2 = vcombine.low %v7556_v50, %v7576_v22  ;;  %v8713_v60 = vpop.trf.xlu1  ;;  %v11084_v22 = vcombine.low %v7559_v59, %v7579_v55 }
 0x2cb   : > { %5239 = vrot.lane.b32.xlu1 %v1211_v17, %s10561_s24  ;;  %s10565_s24 = smov 60   ;;  %v1461_v17 = vrot.slane %v1447_v12, %v8473_v48  ;;  %v1549_v42 = vrot.slane %v1535_v21, %v7068_v5  ;;  %v1583_v57 = vcombine.high %v1526_v46, %v1542_v20  ;;  %v1565_v53 = vrot.slane %v11088_v47, %v8473_v48 }
 0x2cc   : > { %v1309_v38 = vrot.slane %v11081_v32, %v8473_v48  ;;  %v1422_v54 = vrot.slane %v11082_v2, %v8473_v48  ;;  %v1438_v50 = vrot.slane %v11084_v22, %v8473_v48  ;;  %v1582_v32 = vcombine.low %v1526_v46, %v1542_v20 }
 0x2cd   : > { %v1480_v14 = vcombine.low %v1429_v41, %v1461_v17 }
 0x2ce   : > { %5259 = vrot.lane.b32.xlu0 %v1344_v0, %s10557_s28  ;;  %s10563_s28 = smov 56   ;;  %v1348_v43 = vcombine.low %v1309_v38, %v1341_v8  ;;  %v1478_v44 = vcombine.low %v1422_v54, %v1454_v11  ;;  %v1463_v0 = vcombine.high %v1397_v18, %v1413_v3  ;;  %v1349_v33 = vcombine.high %v1309_v38, %v1341_v8  ;;  %v8749_v38 = vpop.trf.xlu0 }
 0x2cf   : > { %5247 = vrot.lane.b32.xlu1 %v1213_v15, %s10559_s22  ;;  %s10567_s22 = smov 50   ;;  %v1470_v15 = vrot.slane %v1462_v19, %v8473_v48  ;;  %v11085_v3 = vcombine.high %v7559_v59, %v7579_v55  ;;  %v1479_v8 = vcombine.high %v1422_v54, %v1454_v11  ;;  %v11086_v55 = vcombine.low %v7616_v61, %v7636_v24  ;;  %v11087_v54 = vld [vmem:[#allocation156_spill] sm:$0xff]  ;;  %v11091_v24 = vld [vmem:[#allocation86_spill] sm:$0xff]  ;;  %v11092_v61 = vld [vmem:[#allocation87_spill] sm:$0xff] }
 0x2d0   : > { %v1670_v19 = vcombine.low %v11087_v54, %v8543_v25 }
 0x2d1   : > { %v1482_v31 = vcombine.low %v1438_v50, %v1470_v15  ;;  %v1445_v12 = vrot.slane %v11085_v3, %v8473_v48  ;;  %v1558_v59 = vrot.slane %v11086_v55, %v8473_v48  ;;  %v11094_v55 = vcombine.high %v11091_v24, %v11092_v61 }
 0x2d2   : > { %5267 = vrot.lane.b32.xlu0 %v1346_v1, %s10563_s28  ;;  %s10579_s28 = smov 54   ;;  %v8734_v1 = vpop.trf.xlu1  ;;  %v1678_v46 = vrot.slane %v1670_v19, %v7068_v5  ;;  %v11095_v19 = vld [vmem:[#allocation92_spill] sm:$0xff] }
 0x2d3   : > { %5255 = vrot.lane.b32.xlu1 %v1343_v10, %s10567_s22  ;;  %s10571_s22 = smov 58   ;;  %v1477_v10 = vrot.slane %v1463_v0, %v8473_v48  ;;  %v11090_v0 = vld [vmem:[#allocation125_spill] sm:$0xff] }
 0x2d5   : > { %v1484_v18 = vcombine.low %v1445_v12, %v1477_v10 }
 0x2d6   : > { %5275 = vrot.lane.b32.xlu0 %v1348_v43, %s10565_s24  ;;  %s10569_s24 = smov 64   ;;  %v1519_v43 = vcombine.high %v8197_v62, %v8432_v23  ;;  %v8751_v2 = vpop.trf.xlu1  ;;  %v1481_v23 = vcombine.high %v1429_v41, %v1461_v17  ;;  %v1483_v41 = vcombine.high %v1438_v50, %v1470_v15  ;;  %v1485_v15 = vcombine.high %v1445_v12, %v1477_v10 }
 0x2d7   : > { %5263 = vrot.lane.b32.xlu1 %v1345_v39, %s10579_s28  ;;  %v1590_v39 = vrot.slane %v1582_v32, %v8473_v48  ;;  %s10583_s28 = smov 70   ;;  %v11093_v32 = vcombine.low %v11091_v24, %v11092_v61  ;;  %v1671_v50 = vcombine.high %v11087_v54, %v8543_v25 }
 0x2d8   : > { %v1533_v62 = vrot.slane %v1519_v43, %v7068_v5 }
 0x2d9   : > { %v1614_v7 = vcombine.low %v1558_v59, %v1590_v39  ;;  %v1615_v25 = vcombine.high %v1558_v59, %v1590_v39  ;;  %v1685_v12 = vrot.slane %v1671_v50, %v7068_v5 }
 0x2da   : > { %5283 = vrot.lane.b32.xlu0 %v1478_v44, %s10569_s24  ;;  %s10573_s24 = smov 68   ;;  %v1598_v11 = vcombine.low %v1533_v62, %v1549_v42  ;;  %v1597_v44 = vrot.slane %v1583_v57, %v8473_v48  ;;  %v8773_v17 = vpop.trf.xlu1  ;;  %v1599_v22 = vcombine.high %v1533_v62, %v1549_v42  ;;  %v1581_v62 = vrot.slane %v11094_v55, %v8473_v48 }
 0x2db   : > { %5271 = vrot.lane.b32.xlu1 %v1347_v49, %s10571_s22  ;;  %s10575_s22 = smov 62   ;;  %v11089_v49 = vld [vmem:[#allocation179_spill] sm:$0xff] }
 0x2dc   : > { %v1654_v20 = vcombine.low %v11090_v0, %v11089_v49  ;;  %v1606_v21 = vrot.slane %v1598_v11, %v8473_v48  ;;  %v1655_v10 = vcombine.high %v11090_v0, %v11089_v49  ;;  %v1617_v39 = vcombine.high %v1565_v53, %v1597_v44 }
 0x2de   : > { %5291 = vrot.lane.b32.xlu0 %v1480_v14, %s10573_s24  ;;  %s10577_s24 = smov 72   ;;  %v8771_v14 = vpop.trf.xlu0  ;;  %v1662_v3 = vrot.slane %v1654_v20, %v7068_v5  ;;  %v8789_v42 = vpop.trf.xlu1  ;;  %v1669_v49 = vrot.slane %v1655_v10, %v7068_v5 }
 0x2df   : > { %5279 = vrot.lane.b32.xlu1 %v1349_v33, %s10575_s22  ;;  %s10585_s22 = smov 66   ;;  %v1616_v33 = vcombine.low %v1565_v53, %v1597_v44 }
 0x2e0   : > { %v1718_v43 = vcombine.low %v1662_v3, %v1678_v46  ;;  %v1734_v59 = vcombine.low %v1669_v49, %v1685_v12  ;;  %v1735_v53 = vcombine.high %v1669_v49, %v1685_v12 }
 0x2e2   : > { %5299 = vrot.lane.b32.xlu0 %v1482_v31, %s10577_s24  ;;  %s10581_s24 = smov 76   ;;  %v1574_v31 = vrot.slane %v11093_v32, %v8473_v48  ;;  %v1726_v54 = vrot.slane %v1718_v43, %v8473_v48 }
 0x2e3   : > { %5287 = vrot.lane.b32.xlu1 %v1479_v8, %s10585_s22  ;;  %s10589_s22 = smov 84   ;;  %v8787_v8 = vpop.trf.xlu0 }
 0x2e4   : > { %v1618_v57 = vcombine.low %v1574_v31, %v1606_v21  ;;  %v1619_v44 = vcombine.high %v1574_v31, %v1606_v21 }
 0x2e6   : > { %5307 = vrot.lane.b32.xlu0 %v1484_v18, %s10581_s24  ;;  %s10587_s24 = smov 80   ;;  %v1613_v18 = vrot.slane %v1599_v22, %v8473_v48  ;;  %v11098_v22 = vld [vmem:[#allocation158_spill] sm:$0xff] }
 0x2e7   : > { %5295 = vrot.lane.b32.xlu1 %v1481_v23, %s10583_s28  ;;  %s10591_s28 = smov 74   ;;  %v1719_v23 = vcombine.high %v1662_v3, %v1678_v46  ;;  %v8808_v0 = vpop.trf.xlu0  ;;  %v1806_v46 = vcombine.low %v11098_v22, %v8555_v6  ;;  %v11100_v3 = vld [vmem:[#allocation181_spill] sm:$0xff]  ;;  %v1807_v12 = vcombine.high %v11098_v22, %v8555_v6 }
 0x2e8   : > { %v1620_v11 = vcombine.low %v1581_v62, %v1613_v18  ;;  %v1621_v31 = vcombine.high %v1581_v62, %v1613_v18 }
 0x2e9   : > { %v1733_v24 = vrot.slane %v1719_v23, %v8473_v48  ;;  %v1814_v43 = vrot.slane %v1806_v46, %v7068_v5  ;;  %v11102_v23 = vld [vmem:[#allocation93_spill] sm:$0xff]  ;;  %v1821_v62 = vrot.slane %v1807_v12, %v7068_v5 }
 0x2ea   : > { %5315 = vrot.lane.b32.xlu0 %v1614_v7, %s10587_s24  ;;  %s10603_s24 = smov 78   ;;  %v11096_v7 = vld [vmem:[#allocation94_spill] sm:$0xff] }
 0x2eb   : > { %5303 = vrot.lane.b32.xlu1 %v1483_v41, %s10591_s28  ;;  %s10595_s28 = smov 82   ;;  %v11097_v47 = vcombine.low %v11095_v19, %v11096_v7  ;;  %v8810_v41 = vpop.trf.xlu1  ;;  %v11099_v61 = vcombine.high %v11095_v19, %v11096_v7 }
 0x2ed   : > { %v1694_v20 = vrot.slane %v11097_v47, %v8473_v48  ;;  %v1701_v32 = vrot.slane %v11099_v61, %v8473_v48 }
 0x2ee   : > { %5323 = vrot.lane.b32.xlu0 %v1616_v33, %s10589_s22  ;;  %s10593_s22 = smov 88  }
 0x2ef   : > { %5311 = vrot.lane.b32.xlu1 %v1485_v15, %s10603_s24  ;;  %v1750_v33 = vcombine.low %v1694_v20, %v1726_v54  ;;  %v11101_v15 = vld [vmem:[#allocation53_spill] sm:$0xff]  ;;  %v8827_v55 = vpop.trf.xlu1  ;;  %v1752_v10 = vcombine.low %v1701_v32, %v1733_v24  ;;  %s10607_s24 = smov 94   ;;  %v1751_v6 = vcombine.high %v1694_v20, %v1726_v54 }
 0x2f0   : > { %v1790_v50 = vcombine.low %v11101_v15, %v11100_v3 }
 0x2f2   : > { %5331 = vrot.lane.b32.xlu0 %v1618_v57, %s10593_s22  ;;  %s10597_s22 = smov 92   ;;  %v8825_v57 = vpop.trf.xlu0  ;;  %v1798_v21 = vrot.slane %v1790_v50, %v7068_v5 }
 0x2f3   : > { %5319 = vrot.lane.b32.xlu1 %v1615_v25, %s10595_s28  ;;  %s10599_s28 = smov 86   ;;  %v1742_v25 = vrot.slane %v1734_v59, %v8473_v48  ;;  %v8849_v18 = vpop.trf.xlu1 }
 0x2f4   : > { %v1854_v47 = vcombine.low %v1798_v21, %v1814_v43  ;;  %v1855_v22 = vcombine.high %v1798_v21, %v1814_v43  ;;  %v1753_v43 = vcombine.high %v1701_v32, %v1733_v24 }
 0x2f6   : > { %5339 = vrot.lane.b32.xlu0 %v1620_v11, %s10597_s22  ;;  %s10601_s22 = smov 96   ;;  %v11103_v11 = vld [vmem:[#allocation95_spill] sm:$0xff]  ;;  %v8847_v61 = vpop.trf.xlu0  ;;  %v1869_v21 = vrot.slane %v1855_v22, %v8473_v48  ;;  %v11111_v22 = vld [vmem:[#allocation102_spill] sm:$0xff] }
 0x2f7   : > { %5327 = vrot.lane.b32.xlu1 %v1617_v39, %s10599_s28  ;;  %s10609_s28 = smov 90   ;;  %v11104_v19 = vcombine.low %v11102_v23, %v11103_v11  ;;  %v1749_v39 = vrot.slane %v1735_v53, %v8473_v48  ;;  %v11105_v59 = vcombine.high %v11102_v23, %v11103_v11  ;;  %v11106_v53 = vld [vmem:[#allocation100_spill] sm:$0xff] }
 0x2f9   : > { %v1710_v7 = vrot.slane %v11104_v19, %v8473_v48  ;;  %v1717_v46 = vrot.slane %v11105_v59, %v8473_v48 }
 0x2fa   : > { %5347 = vrot.lane.b32.xlu0 %v1750_v33, %s10601_s22  ;;  %s10605_s22 = smov 100   ;;  %v1791_v33 = vcombine.high %v11101_v15, %v11100_v3  ;;  %v11107_v3 = vld [vmem:[#allocation20_spill] sm:$0xff] }
 0x2fb   : > { %5335 = vrot.lane.b32.xlu1 %v1619_v44, %s10609_s28  ;;  %v1754_v49 = vcombine.low %v1710_v7, %v1742_v25  ;;  %v1756_v50 = vcombine.low %v1717_v46, %v1749_v39  ;;  %v1862_v44 = vrot.slane %v1854_v47, %v8473_v48  ;;  %v11108_v15 = vcombine.low %v11106_v53, %v11107_v3  ;;  %s10615_s28 = smov 108  }
 0x2fc   : > { %v1805_v23 = vrot.slane %v1791_v33, %v7068_v5  ;;  %v1755_v47 = vcombine.high %v1710_v7, %v1742_v25  ;;  %v1943_v25 = vcombine.high %v8386_v58, %v8571_v63 }
 0x2fe   : > { %5355 = vrot.lane.b32.xlu0 %v1752_v10, %s10605_s22  ;;  %s10611_s22 = smov 104   ;;  %v1830_v10 = vrot.slane %v11108_v15, %v8473_v48  ;;  %v1870_v11 = vcombine.low %v1805_v23, %v1821_v62 }
 0x2ff   : > { %5343 = vrot.lane.b32.xlu1 %v1621_v31, %s10607_s24  ;;  %s10613_s24 = smov 98   ;;  %v11109_v31 = vcombine.high %v11106_v53, %v11107_v3  ;;  %v1757_v3 = vcombine.high %v1717_v46, %v1749_v39  ;;  %v1957_v46 = vrot.slane %v1943_v25, %v7068_v5 }
 0x300   : > { %v1886_v19 = vcombine.low %v1830_v10, %v1862_v44  ;;  %v1878_v24 = vrot.slane %v1870_v11, %v8473_v48  ;;  %v1887_v63 = vcombine.high %v1830_v10, %v1862_v44  ;;  %v1991_v11 = vcombine.high %v8586_v27, %v8592_v36 }
 0x301   : > { %v1837_v12 = vrot.slane %v11109_v31, %v8473_v48  ;;  %v2023_v27 = vcombine.high %v8610_v34, %v8614_v13 }
 0x302   : > { %5363 = vrot.lane.b32.xlu0 %v1754_v49, %s10611_s22  ;;  %s10617_s22 = smov 102   ;;  %v1871_v49 = vcombine.high %v1805_v23, %v1821_v62  ;;  %v2005_v36 = vrot.slane %v1991_v11, %v8473_v48 }
 0x303   : > { %5351 = vrot.lane.b32.xlu1 %v1751_v6, %s10613_s24  ;;  %s10619_s24 = smov 112   ;;  %v1888_v59 = vcombine.low %v1837_v12, %v1869_v21  ;;  %v11110_v6 = vld [vmem:[#allocation101_spill] sm:$0xff]  ;;  %v1889_v44 = vcombine.high %v1837_v12, %v1869_v21  ;;  %v11118_v21 = vld [vmem:[#allocation195_spill] sm:$0xff]  ;;  %v11119_v12 = vld [vmem:[#allocation196_spill] sm:$0xff] }
 0x304   : > { %v1885_v62 = vrot.slane %v1871_v49, %v8473_v48  ;;  %v11113_v15 = vcombine.high %v11110_v6, %v11111_v22  ;;  %v11120_v25 = vcombine.low %v11118_v21, %v11119_v12 }
 0x306   : > { %5371 = vrot.lane.b32.xlu0 %v1756_v50, %s10615_s28  ;;  %s10621_s28 = smov 106   ;;  %v11112_v50 = vcombine.low %v11110_v6, %v11111_v22  ;;  %v1853_v23 = vrot.slane %v11113_v15, %v8473_v48  ;;  %v11116_v6 = vld [vmem:[#allocation136_spill] sm:$0xff] }
 0x307   : > { %5359 = vrot.lane.b32.xlu1 %v1753_v43, %s10617_s22  ;;  %s10623_s22 = smov 116   ;;  %v1927_v43 = vcombine.high %v8319_v9, %v8442_v26  ;;  %v11114_v26 = vld [vmem:[#allocation161_spill] sm:$0xff] }
 0x308   : > { %v1846_v53 = vrot.slane %v11112_v50, %v8473_v48  ;;  %v11117_v50 = vcombine.high %v7812_v35, %v7832_v45 }
 0x309   : > { %v1941_v31 = vrot.slane %v1927_v43, %v7068_v5 }
 0x30a   : > { %5379 = vrot.lane.b32.xlu0 %v1886_v19, %s10619_s24  ;;  %v1890_v7 = vcombine.low %v1846_v53, %v1878_v24  ;;  %s10625_s24 = smov 110   ;;  %v1892_v19 = vcombine.low %v1853_v23, %v1885_v62  ;;  %v1891_v43 = vcombine.high %v1846_v53, %v1878_v24  ;;  %v11122_v24 = vld [vmem:[#allocation22_spill] sm:$0xff] }
 0x30b   : > { %5367 = vrot.lane.b32.xlu1 %v1755_v47, %s10621_s28  ;;  %s10627_s28 = smov 120   ;;  %v2078_v47 = vcombine.low %v11114_v26, %v8732_v52  ;;  %v2006_v49 = vcombine.low %v1941_v31, %v1957_v46 }
 0x30d   : > { %v2086_v15 = vrot.slane %v2078_v47, %v7068_v5  ;;  %v2014_v45 = vrot.slane %v2006_v49, %v8473_v48  ;;  %v11121_v47 = vld [vmem:[#allocation21_spill] sm:$0xff] }
 0x30e   : > { %5387 = vrot.lane.b32.xlu0 %v1888_v59, %s10623_s22  ;;  %s10688_s22 = smov 114   ;;  %v11115_v59 = vld [vmem:[#allocation183_spill] sm:$0xff]  ;;  %v11123_v53 = vcombine.low %v11121_v47, %v11122_v24 }
 0x30f   : > { %5375 = vrot.lane.b32.xlu1 %v1757_v3, %s10625_s24  ;;  %s10629_s24 = smov 124   ;;  %v2062_v22 = vcombine.low %v11116_v6, %v11115_v59  ;;  %v1973_v3 = vrot.slane %v11117_v50, %v8473_v48 }
 0x310   : > { %v5160_v54 = vpop.permute.xlu0 %5159  ;;  %v8861_v20 = vpop.permute.xlu1 %5163 }
 0x311   : > { %v2070_v35 = vrot.slane %v2062_v22, %v7068_v5 }
 0x312   : > { %5395 = vrot.lane.b32.xlu0 %v1890_v7, %s10627_s28  ;;  %s10685_s28 = smov 118   ;;  %v6167_v7 = vsel %vm6166_vm0, %v11120_v25, %v5160_v54 }
 0x313   : > { %5383 = vrot.lane.b32.xlu1 %v1887_v63, %s10688_s22  ;;  %v6169_v54 = vsel %vm6168_vm1, %v6167_v7, %v8861_v20  ;;  %v2126_v49 = vcombine.low %v2070_v35, %v2086_v15  ;;  %v1893_v20 = vcombine.high %v1853_v23, %v1885_v62  ;;  %v2063_v7 = vcombine.high %v11116_v6, %v11115_v59  ;;  %s11185_s22 = smov 70  }
 0x314   : > { %v8871_v32 = vpop.permute.xlu0 %5179  ;;  %v5168_v33 = vpop.permute.xlu1 %5167 }
 0x316   : > { %5403 = vrot.lane.b32.xlu0 %v1892_v19, %s10629_s24  ;;  %v2007_v19 = vcombine.high %v1941_v31, %v1957_v46  ;;  %s10682_s24 = smov 122   ;;  %v6171_v46 = vsel %vm6170_vm2, %v6169_v54, %v5168_v33  ;;  %v2079_v31 = vcombine.high %v11114_v26, %v8732_v52  ;;  %v11124_v52 = vcombine.high %v11121_v47, %v11122_v24  ;;  %v11125_v54 = vld [vmem:[#allocation23_spill] sm:$0xff]  ;;  %v11126_v47 = vld [vmem:[#allocation57_spill] sm:$0xff] }
 0x317   : > { %5391 = vrot.lane.b32.xlu1 %v1889_v44, %s10685_s28  ;;  %v2025_v44 = vcombine.high %v1973_v3, %v2005_v36  ;;  %v2024_v26 = vcombine.low %v1973_v3, %v2005_v36  ;;  %v11128_v3 = vld [vmem:[#allocation163_spill] sm:$0xff]  ;;  %s11181_s28 = smov 60  }
 0x318   : > { %v8890_v39 = vpop.permute.xlu0 %5187  ;;  %v5172_v58 = vpop.permute.xlu1 %5171  ;;  %v2021_v25 = vrot.slane %v2007_v19, %v8473_v48  ;;  %v1989_v62 = vrot.slane %v11124_v52, %v8473_v48  ;;  %v2093_v23 = vrot.slane %v2079_v31, %v7068_v5 }
 0x319   : > { %v6173_v22 = vsel %vm6172_vm3, %v6171_v46, %v5172_v58  ;;  %v2127_v58 = vcombine.high %v2070_v35, %v2086_v15  ;;  %v11127_v15 = vcombine.low %v11125_v54, %v11126_v47 }
 0x31a   : > { %5411 = vrot.lane.b32.xlu0 %v2023_v27, %s10631_s18  ;;  %v1982_v27 = vrot.slane %v11123_v53, %v8473_v48  ;;  %s10679_s18 = smov 126   ;;  %v2029_v6 = vcombine.high %v1989_v62, %v2021_v25  ;;  %v2028_v52 = vcombine.low %v1989_v62, %v2021_v25  ;;  %v2215_v25 = vcombine.high %v11128_v3, %v8749_v38 }
 0x31b   : > { %5399 = vrot.lane.b32.xlu1 %v1891_v43, %s10682_s24  ;;  %v2134_v43 = vrot.slane %v2126_v49, %v8473_v48  ;;  %v2102_v35 = vrot.slane %v11127_v15, %v8473_v48  ;;  %v2141_v49 = vrot.slane %v2127_v58, %v8473_v48  ;;  %s11180_s24 = smov 66  }
 0x31c   : > { %v5176_v9 = vpop.permute.xlu1 %5175  ;;  %v8900_v10 = vpop.permute.xlu0 %5195  ;;  %v2027_v12 = vcombine.high %v1982_v27, %v2014_v45  ;;  %v2026_v53 = vcombine.low %v1982_v27, %v2014_v45 }
 0x31d   : > { %v6175_v21 = vsel %vm6174_vm4, %v6173_v22, %v5176_v9  ;;  %v2159_v31 = vcombine.high %v2102_v35, %v2134_v43  ;;  %v11129_v22 = vld [vmem:[#allocation185_spill] sm:$0xff]  ;;  %v2158_v15 = vcombine.low %v2102_v35, %v2134_v43 }
 0x31e   : > { %5419 = vrot.lane.b32.xlu0 %v2025_v44, %s10667_s30  ;;  %v6177_v9 = vsel %vm6176_vm5, %v6175_v21, %v8871_v32  ;;  %v2077_v44 = vrot.slane %v2063_v7, %v7068_v5  ;;  %s11167_s30 = smov 48  }
 0x31f   : > { %5407 = vrot.lane.b32.xlu1 %v1893_v20, %s10679_s18  ;;  %v11130_v20 = vld [vmem:[#allocation138_spill] sm:$0xff]  ;;  %s11178_s18 = smov 56  }
 0x320   : > { %v8918_v63 = vpop.permute.xlu0 %5203  ;;  %v5184_v11 = vpop.permute.xlu1 %5183  ;;  %v2142_v36 = vcombine.low %v2077_v44, %v2093_v23  ;;  %v2198_v21 = vcombine.low %v11130_v20, %v11129_v22  ;;  %v2143_v45 = vcombine.high %v2077_v44, %v2093_v23  ;;  %v11132_v23 = vld [vmem:[#allocation105_spill] sm:$0xff]  ;;  %v11133_v44 = vld [vmem:[#allocation24_spill] sm:$0xff] }
 0x321   : > { %v6179_v59 = vsel %vm6178_vm6, %v6177_v9, %v5184_v11  ;;  %v2214_v11 = vcombine.low %v11128_v3, %v8749_v38  ;;  %v11135_v38 = vcombine.high %v11132_v23, %v11133_v44 }
 0x322   : > { %5427 = vrot.lane.b32.xlu0 %v2027_v12, %s10661_s12  ;;  %v6181_v24 = vsel %vm6180_vm7, %v6179_v59, %v8890_v39  ;;  %v11131_v12 = vcombine.high %v11125_v54, %v11126_v47  ;;  %v2150_v59 = vrot.slane %v2142_v36, %v8473_v48  ;;  %v11134_v54 = vcombine.low %v11132_v23, %v11133_v44  ;;  %s11162_s12 = smov 44  }
 0x323   : > { %5415 = vrot.lane.b32.xlu1 %v2024_v26, %s10676_s27  ;;  %v2222_v27 = vrot.slane %v2214_v11, %v7068_v5  ;;  %v2125_v3 = vrot.slane %v11135_v38, %v8473_v48  ;;  %s11174_s27 = smov 62  }
 0x324   : > { %v5192_v50 = vpop.permute.xlu1 %5191  ;;  %v8939_v33 = vpop.permute.xlu0 %5211  ;;  %v2109_v7 = vrot.slane %v11131_v12, %v8473_v48  ;;  %v2118_v47 = vrot.slane %v11134_v54, %v8473_v48 }
 0x325   : > { %v6183_v46 = vsel %vm6182_vm8, %v6181_v24, %v5192_v50 }
 0x326   : > { %5435 = vrot.lane.b32.xlu0 %v2029_v6, %s10655_s16  ;;  %v6185_v50 = vsel %vm10740_vm9, %v6183_v46, %v8900_v10  ;;  %v2161_v9 = vcombine.high %v2109_v7, %v2141_v49  ;;  %v2206_v6 = vrot.slane %v2198_v21, %v7068_v5  ;;  %v2163_v11 = vcombine.high %v2118_v47, %v2150_v59  ;;  %s11159_s16 = smov 40  }
 0x327   : > { %5423 = vrot.lane.b32.xlu1 %v2026_v53, %s10673_s5  ;;  %v2157_v53 = vrot.slane %v2143_v45, %v8473_v48  ;;  %v2199_v46 = vcombine.high %v11130_v20, %v11129_v22  ;;  %s11170_s5 = smov 52  }
 0x328   : > { %v5200_v19 = vpop.permute.xlu1 %5199  ;;  %v2262_v62 = vcombine.low %v2206_v6, %v2222_v27  ;;  %v2263_v43 = vcombine.high %v2206_v6, %v2222_v27  ;;  %v11137_v27 = vld [vmem:[#allocation26_spill] sm:$0xff]  ;;  %v2162_v6 = vcombine.low %v2118_v47, %v2150_v59 }
 0x329   : > { %v6187_v58 = vsel %vm10728_vm10, %v6185_v50, %v5200_v19  ;;  %v2165_v22 = vcombine.high %v2125_v3, %v2157_v53  ;;  %v11136_v50 = vld [vmem:[#allocation25_spill] sm:$0xff] }
 0x32a   : > { %v5220_v32 = vpop.permute.xlu0 %5219  ;;  %5443 = vrot.lane.b32.xlu0 %v2159_v31, %s10649_s17  ;;  %v6189_v19 = vsel %vm10729_vm11, %v6187_v58, %v8918_v63  ;;  %v2229_v63 = vrot.slane %v2215_v25, %v7068_v5  ;;  %v2160_v31 = vcombine.low %v2109_v7, %v2141_v49  ;;  %v2270_v12 = vrot.slane %v2262_v62, %v8473_v48  ;;  %v11139_v49 = vld [vmem:[#allocation165_spill] sm:$0xff]  ;;  %v11141_v25 = vld [vmem:[#allocation140_spill] sm:$0xff]  ;;  %s11151_s17 = smov 36  }
 0x32b   : > { %5431 = vrot.lane.b32.xlu1 %v2028_v52, %s10670_s29  ;;  %v11138_v52 = vcombine.low %v11136_v50, %v11137_v27  ;;  %v2350_v7 = vcombine.low %v11139_v49, %v8771_v14  ;;  %v2277_v54 = vrot.slane %v2263_v43, %v8473_v48  ;;  %s11169_s29 = smov 58  }
 0x32c   : > { %v5208_v39 = vpop.permute.xlu1 %5207 }
 0x32d   : > { %v6191_v36 = vsel %vm10633_vm12, %v6189_v19, %v5208_v39  ;;  %v2213_v39 = vrot.slane %v2199_v46, %v7068_v5  ;;  %vm10636_vm12 = vcmask 277504   ;;  %v2238_v58 = vrot.slane %v11138_v52, %v8473_v48 }
 0x32e   : > { %5451 = vrot.lane.b32.xlu0 %v2161_v9, %s10646_s23  ;;  %v6193_v35 = vsel %vm10635_vm13, %v6191_v36, %v8939_v33  ;;  %vm10642_vm13 = vcmask 310272   ;;  %v11142_v19 = vcombine.high %v11136_v50, %v11137_v27  ;;  %v2358_v36 = vrot.slane %v2350_v7, %v7068_v5  ;;  %s11150_s23 = smov 42  }
 0x32f   : > { %5439 = vrot.lane.b32.xlu1 %v2158_v15, %s10664_s2  ;;  %v2278_v33 = vcombine.low %v2213_v39, %v2229_v63  ;;  %v2295_v44 = vcombine.high %v2238_v58, %v2270_v12  ;;  %v2279_v47 = vcombine.high %v2213_v39, %v2229_v63  ;;  %v2164_v46 = vcombine.low %v2125_v3, %v2157_v53  ;;  %s11166_s2 = smov 54  }
 0x330   : > { %v5228_v26 = vpop.permute.xlu0 %5227  ;;  %v5216_v10 = vpop.permute.xlu1 %5215  ;;  %v2245_v15 = vrot.slane %v11142_v19, %v8473_v48  ;;  %v2351_v53 = vcombine.high %v11139_v49, %v8771_v14  ;;  %v2294_v50 = vcombine.low %v2238_v58, %v2270_v12 }
 0x331   : > { %v6195_v21 = vsel %vm10634_vm14, %v6193_v35, %v5216_v10  ;;  %vm10645_vm14 = vcmask 293888   ;;  %v11140_v10 = vld [vmem:[#allocation186_spill] sm:$0xff]  ;;  %v2286_v35 = vrot.slane %v2278_v33, %v8473_v48  ;;  %v2293_v7 = vrot.slane %v2279_v47, %v8473_v48  ;;  %v11153_v47 = vld [vmem:[#allocation28_spill] sm:$0xff] }
 0x332   : > { %5459 = vrot.lane.b32.xlu0 %v2163_v11, %s10643_s25  ;;  %v6197_v9 = vsel %vm10639_vm15, %v6195_v21, %v5220_v32  ;;  %v2334_v62 = vcombine.low %v11141_v25, %v11140_v10  ;;  %v2297_v43 = vcombine.high %v2245_v15, %v2277_v54  ;;  %vm10648_vm15 = vcmask 343040   ;;  %v11144_v21 = vld [vmem:[#allocation107_spill] sm:$0xff]  ;;  %s11148_s25 = smov 32  }
 0x333   : > { %5447 = vrot.lane.b32.xlu1 %v2160_v31, %s10658_s13  ;;  %v2365_v12 = vrot.slane %v2351_v53, %v7068_v5  ;;  %v11158_v53 = vld [vmem:[#allocation142_spill] sm:$0xff]  ;;  %s11161_s13 = smov 50  }
 0x334   : > { %v5236_v24 = vpop.permute.xlu0 %5235  ;;  %v5224_v20 = vpop.permute.xlu1 %5223  ;;  %v2342_v31 = vrot.slane %v2334_v62, %v7068_v5 }
 0x335   : > { %v6199_v23 = vsel %vm10636_vm12, %v6197_v9, %v5224_v20  ;;  %vm10651_vm12 = vcmask 326656   ;;  %v2335_v9 = vcombine.high %v11141_v25, %v11140_v10 }
 0x336   : > { %5467 = vrot.lane.b32.xlu0 %v2165_v22, %s10637_s4  ;;  %v6201_v11 = vsel %vm10645_vm14, %v6199_v23, %v5228_v26  ;;  %s11143_s4 = smov 28   ;;  %v11145_v22 = vld [vmem:[#allocation108_spill] sm:$0xff]  ;;  %v2398_v3 = vcombine.low %v2342_v31, %v2358_v36  ;;  %vm10654_vm14 = vcmask 375808   ;;  %v2399_v58 = vcombine.high %v2342_v31, %v2358_v36 }
 0x337   : > { %5455 = vrot.lane.b32.xlu1 %v2162_v6, %s10652_s15  ;;  %v11146_v63 = vcombine.low %v11144_v21, %v11145_v22  ;;  %v11149_v14 = vcombine.high %v11144_v21, %v11145_v22  ;;  %v2296_v23 = vcombine.low %v2245_v15, %v2277_v54  ;;  %v2349_v19 = vrot.slane %v2335_v9, %v7068_v5  ;;  %s11155_s15 = smov 46   ;;  %v11156_v54 = vld [vmem:[#allocation167_spill] sm:$0xff] }
 0x338   : > { %v5244_v45 = vpop.permute.xlu0 %5243  ;;  %v5232_v59 = vpop.permute.xlu1 %5231  ;;  %v2406_v62 = vrot.slane %v2398_v3, %v8473_v48  ;;  %v2486_v15 = vcombine.low %v11156_v54, %v8787_v8 }
 0x339   : > { %v6203_v38 = vsel %vm10642_vm13, %v6201_v11, %v5232_v59  ;;  %v2254_v20 = vrot.slane %v11146_v63, %v8473_v48  ;;  %vm10657_vm13 = vcmask 359424   ;;  %v2261_v49 = vrot.slane %v11149_v14, %v8473_v48  ;;  %v11152_v59 = vld [vmem:[#allocation110_spill] sm:$0xff] }
 0x33a   : > { %5475 = vrot.lane.b32.xlu0 %v2295_v44, %s10640_s3  ;;  %s11147_s3 = smov 38   ;;  %v6205_v39 = vsel %vm10651_vm12, %v6203_v38, %v5236_v24  ;;  %vm10660_vm12 = vcmask 408576   ;;  %v11154_v11 = vcombine.low %v11152_v59, %v11153_v47  ;;  %v2413_v63 = vrot.slane %v2399_v58, %v8473_v48 }
 0x33b   : > { %5463 = vrot.lane.b32.xlu1 %v2164_v46, %s11143_s4  ;;  %v2299_v33 = vcombine.high %v2254_v20, %v2286_v35  ;;  %v2301_v25 = vcombine.high %v2261_v49, %v2293_v7 }
 0x33c   : > { %v5252_v32 = vpop.permute.xlu0 %5251  ;;  %v2374_v36 = vrot.slane %v11154_v11, %v8473_v48 }
 0x33d   : > { %v5240_v26 = vpop.permute.xlu1 %5239 }
 0x33e   : > { %5483 = vrot.lane.b32.xlu0 %v2297_v43, %s11147_s3  ;;  %v6207_v52 = vsel %vm10648_vm15, %v6205_v39, %v5240_v26  ;;  %vm10663_vm15 = vcmask 392192   ;;  %v2298_v43 = vcombine.low %v2254_v20, %v2286_v35  ;;  %v2431_v22 = vcombine.high %v2374_v36, %v2406_v62  ;;  %v11157_v26 = vld [vmem:[#allocation188_spill] sm:$0xff] }
 0x33f   : > { %5471 = vrot.lane.b32.xlu1 %v2294_v50, %s11148_s25  ;;  %v6209_v6 = vsel %vm10657_vm13, %v6207_v52, %v5244_v45  ;;  %v2414_v45 = vcombine.low %v2349_v19, %v2365_v12  ;;  %v2470_v3 = vcombine.low %v11158_v53, %v11157_v26  ;;  %vm10666_vm13 = vcmask 441344  }
 0x340   : > { %v5260_v27 = vpop.permute.xlu0 %5259  ;;  %v11160_v39 = vcombine.high %v11152_v59, %v11153_v47  ;;  %v2415_v35 = vcombine.high %v2349_v19, %v2365_v12  ;;  %v2494_v20 = vrot.slane %v2486_v15, %v7068_v5  ;;  %v11163_v12 = vld [vmem:[#allocation111_spill] sm:$0xff]  ;;  %v2430_v59 = vcombine.low %v2374_v36, %v2406_v62 }
 0x341   : > { %v5248_v24 = vpop.permute.xlu1 %5247  ;;  %v2422_v58 = vrot.slane %v2414_v45, %v8473_v48 }
 0x342   : > { %5491 = vrot.lane.b32.xlu0 %v2299_v33, %s11150_s23  ;;  %v6211_v10 = vsel %vm10654_vm14, %v6209_v6, %v5248_v24  ;;  %vm10669_vm14 = vcmask 424960   ;;  %v2300_v33 = vcombine.low %v2261_v49, %v2293_v7  ;;  %v2478_v6 = vrot.slane %v2470_v3, %v7068_v5 }
 0x343   : > { %5479 = vrot.lane.b32.xlu1 %v2296_v23, %s11151_s17  ;;  %v6213_v46 = vsel %vm10663_vm15, %v6211_v10, %v5252_v32  ;;  %v2381_v32 = vrot.slane %v11160_v39, %v8473_v48  ;;  %vm10672_vm15 = vcmask 474112   ;;  %v11164_v23 = vld [vmem:[#allocation112_spill] sm:$0xff]  ;;  %v2429_v15 = vrot.slane %v2415_v35, %v8473_v48  ;;  %v11171_v39 = vld [vmem:[#allocation29_spill] sm:$0xff] }
 0x344   : > { %v5268_v44 = vpop.permute.xlu0 %5267  ;;  %v11165_v10 = vcombine.low %v11163_v12, %v11164_v23  ;;  %v2534_v7 = vcombine.low %v2478_v6, %v2494_v20  ;;  %v2535_v36 = vcombine.high %v2478_v6, %v2494_v20  ;;  %v11172_v35 = vld [vmem:[#allocation116_spill] sm:$0xff] }
 0x345   : > { %v5256_v38 = vpop.permute.xlu1 %5255  ;;  %v2433_v24 = vcombine.high %v2381_v32, %v2413_v63  ;;  %v11173_v20 = vcombine.low %v11171_v39, %v11172_v35 }
 0x346   : > { %5499 = vrot.lane.b32.xlu0 %v2301_v25, %s11155_s15  ;;  %v6215_v21 = vsel %vm10660_vm12, %v6213_v46, %v5256_v38  ;;  %vm10675_vm12 = vcmask 457728   ;;  %v2390_v25 = vrot.slane %v11165_v10, %v8473_v48  ;;  %v2471_v46 = vcombine.high %v11158_v53, %v11157_v26  ;;  %v11176_v10 = vld [vmem:[#allocation190_spill] sm:$0xff] }
 0x347   : > { %5487 = vrot.lane.b32.xlu1 %v2298_v43, %s11159_s16  ;;  %v6217_v50 = vsel %vm10669_vm14, %v6215_v21, %v5260_v27  ;;  %v2487_v27 = vcombine.high %v11156_v54, %v8787_v8  ;;  %vm10678_vm14 = vcmask 506880   ;;  %v11168_v8 = vcombine.high %v11163_v12, %v11164_v23 }
 0x348   : > { %v5276_v31 = vpop.permute.xlu0 %5275  ;;  %v2435_v45 = vcombine.high %v2390_v25, %v2422_v58  ;;  %v2432_v43 = vcombine.low %v2381_v32, %v2413_v63  ;;  %v2542_v53 = vrot.slane %v2534_v7, %v8473_v48  ;;  %v2485_v3 = vrot.slane %v2471_v46, %v7068_v5  ;;  %v11175_v63 = vld [vmem:[#allocation169_spill] sm:$0xff] }
 0x349   : > { %v5264_v52 = vpop.permute.xlu1 %5263  ;;  %v2501_v62 = vrot.slane %v2487_v27, %v7068_v5  ;;  %v2622_v32 = vcombine.low %v11175_v63, %v8808_v0  ;;  %v2549_v23 = vrot.slane %v2535_v36, %v8473_v48  ;;  %v11177_v27 = vld [vmem:[#allocation144_spill] sm:$0xff] }
 0x34a   : > { %5507 = vrot.lane.b32.xlu0 %v2431_v22, %s11161_s13  ;;  %v6219_v14 = vsel %vm10666_vm13, %v6217_v50, %v5264_v52  ;;  %vm10681_vm13 = vcmask 490496   ;;  %v2510_v50 = vrot.slane %v11173_v20, %v8473_v48  ;;  %v2606_v7 = vcombine.low %v11177_v27, %v11176_v10 }
 0x34b   : > { %5495 = vrot.lane.b32.xlu1 %v2300_v33, %s11162_s12  ;;  %v6221_v49 = vsel %vm10675_vm12, %v6219_v14, %v5268_v44  ;;  %v2397_v44 = vrot.slane %v11168_v8, %v8473_v48  ;;  %vm10684_vm12 = vcmask 539648   ;;  %v2434_v14 = vcombine.low %v2390_v25, %v2422_v58 }
 0x34c   : > { %v5284_v9 = vpop.permute.xlu0 %5283  ;;  %v2567_v12 = vcombine.high %v2510_v50, %v2542_v53  ;;  %v2551_v58 = vcombine.high %v2485_v3, %v2501_v62  ;;  %v2630_v25 = vrot.slane %v2622_v32, %v7068_v5  ;;  %v2607_v32 = vcombine.high %v11177_v27, %v11176_v10 }
 0x34d   : > { %v5272_v19 = vpop.permute.xlu1 %5271  ;;  %v2437_v26 = vcombine.high %v2397_v44, %v2429_v15 }
 0x34e   : > { %5515 = vrot.lane.b32.xlu0 %v2433_v24, %s11166_s2  ;;  %v6223_v11 = vsel %vm10672_vm15, %v6221_v49, %v5272_v19  ;;  %vm10687_vm15 = vcmask 523264   ;;  %v11179_v49 = vcombine.high %v11171_v39, %v11172_v35  ;;  %v2621_v27 = vrot.slane %v2607_v32, %v7068_v5 }
 0x34f   : > { %5503 = vrot.lane.b32.xlu1 %v2430_v59, %s11167_s30  ;;  %v6225_v54 = vsel %vm10681_vm13, %v6223_v11, %v5276_v31  ;;  %v2550_v31 = vcombine.low %v2485_v3, %v2501_v62  ;;  %vm10690_vm13 = vcmask 572416   ;;  %v2436_v11 = vcombine.low %v2397_v44, %v2429_v15  ;;  %v11182_v62 = vld [vmem:[#allocation115_spill] sm:$0xff] }
 0x350   : > { %v5292_v47 = vpop.permute.xlu0 %5291  ;;  %v2566_v3 = vcombine.low %v2510_v50, %v2542_v53 }
 0x351   : > { %v5280_v38 = vpop.permute.xlu1 %5279  ;;  %v2558_v36 = vrot.slane %v2550_v31, %v8473_v48  ;;  %v2565_v31 = vrot.slane %v2551_v58, %v8473_v48 }
 0x352   : > { %5523 = vrot.lane.b32.xlu0 %v2435_v45, %s11169_s29  ;;  %v6227_v22 = vsel %vm10678_vm14, %v6225_v54, %v5280_v38  ;;  %vm10691_vm14 = vcmask 556032   ;;  %v2614_v54 = vrot.slane %v2606_v7, %v7068_v5  ;;  %v11183_v38 = vld [vmem:[#allocation117_spill] sm:$0xff]  ;;  %v11190_v7 = vld [vmem:[#allocation119_spill] sm:$0xff] }
 0x353   : > { %5511 = vrot.lane.b32.xlu1 %v2432_v43, %s11170_s5  ;;  %v6229_v52 = vsel %vm10687_vm15, %v6227_v22, %v5284_v9  ;;  %v2517_v9 = vrot.slane %v11179_v49, %v8473_v48  ;;  %vm10693_vm15 = vcmask 605184   ;;  %v11184_v43 = vcombine.low %v11182_v62, %v11183_v38  ;;  %v11191_v49 = vld [vmem:[#allocation32_spill] sm:$0xff] }
 0x354   : > { %v5300_v21 = vpop.permute.xlu0 %5299  ;;  %v2670_v15 = vcombine.low %v2614_v54, %v2630_v25  ;;  %v2671_v50 = vcombine.high %v2614_v54, %v2630_v25  ;;  %v11192_v58 = vcombine.low %v11190_v7, %v11191_v49 }
 0x355   : > { %v5288_v33 = vpop.permute.xlu1 %5287  ;;  %v2569_v8 = vcombine.high %v2517_v9, %v2549_v23  ;;  %v2526_v22 = vrot.slane %v11184_v43, %v8473_v48  ;;  %v11196_v43 = vld [vmem:[#allocation146_spill] sm:$0xff] }
 0x356   : > { %5531 = vrot.lane.b32.xlu0 %v2437_v26, %s11174_s27  ;;  %v6231_v6 = vsel %vm10684_vm12, %v6229_v52, %v5288_v33  ;;  %vm10695_vm12 = vcmask 588800   ;;  %v2568_v33 = vcombine.low %v2517_v9, %v2549_v23  ;;  %v2678_v10 = vrot.slane %v2670_v15, %v8473_v48  ;;  %v11194_v23 = vld [vmem:[#allocation171_spill] sm:$0xff] }
 0x357   : > { %5519 = vrot.lane.b32.xlu1 %v2434_v14, %s11178_s18  ;;  %v6233_v19 = vsel %vm10691_vm14, %v6231_v6, %v5292_v47  ;;  %v2623_v47 = vcombine.high %v11175_v63, %v8808_v0  ;;  %v2571_v20 = vcombine.high %v2526_v22, %v2558_v36  ;;  %vm10696_vm14 = vcmask 637952  }
 0x358   : > { %v5308_v24 = vpop.permute.xlu0 %5307  ;;  %v11187_v0 = vcombine.high %v11182_v62, %v11183_v38  ;;  %v2646_v25 = vrot.slane %v11192_v58, %v8473_v48  ;;  %v2758_v9 = vcombine.low %v11194_v23, %v8825_v57  ;;  %v2685_v62 = vrot.slane %v2671_v50, %v8473_v48  ;;  %v11195_v38 = vld [vmem:[#allocation191_spill] sm:$0xff] }
 0x359   : > { %v5296_v59 = vpop.permute.xlu1 %5295  ;;  %v2637_v53 = vrot.slane %v2623_v47, %v7068_v5  ;;  %v2742_v47 = vcombine.low %v11196_v43, %v11195_v38  ;;  %v11198_v15 = vcombine.high %v11190_v7, %v11191_v49 }
 0x35a   : > { %5539 = vrot.lane.b32.xlu0 %v2567_v12, %s11180_s24  ;;  %v6235_v46 = vsel %vm10690_vm13, %v6233_v19, %v5296_v59  ;;  %vm10698_vm13 = vcmask 621568   ;;  %v2703_v54 = vcombine.high %v2646_v25, %v2678_v10 }
 0x35b   : > { %5527 = vrot.lane.b32.xlu1 %v2436_v11, %s11181_s28  ;;  %v6237_v44 = vsel %vm10695_vm12, %v6235_v46, %v5300_v21  ;;  %v2533_v21 = vrot.slane %v11187_v0, %v8473_v48  ;;  %vm10700_vm12 = vcmask 670720   ;;  %v2570_v11 = vcombine.low %v2526_v22, %v2558_v36 }
 0x35c   : > { %v5316_v45 = vpop.permute.xlu0 %5315  ;;  %v2687_v36 = vcombine.high %v2621_v27, %v2637_v53  ;;  %v2766_v22 = vrot.slane %v2758_v9, %v7068_v5  ;;  %v2750_v50 = vrot.slane %v2742_v47, %v7068_v5  ;;  %v11211_v47 = vld [vmem:[#allocation34_spill] sm:$0xff] }
 0x35d   : > { %v5304_v26 = vpop.permute.xlu1 %5303  ;;  %v2573_v12 = vcombine.high %v2533_v21, %v2565_v31 }
 0x35e   : > { %5547 = vrot.lane.b32.xlu0 %v2569_v8, %s11185_s22  ;;  %v6239_v35 = vsel %vm10693_vm15, %v6237_v44, %v5304_v26  ;;  %vm10703_vm15 = vcmask 654336   ;;  %v2701_v58 = vrot.slane %v2687_v36, %v8473_v48 }
 0x35f   : > { %5535 = vrot.lane.b32.xlu1 %v2566_v3, %s11186_s0  ;;  %v6241_v63 = vsel %vm10698_vm13, %v6239_v35, %v5308_v24  ;;  %v2686_v24 = vcombine.low %v2621_v27, %v2637_v53  ;;  %vm10705_vm13 = vcmask 703488   ;;  %v2572_v3 = vcombine.low %v2533_v21, %v2565_v31  ;;  %v11201_v53 = vld [vmem:[#allocation120_spill] sm:$0xff] }
 0x360   : > { %v5324_v39 = vpop.permute.xlu0 %5323  ;;  %v2806_v31 = vcombine.low %v2750_v50, %v2766_v22 }
 0x361   : > { %v5312_v52 = vpop.permute.xlu1 %5311  ;;  %v2694_v0 = vrot.slane %v2686_v24, %v8473_v48  ;;  %v2743_v24 = vcombine.high %v11196_v43, %v11195_v38  ;;  %v11210_v43 = vld [vmem:[#allocation33_spill] sm:$0xff] }
 0x362   : > { %5555 = vrot.lane.b32.xlu0 %v2571_v20, %s11188_s14  ;;  %v6243_v6 = vsel %vm10696_vm14, %v6241_v63, %v5312_v52  ;;  %vm10707_vm14 = vcmask 687104   ;;  %v11202_v63 = vld [vmem:[#allocation121_spill] sm:$0xff] }
 0x363   : > { %5543 = vrot.lane.b32.xlu1 %v2568_v33, %s11189_s10  ;;  %v6245_v19 = vsel %vm10703_vm15, %v6243_v6, %v5316_v45  ;;  %v2653_v45 = vrot.slane %v11198_v15, %v8473_v48  ;;  %vm10709_vm15 = vcmask 736256   ;;  %v11203_v52 = vcombine.low %v11201_v53, %v11202_v63 }
 0x364   : > { %v5332_v14 = vpop.permute.xlu0 %5331  ;;  %v2757_v38 = vrot.slane %v2743_v24, %v7068_v5 }
 0x365   : > { %v5320_v59 = vpop.permute.xlu1 %5319  ;;  %v2705_v32 = vcombine.high %v2653_v45, %v2685_v62  ;;  %v2662_v33 = vrot.slane %v11203_v52, %v8473_v48 }
 0x366   : > { %5563 = vrot.lane.b32.xlu0 %v2573_v12, %s11193_s20  ;;  %v6247_v8 = vsel %vm10700_vm12, %v6245_v19, %v5320_v59  ;;  %vm10712_vm12 = vcmask 719872   ;;  %v2702_v12 = vcombine.low %v2646_v25, %v2678_v10  ;;  %v2807_v25 = vcombine.high %v2750_v50, %v2766_v22 }
 0x367   : > { %5551 = vrot.lane.b32.xlu1 %v2570_v11, %s11197_s8  ;;  %v6249_v44 = vsel %vm10707_vm14, %v6247_v8, %v5324_v39  ;;  %v2759_v39 = vcombine.high %v11194_v23, %v8825_v57  ;;  %v2707_v49 = vcombine.high %v2662_v33, %v2694_v0  ;;  %vm10713_vm14 = vcmask 769024  }
 0x368   : > { %v5340_v46 = vpop.permute.xlu0 %5339  ;;  %v11206_v57 = vcombine.high %v11201_v53, %v11202_v63  ;;  %v2704_v19 = vcombine.low %v2653_v45, %v2685_v62  ;;  %v11213_v45 = vld [vmem:[#allocation173_spill] sm:$0xff]  ;;  %v2821_v50 = vrot.slane %v2807_v25, %v8473_v48  ;;  %v11215_v63 = vld [vmem:[#allocation148_spill] sm:$0xff]  ;;  %v11222_v25 = vld [vmem:[#allocation123_spill] sm:$0xff] }
 0x369   : > { %v5328_v26 = vpop.permute.xlu1 %5327  ;;  %v2773_v10 = vrot.slane %v2759_v39, %v7068_v5  ;;  %v2894_v36 = vcombine.low %v11213_v45, %v8847_v61  ;;  %v11214_v53 = vld [vmem:[#allocation193_spill] sm:$0xff] }
 0x36a   : > { %5571 = vrot.lane.b32.xlu0 %v2703_v54, %s11199_s7  ;;  %v6251_v20 = vsel %vm10705_vm13, %v6249_v44, %v5328_v26  ;;  %vm10714_vm13 = vcmask 752640   ;;  %v2814_v54 = vrot.slane %v2806_v31, %v8473_v48  ;;  %v2706_v26 = vcombine.low %v2662_v33, %v2694_v0 }
 0x36b   : > { %5559 = vrot.lane.b32.xlu1 %v2572_v3, %s11200_s11  ;;  %v6253_v21 = vsel %vm10712_vm12, %v6251_v20, %v5332_v14  ;;  %v2669_v14 = vrot.slane %v11206_v57, %v8473_v48  ;;  %vm10715_vm12 = vcmask 801792   ;;  %v2822_v62 = vcombine.low %v2757_v38, %v2773_v10 }
 0x36c   : > { %v5348_v35 = vpop.permute.xlu0 %5347  ;;  %v2878_v52 = vcombine.low %v11215_v63, %v11214_v53  ;;  %v2823_v33 = vcombine.high %v2757_v38, %v2773_v10  ;;  %v2902_v39 = vrot.slane %v2894_v36, %v7068_v5  ;;  %v11221_v10 = vld [vmem:[#allocation122_spill] sm:$0xff] }
 0x36d   : > { %v5336_v6 = vpop.permute.xlu1 %5335  ;;  %v2709_v8 = vcombine.high %v2669_v14, %v2701_v58  ;;  %v2830_v24 = vrot.slane %v2822_v62, %v8473_v48 }
 0x36e   : > { %5579 = vrot.lane.b32.xlu0 %v2705_v32, %s11204_s21  ;;  %v6255_v7 = vsel %vm10709_vm15, %v6253_v21, %v5336_v6  ;;  %vm10716_vm15 = vcmask 785408   ;;  %v2708_v6 = vcombine.low %v2669_v14, %v2701_v58  ;;  %v2886_v57 = vrot.slane %v2878_v52, %v7068_v5  ;;  %s11220_s21 = smov 102  }
 0x36f   : > { %5567 = vrot.lane.b32.xlu1 %v2702_v12, %s11205_s6  ;;  %v6257_v23 = vsel %vm10714_vm13, %v6255_v7, %v5340_v46  ;;  %v11212_v46 = vcombine.low %v11210_v43, %v11211_v47  ;;  %vm10717_vm13 = vcmask 834560   ;;  %v2895_v58 = vcombine.high %v11213_v45, %v8847_v61 }
 0x370   : > { %v5356_v27 = vpop.permute.xlu0 %5355  ;;  %v2942_v14 = vcombine.low %v2886_v57, %v2902_v39  ;;  %v11226_v61 = vcombine.high %v11221_v10, %v11222_v25 }
 0x371   : > { %v5344_v9 = vpop.permute.xlu1 %5343  ;;  %v2782_v15 = vrot.slane %v11212_v46, %v8473_v48  ;;  %v2879_v46 = vcombine.high %v11215_v63, %v11214_v53  ;;  %v11228_v53 = vld [vmem:[#allocation128_spill] sm:$0xff]  ;;  %v11229_v63 = vld [vmem:[#allocation130_spill] sm:$0xff] }
 0x372   : > { %5587 = vrot.lane.b32.xlu0 %v2707_v49, %s11207_s1  ;;  %v6259_v11 = vsel %vm10713_vm14, %v6257_v23, %v5344_v9  ;;  %vm10718_vm14 = vcmask 818176   ;;  %s11217_s1 = smov 98   ;;  %v11230_v52 = vcombine.low %v11228_v53, %v11229_v63 }
 0x373   : > { %5575 = vrot.lane.b32.xlu1 %v2704_v19, %s11208_s19  ;;  %v6261_v22 = vsel %vm10716_vm15, %v6259_v11, %v5348_v35  ;;  %v2839_v32 = vcombine.high %v2782_v15, %v2814_v54  ;;  %v11218_v35 = vcombine.high %v11210_v43, %v11211_v47  ;;  %vm10719_vm15 = vcmask 867328  }
 0x374   : > { %v5364_v59 = vpop.permute.xlu0 %5363  ;;  %v2838_v11 = vcombine.low %v2782_v15, %v2814_v54  ;;  %v2837_v47 = vrot.slane %v2823_v33, %v8473_v48  ;;  %v2909_v54 = vrot.slane %v2895_v58, %v7068_v5  ;;  %v2943_v15 = vcombine.high %v2886_v57, %v2902_v39  ;;  %v11233_v57 = vld [vmem:[#allocation175_spill] sm:$0xff] }
 0x375   : > { %v5352_v44 = vpop.permute.xlu1 %5351  ;;  %v2789_v0 = vrot.slane %v11218_v35, %v8473_v48  ;;  %v2918_v35 = vrot.slane %v11230_v52, %v8473_v48 }
 0x376   : > { %5595 = vrot.lane.b32.xlu0 %v2709_v8, %s11209_s9  ;;  %v6263_v20 = vsel %vm10715_vm12, %v6261_v22, %v5352_v44  ;;  %s11216_s9 = smov 88   ;;  %vm10720_vm12 = vcmask 850944  }
 0x377   : > { %5583 = vrot.lane.b32.xlu1 %v2706_v26, %s11216_s9  ;;  %v6265_v31 = vsel %vm10718_vm14, %v6263_v20, %v5356_v27  ;;  %v2841_v49 = vcombine.high %v2789_v0, %v2821_v50  ;;  %v11223_v27 = vcombine.low %v11221_v10, %v11222_v25  ;;  %vm10721_vm14 = vcmask 900096   ;;  %v11234_v10 = vld [vmem:[#allocation27_spill] sm:$0xff]  ;;  %s11255_s9 = smov 126  }
 0x378   : > { %v5372_v3 = vpop.permute.xlu0 %5371  ;;  %v2840_v36 = vcombine.low %v2789_v0, %v2821_v50  ;;  %v2950_v20 = vrot.slane %v2942_v14, %v8473_v48  ;;  %v3014_v25 = vcombine.low %v11234_v10, %v11233_v57 }
 0x379   : > { %v5360_v21 = vpop.permute.xlu1 %5359  ;;  %v2798_v23 = vrot.slane %v11223_v27, %v8473_v48  ;;  %v11236_v27 = vcombine.high %v11228_v53, %v11229_v63 }
 0x37a   : > { %5603 = vrot.lane.b32.xlu0 %v2839_v32, %s11217_s1  ;;  %v6267_v7 = vsel %vm10717_vm13, %v6265_v31, %v5360_v21  ;;  %s11219_s1 = smov 92   ;;  %vm10722_vm13 = vcmask 883712   ;;  %v2893_v32 = vrot.slane %v2879_v46, %v7068_v5 }
 0x37b   : > { %5591 = vrot.lane.b32.xlu1 %v2708_v6, %s11219_s1  ;;  %v6269_v9 = vsel %vm10720_vm12, %v6267_v7, %v5364_v59  ;;  %v2843_v43 = vcombine.high %v2798_v23, %v2830_v24  ;;  %s11225_s1 = smov 106   ;;  %v2805_v59 = vrot.slane %v11226_v61, %v8473_v48  ;;  %vm10723_vm12 = vcmask 932864  }
 0x37c   : > { %v5380_v12 = vpop.permute.xlu0 %5379  ;;  %v2958_v0 = vcombine.low %v2893_v32, %v2909_v54  ;;  %v2842_v31 = vcombine.low %v2798_v23, %v2830_v24  ;;  %v2975_v7 = vcombine.high %v2918_v35, %v2950_v20  ;;  %v2959_v58 = vcombine.high %v2893_v32, %v2909_v54 }
 0x37d   : > { %v5368_v19 = vpop.permute.xlu1 %5367  ;;  %v2845_v26 = vcombine.high %v2805_v59, %v2837_v47  ;;  %v3022_v61 = vrot.slane %v3014_v25, %v7068_v5  ;;  %v11251_v25 = vld [vmem:[#allocation68_spill] sm:$0xff] }
 0x37e   : > { %5611 = vrot.lane.b32.xlu0 %v2841_v49, %s11220_s21  ;;  %v6271_v38 = vsel %vm10719_vm15, %v6269_v9, %v5368_v19  ;;  %s11224_s21 = smov 96   ;;  %vm10724_vm15 = vcmask 916480   ;;  %v2957_v49 = vrot.slane %v2943_v15, %v8473_v48  ;;  %v2844_v19 = vcombine.low %v2805_v59, %v2837_v47  ;;  %v11240_v15 = vld [vmem:[#allocation131_spill] sm:$0xff] }
 0x37f   : > { %5599 = vrot.lane.b32.xlu1 %v2838_v11, %s11224_s21  ;;  %v6273_v62 = vsel %vm10722_vm13, %v6271_v38, %v5372_v3  ;;  %s11231_s21 = smov 110   ;;  %v11232_v3 = vld [vmem:[#allocation150_spill] sm:$0xff]  ;;  %vm10725_vm13 = vcmask 965632   ;;  %v2966_v46 = vrot.slane %v2958_v0, %v8473_v48  ;;  %v2973_v63 = vrot.slane %v2959_v58, %v8473_v48 }
 0x380   : > { %v5388_v8 = vpop.permute.xlu0 %5387  ;;  %v3030_v50 = vcombine.low %v11232_v3, %v8568_v56  ;;  %v3031_v24 = vcombine.high %v11232_v3, %v8568_v56  ;;  %v11239_v56 = vld [vmem:[#allocation129_spill] sm:$0xff] }
 0x381   : > { %v5376_v45 = vpop.permute.xlu1 %5375  ;;  %v11241_v54 = vcombine.low %v11239_v56, %v11240_v15  ;;  %v11244_v52 = vcombine.high %v11239_v56, %v11240_v15 }
 0x382   : > { %5619 = vrot.lane.b32.xlu0 %v2843_v43, %s11225_s1  ;;  %v6275_v44 = vsel %vm10721_vm14, %v6273_v62, %v5376_v45  ;;  %s11227_s1 = smov 100   ;;  %vm10726_vm14 = vcmask 949248   ;;  %v3038_v23 = vrot.slane %v3030_v50, %v7068_v5  ;;  %v3045_v47 = vrot.slane %v3031_v24, %v7068_v5 }
 0x383   : > { %5607 = vrot.lane.b32.xlu1 %v2840_v36, %s11227_s1  ;;  %v6277_v33 = vsel %vm10724_vm15, %v6275_v44, %v5380_v12  ;;  %s11235_s1 = smov 104   ;;  %v2925_v12 = vrot.slane %v11236_v27, %v8473_v48  ;;  %vm6286_vm15 = vcmask 998400   ;;  %v2934_v62 = vrot.slane %v11241_v54, %v8473_v48 }
 0x384   : > { %v5396_v22 = vpop.permute.xlu0 %5395  ;;  %v3079_v59 = vcombine.high %v3022_v61, %v3038_v23  ;;  %v2974_v44 = vcombine.low %v2918_v35, %v2950_v20  ;;  %v2941_v3 = vrot.slane %v11244_v52, %v8473_v48  ;;  %v11246_v20 = vld [vmem:[#allocation151_spill] sm:$0xff]  ;;  %v3078_v58 = vcombine.low %v3022_v61, %v3038_v23  ;;  %v11259_v61 = vld [vmem:[#allocation69_spill] sm:$0xff] }
 0x385   : > { %v5384_v39 = vpop.permute.xlu1 %5383  ;;  %v2977_v43 = vcombine.high %v2925_v12, %v2957_v49  ;;  %v2979_v53 = vcombine.high %v2934_v62, %v2966_v46  ;;  %v3166_v35 = vcombine.low %v11246_v20, %v8594_v16  ;;  %v11258_v23 = vld [vmem:[#allocation67_spill] sm:$0xff] }
 0x386   : > { %5627 = vrot.lane.b32.xlu0 %v2845_v26, %s11231_s21  ;;  %v6279_v6 = vsel %vm10723_vm12, %v6277_v33, %v5384_v39  ;;  %s11237_s21 = smov 114   ;;  %vm6284_vm12 = vcmask 982016   ;;  %v2976_v33 = vcombine.low %v2925_v12, %v2957_v49  ;;  %v11253_v49 = vld [vmem:[#allocation176_spill] sm:$0xff]  ;;  %v11254_v12 = vld [vmem:[#allocation59_spill] sm:$0xff] }
 0x387   : > { %5615 = vrot.lane.b32.xlu1 %v2842_v31, %s11235_s1  ;;  %v6281_v14 = vsel %vm10726_vm14, %v6279_v6, %v5388_v8  ;;  %s11238_s1 = smov 108   ;;  %v3015_v8 = vcombine.high %v11234_v10, %v11233_v57  ;;  %vm6290_vm14 = vcmask 1031168   ;;  %v3093_v57 = vrot.slane %v3079_v59, %v8473_v48  ;;  %v11250_v10 = vld [vmem:[#allocation66_spill] sm:$0xff] }
 0x388   : > { %v5404_v21 = vpop.permute.xlu0 %5403  ;;  %v3150_v24 = vcombine.low %v11254_v12, %v11253_v49  ;;  %v3174_v56 = vrot.slane %v3166_v35, %v7068_v5  ;;  %v11262_v35 = vcombine.low %v11250_v10, %v11251_v25 }
 0x389   : > { %v5392_v9 = vpop.permute.xlu1 %5391 }
 0x38a   : > { %5635 = vrot.lane.b32.xlu0 %v2975_v7, %s11237_s21  ;;  %v6283_v38 = vsel %vm10725_vm13, %v6281_v14, %v5392_v9  ;;  %s11242_s21 = smov 118   ;;  %vm6288_vm13 = vcmask 1014784   ;;  %v2981_v7 = vcombine.high %v2941_v3, %v2973_v63  ;;  %v11256_v9 = vcombine.low %v8610_v34, %v8614_v13 }
 0x38b   : > { %5623 = vrot.lane.b32.xlu1 %v2844_v19, %s11238_s1  ;;  %v6285_v45 = vsel %vm6284_vm12, %v6283_v38, %v5396_v22  ;;  %s11243_s1 = smov 112   ;;  %v3029_v22 = vrot.slane %v3015_v8, %v7068_v5  ;;  %v3158_v34 = vrot.slane %v3150_v24, %v7068_v5  ;;  %v9322_v13 = vrot.slane %v3078_v58, %v8473_v48 }
 0x38c   : > { %v5412_v11 = vpop.permute.xlu0 %5411 }
 0x38d   : > { %v5400_v36 = vpop.permute.xlu1 %5399  ;;  %v3094_v39 = vcombine.low %v3029_v22, %v3045_v47  ;;  %v3095_v14 = vcombine.high %v3029_v22, %v3045_v47  ;;  %v6292_v19 = vsel %vm6166_vm0, %v11256_v9, %v5412_v11  ;;  %v11260_v47 = vcombine.low %v11258_v23, %v11259_v61 }
 0x38e   : > { %5643 = vrot.lane.b32.xlu0 %v2977_v43, %s11242_s21  ;;  %v6287_v32 = vsel %vm6286_vm15, %v6285_v45, %v5400_v36  ;;  %s11245_s21 = smov 122   ;;  %v2978_v43 = vcombine.low %v2934_v62, %v2966_v46  ;;  %v3167_v11 = vcombine.high %v11246_v20, %v8594_v16  ;;  %v2980_v36 = vcombine.low %v2941_v3, %v2973_v63 }
 0x38f   : > { %5631 = vrot.lane.b32.xlu1 %v2974_v44, %s11243_s1  ;;  %v6289_v50 = vsel %vm6288_vm13, %v6287_v32, %v5404_v21  ;;  %s11247_s1 = sshll.u32 %s7053_s26, 5  ;;  %v11252_v21 = vcombine.high %v11250_v10, %v11251_v25  ;;  %v3102_v59 = vrot.slane %v3094_v39, %v8473_v48  ;;  %v3070_v45 = vrot.slane %v11260_v47, %v8473_v48  ;;  %s11261_s26 = smov 4  }
 0x390   : > { %v5420_v26 = vpop.permute.xlu0 %5419  ;;  %s9296_s7 = scalar_lea.vmem [#allocation5], %s11247_s1  ;;  %s11257_s1 = smov 120   ;;  %v3214_v44 = vcombine.low %v3158_v34, %v3174_v56  ;;  %v3109_v22 = vrot.slane %v3095_v14, %v8473_v48  ;;  %v3151_v16 = vcombine.high %v11254_v12, %v11253_v49  ;;  %v3181_v3 = vrot.slane %v3167_v11, %v7068_v5  ;;  %v11267_v49 = vld [vmem:[#allocation70_spill] sm:$0xff]  ;;  %v11268_v12 = vld [vmem:[#allocation72_spill] sm:$0xff] }
 0x391   : > { %v5408_v0 = vpop.permute.xlu1 %5407  ;;  %11248 = sst [smem:[#allocation199_spill]] %s9296_s7  ;;  %v3061_v27 = vrot.slane %v11252_v21, %v8473_v48  ;;  %v3114_v52 = vcombine.low %v3070_v45, %v3102_v59  ;;  %v3215_v39 = vcombine.high %v3158_v34, %v3174_v56  ;;  %v11269_v24 = vcombine.low %v11267_v49, %v11268_v12  ;;  %v11274_v34 = vld [vmem:[#allocation177_spill] sm:$0xff] }
 0x392   : > { %5651 = vrot.lane.b32.xlu0 %v2979_v53, %s11245_s21  ;;  %v6291_v6 = vsel %vm6290_vm14, %v6289_v50, %v5408_v0  ;;  %s11249_s21 = smov 116   ;;  %v9333_v50 = vrot.slane %v11262_v35, %v8473_v48  ;;  %v3222_v25 = vrot.slane %v3214_v44, %v8473_v48  ;;  %v3165_v21 = vrot.slane %v3151_v16, %v7068_v5  ;;  %v11278_v16 = vld [vmem:[#allocation71_spill] sm:$0xff] }
 0x393   : > { %6481 = vst [vmem:[%s9296_s7] sm:$0xff] %v6291_v6  ;;  %5639 = vrot.lane.b32.xlu1 %v2976_v33, %s11249_s21  ;;  %v3112_v8 = vcombine.low %v3061_v27, %v3093_v57 }
 0x394   : > { %v5428_v31 = vpop.permute.xlu0 %5427  ;;  %v3111_v33 = vcombine.high %v9333_v50, %v9322_v13  ;;  %v3230_v58 = vcombine.low %v3165_v21, %v3181_v3 }
 0x395   : > { %v5416_v38 = vpop.permute.xlu1 %5415 }
 0x396   : > { %5659 = vrot.lane.b32.xlu0 %v2981_v7, %s11255_s9  ;;  %v6293_v54 = vsel %vm6168_vm1, %v6292_v19, %v5416_v38  ;;  %s11265_s9 = smov 8   ;;  %v3113_v19 = vcombine.high %v3061_v27, %v3093_v57  ;;  %v11271_v38 = vld [vmem:[#allocation152_spill] sm:$0xff]  ;;  %v3231_v57 = vcombine.high %v3165_v21, %v3181_v3  ;;  %v3238_v35 = vrot.slane %v3230_v58, %v8473_v48 }
 0x397   : > { %5647 = vrot.lane.b32.xlu1 %v2978_v43, %s11257_s1  ;;  %v6294_v46 = vsel %vm6170_vm2, %v6293_v54, %v5420_v26  ;;  %v11264_v26 = vcombine.high %v11258_v23, %v11259_v61  ;;  %v3302_v43 = vcombine.low %v11271_v38, %v8620_v28  ;;  %v3229_v23 = vrot.slane %v3215_v39, %v8473_v48 }
 0x398   : > { %v5436_v15 = vpop.permute.xlu0 %5435  ;;  %v11273_v61 = vcombine.high %v11267_v49, %v11268_v12  ;;  %v3245_v49 = vrot.slane %v3231_v57, %v8473_v48 }
 0x399   : > { %v5424_v62 = vpop.permute.xlu1 %5423  ;;  %v3077_v63 = vrot.slane %v11264_v26, %v8473_v48  ;;  %v11279_v26 = vld [vmem:[#allocation73_spill] sm:$0xff] }
 0x39a   : > { %5667 = vrot.lane.b32.xlu0 %v3112_v8, %s11261_s26  ;;  %v6295_v53 = vsel %vm6172_vm3, %v6294_v46, %v5424_v62  ;;  %s11263_s26 = smov 124   ;;  %v3197_v47 = vrot.slane %v11273_v61, %v8473_v48  ;;  %v3115_v62 = vcombine.high %v3070_v45, %v3102_v59  ;;  %v3303_v59 = vcombine.high %v11271_v38, %v8620_v28 }
 0x39b   : > { %5655 = vrot.lane.b32.xlu1 %v2980_v36, %s11263_s26  ;;  %v6296_v20 = vsel %vm6174_vm4, %v6295_v53, %v5428_v31  ;;  %v3116_v10 = vcombine.low %v3077_v63, %v3109_v22  ;;  %s11266_s26 = smov 2   ;;  %v3190_v31 = vrot.slane %v11269_v24, %v8473_v48  ;;  %v3310_v36 = vrot.slane %v3302_v43, %v7068_v5 }
 0x39c   : > { %v5444_v32 = vpop.permute.xlu0 %5443  ;;  %v11283_v12 = vcombine.high %v11278_v16, %v11279_v26  ;;  %v3249_v57 = vcombine.high %v3197_v47, %v3229_v23 }
 0x39d   : > { %v5432_v0 = vpop.permute.xlu1 %5431  ;;  %v3246_v8 = vcombine.low %v3190_v31, %v3222_v25  ;;  %v3247_v58 = vcombine.high %v3190_v31, %v3222_v25  ;;  %v11291_v25 = vld [vmem:[#allocation153_spill] sm:$0xff] }
 0x39e   : > { %5675 = vrot.lane.b32.xlu0 %v3114_v52, %s11265_s9  ;;  %v6297_v7 = vsel %vm6176_vm5, %v6296_v20, %v5432_v0  ;;  %s11270_s9 = smov 12   ;;  %v3248_v52 = vcombine.low %v3197_v47, %v3229_v23  ;;  %v11280_v20 = vcombine.low %v11278_v16, %v11279_v26  ;;  %v3213_v24 = vrot.slane %v11283_v12, %v8473_v48  ;;  %v11296_v26 = vld [vmem:[#allocation178_spill] sm:$0xff]  ;;  %v11302_v12 = vld [vmem:[#allocation77_spill] sm:$0xff] }
 0x39f   : > { %5663 = vrot.lane.b32.xlu1 %v3111_v33, %s11266_s26  ;;  %v6298_v14 = vsel %vm6178_vm6, %v6297_v7, %v5436_v15  ;;  %s11272_s26 = smov 6   ;;  %v11275_v15 = vld [vmem:[#allocation30_spill] sm:$0xff]  ;;  %v3117_v33 = vcombine.high %v3077_v63, %v3109_v22  ;;  %v3317_v22 = vrot.slane %v3303_v59, %v7068_v5  ;;  %v3438_v31 = vcombine.low %v11291_v25, %v8639_v37 }
 0x3a0   : > { %v5452_v6 = vpop.permute.xlu0 %5451  ;;  %v3286_v11 = vcombine.low %v11275_v15, %v11274_v34  ;;  %v3206_v0 = vrot.slane %v11280_v20, %v8473_v48  ;;  %v3287_v28 = vcombine.high %v11275_v15, %v11274_v34  ;;  %v3252_v38 = vcombine.low %v3213_v24, %v3245_v49  ;;  %v11297_v20 = vld [vmem:[#allocation31_spill] sm:$0xff] }
 0x3a1   : > { %v5440_v9 = vpop.permute.xlu1 %5439 }
 0x3a2   : > { %5683 = vrot.lane.b32.xlu0 %v3116_v10, %s11270_s9  ;;  %v6299_v54 = vsel %vm6180_vm7, %v6298_v14, %v5440_v9  ;;  %s11276_s9 = smov 16   ;;  %v3294_v3 = vrot.slane %v3286_v11, %v7068_v5  ;;  %v3250_v21 = vcombine.low %v3206_v0, %v3238_v35  ;;  %v3301_v15 = vrot.slane %v3287_v28, %v7068_v5 }
 0x3a3   : > { %5671 = vrot.lane.b32.xlu1 %v3113_v19, %s11272_s26  ;;  %v6300_v27 = vsel %vm6182_vm8, %v6299_v54, %v5444_v32  ;;  %s11277_s26 = smov 10   ;;  %v11288_v54 = vld [vmem:[#allocation74_spill] sm:$0xff]  ;;  %v3251_v59 = vcombine.high %v3206_v0, %v3238_v35  ;;  %v3439_v35 = vcombine.high %v11291_v25, %v8639_v37 }
 0x3a4   : > { %v5460_v56 = vpop.permute.xlu0 %5459  ;;  %v3350_v39 = vcombine.low %v3294_v3, %v3310_v36  ;;  %v3351_v14 = vcombine.high %v3294_v3, %v3310_v36  ;;  %v3422_v3 = vcombine.low %v11297_v20, %v11296_v26  ;;  %v3367_v23 = vcombine.high %v3301_v15, %v3317_v22 }
 0x3a5   : > { %v5448_v46 = vpop.permute.xlu1 %5447 }
 0x3a6   : > { %5691 = vrot.lane.b32.xlu0 %v3246_v8, %s11276_s9  ;;  %v6301_v53 = vsel %vm10740_vm9, %v6300_v27, %v5448_v46  ;;  %s11281_s9 = smov 20   ;;  %v3358_v43 = vrot.slane %v3350_v39, %v8473_v48  ;;  %v11289_v8 = vld [vmem:[#allocation76_spill] sm:$0xff]  ;;  %v3366_v27 = vcombine.low %v3301_v15, %v3317_v22  ;;  %v3430_v22 = vrot.slane %v3422_v3, %v7068_v5  ;;  %v11315_v3 = vld [vmem:[#allocation154_spill] sm:$0xff] }
 0x3a7   : > { %5679 = vrot.lane.b32.xlu1 %v3115_v62, %s11277_s26  ;;  %v6302_v45 = vsel %vm10728_vm10, %v6301_v53, %v5452_v6  ;;  %s11282_s26 = smov 14   ;;  %vm11285_vm10 = vcmask 211968   ;;  %v11290_v61 = vcombine.low %v11288_v54, %v11289_v8  ;;  %v3365_v53 = vrot.slane %v3351_v14, %v8473_v48 }
 0x3a8   : > { %v5468_v44 = vpop.permute.xlu0 %5467 }
 0x3a9   : > { %v5456_v32 = vpop.permute.xlu1 %5455  ;;  %v3326_v34 = vrot.slane %v11290_v61, %v8473_v48 }
 0x3aa   : > { %5699 = vrot.lane.b32.xlu0 %v3248_v52, %s11281_s9  ;;  %v6303_v10 = vsel %vm10729_vm11, %v6302_v45, %v5456_v32  ;;  %s11284_s9 = smov 24   ;;  %vm11286_vm11 = vcmask 228352   ;;  %v11295_v52 = vcombine.high %v11288_v54, %v11289_v8  ;;  %v3446_v45 = vrot.slane %v3438_v31, %v7068_v5 }
 0x3ab   : > { %5687 = vrot.lane.b32.xlu1 %v3117_v33, %s11282_s26  ;;  %v6304_v63 = vsel %vm11285_vm10, %v6303_v10, %v5460_v56  ;;  %s11287_s26 = smov 18   ;;  %vm11292_vm10 = vcmask 244736   ;;  %v3382_v36 = vcombine.low %v3326_v34, %v3358_v43  ;;  %v3374_v10 = vrot.slane %v3366_v27, %v8473_v48 }
 0x3ac   : > { %v5476_v7 = vpop.permute.xlu0 %5475  ;;  %v3333_v16 = vrot.slane %v11295_v52, %v8473_v48  ;;  %v3381_v54 = vrot.slane %v3367_v23, %v8473_v48  ;;  %v3423_v8 = vcombine.high %v11297_v20, %v11296_v26  ;;  %v3383_v15 = vcombine.high %v3326_v34, %v3358_v43 }
 0x3ad   : > { %v5464_v6 = vpop.permute.xlu1 %5463  ;;  %v3487_v25 = vcombine.high %v3430_v22, %v3446_v45  ;;  %v3574_v23 = vcombine.low %v11315_v3, %v8650_v40 }
 0x3ae   : > { %5707 = vrot.lane.b32.xlu0 %v3250_v21, %s11284_s9  ;;  %v6305_v19 = vsel %vm11286_vm11, %v6304_v63, %v5464_v6  ;;  %vm11293_vm11 = vcmask 261120   ;;  %s11294_s9 = smov 22   ;;  %v3384_v39 = vcombine.low %v3333_v16, %v3365_v53  ;;  %v11301_v21 = vld [vmem:[#allocation75_spill] sm:$0xff]  ;;  %v3253_v6 = vcombine.high %v3213_v24, %v3245_v49 }
 0x3af   : > { %5695 = vrot.lane.b32.xlu1 %v3247_v58, %s11287_s26  ;;  %v6306_v56 = vsel %vm11292_vm10, %v6305_v19, %v5468_v44  ;;  %vm11298_vm10 = vcmask 277504   ;;  %v11303_v28 = vcombine.low %v11301_v21, %v11302_v12  ;;  %v3486_v58 = vcombine.low %v3430_v22, %v3446_v45 }
 0x3b0   : > { %v5484_v9 = vpop.permute.xlu0 %5483  ;;  %v11307_v37 = vcombine.high %v11301_v21, %v11302_v12  ;;  %v3453_v49 = vrot.slane %v3439_v35, %v7068_v5  ;;  %v3437_v27 = vrot.slane %v3423_v8, %v7068_v5  ;;  %v3385_v20 = vcombine.high %v3333_v16, %v3365_v53  ;;  %v11318_v21 = vld [vmem:[#allocation180_spill] sm:$0xff] }
 0x3b1   : > { %v5472_v11 = vpop.permute.xlu1 %5471  ;;  %v3342_v63 = vrot.slane %v11303_v28, %v8473_v48  ;;  %v3501_v45 = vrot.slane %v3487_v25, %v8473_v48  ;;  %v3582_v35 = vrot.slane %v3574_v23, %v7068_v5  ;;  %v11330_v23 = vld [vmem:[#allocation82_spill] sm:$0xff] }
 0x3b2   : > { %5715 = vrot.lane.b32.xlu0 %v3252_v38, %s11143_s4  ;;  %v6307_v62 = vsel %vm11293_vm11, %v6306_v56, %v5472_v11  ;;  %vm11299_vm11 = vcmask 293888   ;;  %s11300_s4 = smov 26   ;;  %v3349_v61 = vrot.slane %v11307_v37, %v8473_v48  ;;  %v3503_v53 = vcombine.high %v3437_v27, %v3453_v49 }
 0x3b3   : > { %5703 = vrot.lane.b32.xlu1 %v3249_v57, %s11294_s9  ;;  %v6308_v47 = vsel %vm11298_vm10, %v6307_v62, %v5476_v7  ;;  %vm11304_vm10 = vcmask 310272   ;;  %v3386_v38 = vcombine.low %v3342_v63, %v3374_v10  ;;  %v3494_v57 = vrot.slane %v3486_v58, %v8473_v48  ;;  %v11311_v62 = vld [vmem:[#allocation78_spill] sm:$0xff] }
 0x3b4   : > { %v5492_v46 = vpop.permute.xlu0 %5491  ;;  %v3388_v11 = vcombine.low %v3349_v61, %v3381_v54  ;;  %v3387_v22 = vcombine.high %v3342_v63, %v3374_v10  ;;  %v3575_v10 = vcombine.high %v11315_v3, %v8650_v40 }
 0x3b5   : > { %v5480_v44 = vpop.permute.xlu1 %5479 }
 0x3b6   : > { %5723 = vrot.lane.b32.xlu0 %v3382_v36, %s11148_s25  ;;  %v6309_v33 = vsel %vm11299_vm11, %v6308_v47, %v5480_v44  ;;  %vm11305_vm11 = vcmask 326656   ;;  %s11306_s25 = smov 30   ;;  %v11312_v36 = vld [vmem:[#allocation80_spill] sm:$0xff] }
 0x3b7   : > { %5711 = vrot.lane.b32.xlu1 %v3251_v59, %s11300_s4  ;;  %v6310_v0 = vsel %vm11304_vm10, %v6309_v33, %v5484_v9  ;;  %vm11308_vm10 = vcmask 343040   ;;  %v11313_v52 = vcombine.low %v11311_v62, %v11312_v36  ;;  %v11317_v33 = vcombine.high %v11311_v62, %v11312_v36 }
 0x3b8   : > { %v5500_v32 = vpop.permute.xlu0 %5499 }
 0x3b9   : > { %v5488_v7 = vpop.permute.xlu1 %5487  ;;  %v3462_v26 = vrot.slane %v11313_v52, %v8473_v48 }
 0x3ba   : > { %5731 = vrot.lane.b32.xlu0 %v3384_v39, %s11151_s17  ;;  %v6311_v19 = vsel %vm11305_vm11, %v6310_v0, %v5488_v7  ;;  %vm11309_vm11 = vcmask 359424   ;;  %s11310_s17 = smov 34   ;;  %v3469_v39 = vrot.slane %v11317_v33, %v8473_v48 }
 0x3bb   : > { %5719 = vrot.lane.b32.xlu1 %v3253_v6, %s11306_s25  ;;  %v6312_v24 = vsel %vm11308_vm10, %v6311_v19, %v5492_v46  ;;  %v3502_v46 = vcombine.low %v3437_v27, %v3453_v49  ;;  %vm11314_vm10 = vcmask 375808   ;;  %v3518_v59 = vcombine.low %v3462_v26, %v3494_v57  ;;  %v11322_v19 = vld [vmem:[#allocation79_spill] sm:$0xff] }
 0x3bc   : > { %v5508_v14 = vpop.permute.xlu0 %5507  ;;  %v3520_v6 = vcombine.low %v3469_v39, %v3501_v45  ;;  %v3519_v36 = vcombine.high %v3462_v26, %v3494_v57 }
 0x3bd   : > { %v5496_v9 = vpop.permute.xlu1 %5495  ;;  %v3510_v58 = vrot.slane %v3502_v46, %v8473_v48 }
 0x3be   : > { %5739 = vrot.lane.b32.xlu0 %v3386_v38, %s11159_s16  ;;  %v6313_v56 = vsel %vm11309_vm11, %v6312_v24, %v5496_v9  ;;  %vm11316_vm11 = vcmask 392192   ;;  %v11323_v38 = vld [vmem:[#allocation81_spill] sm:$0xff]  ;;  %v3389_v24 = vcombine.high %v3349_v61, %v3381_v54  ;;  %v3589_v54 = vrot.slane %v3575_v10, %v7068_v5 }
 0x3bf   : > { %5727 = vrot.lane.b32.xlu1 %v3383_v15, %s11310_s17  ;;  %v6314_v43 = vsel %vm11314_vm10, %v6313_v56, %v5500_v32  ;;  %v11319_v32 = vld [vmem:[#allocation61_spill] sm:$0xff]  ;;  %vm11320_vm10 = vcmask 408576   ;;  %v11324_v8 = vcombine.low %v11322_v19, %v11323_v38  ;;  %v11327_v40 = vcombine.high %v11322_v19, %v11323_v38 }
 0x3c0   : > { %v5516_v31 = vpop.permute.xlu0 %5515  ;;  %v3558_v12 = vcombine.low %v11319_v32, %v11318_v21  ;;  %v3559_v27 = vcombine.high %v11319_v32, %v11318_v21  ;;  %v3521_v21 = vcombine.high %v3469_v39, %v3501_v45  ;;  %v11334_v32 = vld [vmem:[#allocation155_spill] sm:$0xff] }
 0x3c1   : > { %v5504_v34 = vpop.permute.xlu1 %5503  ;;  %v3478_v37 = vrot.slane %v11324_v8, %v8473_v48  ;;  %v3485_v62 = vrot.slane %v11327_v40, %v8473_v48 }
 0x3c2   : > { %5747 = vrot.lane.b32.xlu0 %v3388_v11, %s11162_s12  ;;  %v6315_v44 = vsel %vm11316_vm11, %v6314_v43, %v5504_v34  ;;  %vm11321_vm11 = vcmask 424960   ;;  %v3566_v49 = vrot.slane %v3558_v12, %v7068_v5  ;;  %v3517_v11 = vrot.slane %v3503_v53, %v8473_v48 }
 0x3c3   : > { %5735 = vrot.lane.b32.xlu1 %v3385_v20, %s11147_s3  ;;  %v6316_v16 = vsel %vm11320_vm10, %v6315_v44, %v5508_v14  ;;  %vm11325_vm10 = vcmask 441344   ;;  %v3522_v56 = vcombine.low %v3478_v37, %v3510_v58  ;;  %v3573_v3 = vrot.slane %v3559_v27, %v7068_v5  ;;  %v11331_v44 = vld [vmem:[#allocation84_spill] sm:$0xff] }
 0x3c4   : > { %v5524_v47 = vpop.permute.xlu0 %5523  ;;  %v3622_v9 = vcombine.low %v3566_v49, %v3582_v35  ;;  %v3623_v52 = vcombine.high %v3566_v49, %v3582_v35  ;;  %v3524_v34 = vcombine.low %v3485_v62, %v3517_v11  ;;  %v3710_v12 = vcombine.low %v11334_v32, %v8664_v30 }
 0x3c5   : > { %v5512_v28 = vpop.permute.xlu1 %5511  ;;  %v11336_v35 = vcombine.high %v11330_v23, %v11331_v44  ;;  %v3639_v45 = vcombine.high %v3573_v3, %v3589_v54  ;;  %v3523_v8 = vcombine.high %v3478_v37, %v3510_v58  ;;  %v3711_v58 = vcombine.high %v11334_v32, %v8664_v30  ;;  %v11350_v32 = vld [vmem:[#allocation90_spill] sm:$0xff] }
 0x3c6   : > { %5755 = vrot.lane.b32.xlu0 %v3518_v59, %s11167_s30  ;;  %v6317_v7 = vsel %vm11321_vm11, %v6316_v16, %v5512_v28  ;;  %vm11326_vm11 = vcmask 457728   ;;  %v3630_v20 = vrot.slane %v3622_v9, %v8473_v48  ;;  %v11332_v59 = vcombine.low %v11330_v23, %v11331_v44  ;;  %v11341_v9 = vld [vmem:[#allocation83_spill] sm:$0xff] }
 0x3c7   : > { %5743 = vrot.lane.b32.xlu1 %v3387_v22, %s11150_s23  ;;  %v6318_v63 = vsel %vm11325_vm10, %v6317_v7, %v5516_v31  ;;  %vm11328_vm10 = vcmask 474112   ;;  %v3637_v22 = vrot.slane %v3623_v52, %v8473_v48  ;;  %v3605_v7 = vrot.slane %v11336_v35, %v8473_v48 }
 0x3c8   : > { %v5532_v0 = vpop.permute.xlu0 %5531  ;;  %v3598_v33 = vrot.slane %v11332_v59, %v8473_v48  ;;  %v3718_v49 = vrot.slane %v3710_v12, %v7068_v5 }
 0x3c9   : > { %v5520_v14 = vpop.permute.xlu1 %5519 }
 0x3ca   : > { %5763 = vrot.lane.b32.xlu0 %v3520_v6, %s11170_s5  ;;  %v6319_v25 = vsel %vm11326_vm11, %v6318_v63, %v5520_v14  ;;  %vm11329_vm11 = vcmask 490496   ;;  %v3654_v28 = vcombine.low %v3598_v33, %v3630_v20  ;;  %v11337_v6 = vld [vmem:[#allocation182_spill] sm:$0xff]  ;;  %v3656_v14 = vcombine.low %v3605_v7, %v3637_v22 }
 0x3cb   : > { %5751 = vrot.lane.b32.xlu1 %v3389_v24, %s11155_s15  ;;  %v6320_v61 = vsel %vm11328_vm10, %v6319_v25, %v5524_v47  ;;  %v3638_v47 = vcombine.low %v3573_v3, %v3589_v54  ;;  %vm11333_vm10 = vcmask 506880   ;;  %v11342_v25 = vld [vmem:[#allocation85_spill] sm:$0xff]  ;;  %v3525_v54 = vcombine.high %v3485_v62, %v3517_v11 }
 0x3cc   : > { %v5540_v15 = vpop.permute.xlu0 %5539  ;;  %v3725_v11 = vrot.slane %v3711_v58, %v7068_v5  ;;  %v3655_v23 = vcombine.high %v3598_v33, %v3630_v20  ;;  %v11352_v20 = vld [vmem:[#allocation157_spill] sm:$0xff] }
 0x3cd   : > { %v5528_v31 = vpop.permute.xlu1 %5527  ;;  %v3646_v24 = vrot.slane %v3638_v47, %v8473_v48  ;;  %v3846_v33 = vcombine.low %v11352_v20, %v8679_v4 }
 0x3ce   : > { %5771 = vrot.lane.b32.xlu0 %v3522_v56, %s11178_s18  ;;  %v6321_v43 = vsel %vm11329_vm11, %v6320_v61, %v5528_v31  ;;  %vm11335_vm11 = vcmask 523264   ;;  %v11343_v56 = vcombine.low %v11341_v9, %v11342_v25 }
 0x3cf   : > { %5759 = vrot.lane.b32.xlu1 %v3519_v36, %s11161_s13  ;;  %v6322_v57 = vsel %vm11333_vm10, %v6321_v43, %v5532_v0  ;;  %v11338_v0 = vld [vmem:[#allocation63_spill] sm:$0xff]  ;;  %vm11339_vm10 = vcmask 539648   ;;  %v3653_v43 = vrot.slane %v3639_v45, %v8473_v48 }
 0x3d0   : > { %v5548_v46 = vpop.permute.xlu0 %5547  ;;  %v3694_v19 = vcombine.low %v11338_v0, %v11337_v6  ;;  %v3614_v27 = vrot.slane %v11343_v56, %v8473_v48  ;;  %v3695_v30 = vcombine.high %v11338_v0, %v11337_v6  ;;  %v3657_v6 = vcombine.high %v3605_v7, %v3637_v22 }
 0x3d1   : > { %v5536_v26 = vpop.permute.xlu1 %5535  ;;  %v3854_v56 = vrot.slane %v3846_v33, %v7068_v5 }
 0x3d2   : > { %5779 = vrot.lane.b32.xlu0 %v3524_v34, %s11181_s28  ;;  %v6323_v16 = vsel %vm11335_vm11, %v6322_v57, %v5536_v26  ;;  %vm11340_vm11 = vcmask 556032   ;;  %v3702_v40 = vrot.slane %v3694_v19, %v7068_v5  ;;  %v3658_v52 = vcombine.low %v3614_v27, %v3646_v24 }
 0x3d3   : > { %5767 = vrot.lane.b32.xlu1 %v3521_v21, %s11166_s2  ;;  %v6324_v39 = vsel %vm11339_vm10, %v6323_v16, %v5540_v15  ;;  %vm11344_vm10 = vcmask 572416   ;;  %v11346_v34 = vcombine.high %v11341_v9, %v11342_v25  ;;  %v11349_v21 = vld [vmem:[#allocation88_spill] sm:$0xff]  ;;  %v3659_v25 = vcombine.high %v3614_v27, %v3646_v24 }
 0x3d4   : > { %v5556_v53 = vpop.permute.xlu0 %5555  ;;  %v3758_v61 = vcombine.low %v3702_v40, %v3718_v49  ;;  %v3759_v44 = vcombine.high %v3702_v40, %v3718_v49  ;;  %v11351_v12 = vcombine.low %v11349_v21, %v11350_v32  ;;  %v3847_v24 = vcombine.high %v11352_v20, %v8679_v4 }
 0x3d5   : > { %v5544_v38 = vpop.permute.xlu1 %5543  ;;  %v3621_v3 = vrot.slane %v11346_v34, %v8473_v48 }
 0x3d6   : > { %5787 = vrot.lane.b32.xlu0 %v3654_v28, %s11186_s0  ;;  %v6325_v63 = vsel %vm11340_vm11, %v6324_v39, %v5544_v38  ;;  %vm11345_vm11 = vcmask 588800   ;;  %v3766_v26 = vrot.slane %v3758_v61, %v8473_v48  ;;  %v3734_v16 = vrot.slane %v11351_v12, %v8473_v48  ;;  %v11361_v61 = vld [vmem:[#allocation91_spill] sm:$0xff] }
 0x3d7   : > { %5775 = vrot.lane.b32.xlu1 %v3523_v8, %s11169_s29  ;;  %v6326_v37 = vsel %vm11344_vm10, %v6325_v63, %v5548_v46  ;;  %vm11347_vm10 = vcmask 605184   ;;  %v3660_v57 = vcombine.low %v3621_v3, %v3653_v43  ;;  %v3709_v28 = vrot.slane %v3695_v30, %v7068_v5  ;;  %v11356_v63 = vld [vmem:[#allocation184_spill] sm:$0xff] }
 0x3d8   : > { %v5564_v10 = vpop.permute.xlu0 %5563  ;;  %v3790_v39 = vcombine.low %v3734_v16, %v3766_v26  ;;  %v3773_v38 = vrot.slane %v3759_v44, %v8473_v48  ;;  %v11355_v8 = vcombine.high %v11349_v21, %v11350_v32  ;;  %v3661_v30 = vcombine.high %v3621_v3, %v3653_v43 }
 0x3d9   : > { %v5552_v15 = vpop.permute.xlu1 %5551  ;;  %v3774_v0 = vcombine.low %v3709_v28, %v3725_v11  ;;  %v3775_v22 = vcombine.high %v3709_v28, %v3725_v11  ;;  %v3861_v43 = vrot.slane %v3847_v24, %v7068_v5  ;;  %v3791_v21 = vcombine.high %v3734_v16, %v3766_v26 }
 0x3da   : > { %5795 = vrot.lane.b32.xlu0 %v3656_v14, %s11189_s10  ;;  %v6327_v36 = vsel %vm11345_vm11, %v6326_v37, %v5552_v15  ;;  %vm11348_vm11 = vcmask 621568   ;;  %v3741_v49 = vrot.slane %v11355_v8, %v8473_v48  ;;  %v11357_v14 = vld [vmem:[#allocation35_spill] sm:$0xff] }
 0x3db   : > { %5783 = vrot.lane.b32.xlu1 %v3525_v54, %s11174_s27  ;;  %v6328_v62 = vsel %vm11347_vm10, %v6327_v36, %v5556_v53  ;;  %vm11353_vm10 = vcmask 637952   ;;  %v3830_v9 = vcombine.low %v11357_v14, %v11356_v63  ;;  %v3782_v15 = vrot.slane %v3774_v0, %v8473_v48  ;;  %v11360_v54 = vld [vmem:[#allocation89_spill] sm:$0xff]  ;;  %v11375_v8 = vld [vmem:[#allocation159_spill] sm:$0xff] }
 0x3dc   : > { %v5572_v31 = vpop.permute.xlu0 %5571  ;;  %v3792_v37 = vcombine.low %v3741_v49, %v3773_v38  ;;  %v11362_v36 = vcombine.low %v11360_v54, %v11361_v61  ;;  %v3789_v44 = vrot.slane %v3775_v22, %v8473_v48  ;;  %v11365_v4 = vcombine.high %v11360_v54, %v11361_v61 }
 0x3dd   : > { %v5560_v46 = vpop.permute.xlu1 %5559  ;;  %v3838_v34 = vrot.slane %v3830_v9, %v7068_v5 }
 0x3de   : > { %5803 = vrot.lane.b32.xlu0 %v3658_v52, %s11197_s8  ;;  %v6329_v47 = vsel %vm11348_vm11, %v6328_v62, %v5560_v46  ;;  %vm11354_vm11 = vcmask 654336   ;;  %v3750_v52 = vrot.slane %v11362_v36, %v8473_v48 }
 0x3df   : > { %5791 = vrot.lane.b32.xlu1 %v3655_v23, %s11180_s24  ;;  %v6330_v53 = vsel %vm11353_vm10, %v6329_v47, %v5564_v10  ;;  %vm11358_vm10 = vcmask 670720   ;;  %v3894_v11 = vcombine.low %v3838_v34, %v3854_v56  ;;  %v3831_v47 = vcombine.high %v11357_v14, %v11356_v63 }
 0x3e0   : > { %v5580_v59 = vpop.permute.xlu0 %5579  ;;  %v3794_v23 = vcombine.low %v3750_v52, %v3782_v15  ;;  %v3895_v32 = vcombine.high %v3838_v34, %v3854_v56  ;;  %v3982_v63 = vcombine.low %v11375_v8, %v8699_v51  ;;  %v11379_v56 = vld [vmem:[#allocation187_spill] sm:$0xff]  ;;  %v3795_v54 = vcombine.high %v3750_v52, %v3782_v15 }
 0x3e1   : > { %v5568_v35 = vpop.permute.xlu1 %5567  ;;  %v3902_v33 = vrot.slane %v3894_v11, %v8473_v48  ;;  %v3983_v15 = vcombine.high %v11375_v8, %v8699_v51 }
 0x3e2   : > { %5811 = vrot.lane.b32.xlu0 %v3660_v57, %s11200_s11  ;;  %v6331_v45 = vsel %vm11354_vm11, %v6330_v53, %v5568_v35  ;;  %vm11359_vm11 = vcmask 687104   ;;  %v3757_v57 = vrot.slane %v11365_v4, %v8473_v48  ;;  %v3845_v53 = vrot.slane %v3831_v47, %v7068_v5  ;;  %v11370_v35 = vld [vmem:[#allocation96_spill] sm:$0xff]  ;;  %s11377_s11 = smov 86  }
 0x3e3   : > { %5799 = vrot.lane.b32.xlu1 %v3657_v6, %s11185_s22  ;;  %v6332_v7 = vsel %vm11358_vm10, %v6331_v45, %v5572_v31  ;;  %vm11363_vm10 = vcmask 703488   ;;  %v11371_v6 = vld [vmem:[#allocation98_spill] sm:$0xff]  ;;  %v3990_v61 = vrot.slane %v3982_v63, %v7068_v5 }
 0x3e4   : > { %v5588_v19 = vpop.permute.xlu0 %5587  ;;  %v3796_v20 = vcombine.low %v3757_v57, %v3789_v44  ;;  %v11372_v0 = vcombine.low %v11370_v35, %v11371_v6  ;;  %v3797_v47 = vcombine.high %v3757_v57, %v3789_v44  ;;  %v3997_v44 = vrot.slane %v3983_v15, %v7068_v5 }
 0x3e5   : > { %v5576_v10 = vpop.permute.xlu1 %5575 }
 0x3e6   : > { %5819 = vrot.lane.b32.xlu0 %v3790_v39, %s11205_s6  ;;  %v6333_v58 = vsel %vm11359_vm11, %v6332_v7, %v5576_v10  ;;  %vm11364_vm11 = vcmask 719872   ;;  %s11369_s6 = smov 82   ;;  %v3870_v45 = vrot.slane %v11372_v0, %v8473_v48  ;;  %v3793_v39 = vcombine.high %v3741_v49, %v3773_v38 }
 0x3e7   : > { %5807 = vrot.lane.b32.xlu1 %v3659_v25, %s11188_s14  ;;  %v6334_v27 = vsel %vm11363_vm10, %v6333_v58, %v5580_v59  ;;  %vm11367_vm10 = vcmask 736256   ;;  %v3909_v7 = vrot.slane %v3895_v32, %v8473_v48  ;;  %v11378_v10 = vcombine.high %v11370_v35, %v11371_v6 }
 0x3e8   : > { %v5596_v40 = vpop.permute.xlu0 %5595  ;;  %v3926_v22 = vcombine.low %v3870_v45, %v3902_v33  ;;  %v3911_v38 = vcombine.high %v3845_v53, %v3861_v43 }
 0x3e9   : > { %v5584_v31 = vpop.permute.xlu1 %5583  ;;  %v3877_v25 = vrot.slane %v11378_v10, %v8473_v48 }
 0x3ea   : > { %5827 = vrot.lane.b32.xlu0 %v3792_v37, %s11208_s19  ;;  %v6335_v46 = vsel %vm11364_vm11, %v6334_v27, %v5584_v31  ;;  %s11366_s19 = smov 88   ;;  %vm11368_vm11 = vcmask 752640   ;;  %v11385_v31 = vld [vmem:[#allocation97_spill] sm:$0xff] }
 0x3eb   : > { %5815 = vrot.lane.b32.xlu1 %v3661_v30, %s11193_s20  ;;  %v6336_v3 = vsel %vm11367_vm10, %v6335_v46, %v5588_v19  ;;  %v3910_v19 = vcombine.low %v3845_v53, %v3861_v43  ;;  %vm11374_vm10 = vcmask 769024   ;;  %v3928_v24 = vcombine.low %v3877_v25, %v3909_v7  ;;  %v11386_v30 = vld [vmem:[#allocation99_spill] sm:$0xff] }
 0x3ec   : > { %v5604_v62 = vpop.permute.xlu0 %5603  ;;  %v11387_v11 = vcombine.low %v11385_v31, %v11386_v30  ;;  %v11392_v51 = vcombine.high %v11385_v31, %v11386_v30 }
 0x3ed   : > { %v5592_v59 = vpop.permute.xlu1 %5591  ;;  %v3918_v27 = vrot.slane %v3910_v19, %v8473_v48 }
 0x3ee   : > { %5835 = vrot.lane.b32.xlu0 %v3794_v23, %s11366_s19  ;;  %v6337_v28 = vsel %vm11368_vm11, %v6336_v3, %v5592_v59  ;;  %s11373_s19 = smov 92   ;;  %vm11376_vm11 = vcmask 785408   ;;  %v3886_v46 = vrot.slane %v11387_v11, %v8473_v48 }
 0x3ef   : > { %5823 = vrot.lane.b32.xlu1 %v3791_v21, %s11369_s6  ;;  %v6338_v26 = vsel %vm11374_vm10, %v6337_v28, %v5596_v40  ;;  %v11380_v40 = vld [vmem:[#allocation134_spill] sm:$0xff]  ;;  %vm11382_vm10 = vcmask 801792   ;;  %v3925_v21 = vrot.slane %v3911_v38, %v8473_v48  ;;  %v3893_v28 = vrot.slane %v11392_v51, %v8473_v48 }
 0x3f0   : > { %v5612_v12 = vpop.permute.xlu0 %5611  ;;  %v3966_v58 = vcombine.low %v11380_v40, %v11379_v56  ;;  %v3930_v59 = vcombine.low %v3886_v46, %v3918_v27  ;;  %v3967_v32 = vcombine.high %v11380_v40, %v11379_v56 }
 0x3f1   : > { %v5600_v16 = vpop.permute.xlu1 %5599  ;;  %v3932_v0 = vcombine.low %v3893_v28, %v3925_v21 }
 0x3f2   : > { %5843 = vrot.lane.b32.xlu0 %v3796_v20, %s11373_s19  ;;  %v6339_v9 = vsel %vm11376_vm11, %v6338_v26, %v5600_v16  ;;  %s11381_s19 = smov 96   ;;  %vm11383_vm11 = vcmask 818176   ;;  %v3974_v23 = vrot.slane %v3966_v58, %v7068_v5  ;;  %v3927_v20 = vcombine.high %v3870_v45, %v3902_v33  ;;  %v11397_v16 = vld [vmem:[#allocation37_spill] sm:$0xff] }
 0x3f3   : > { %5831 = vrot.lane.b32.xlu1 %v3793_v39, %s11377_s11  ;;  %v6340_v49 = vsel %vm11382_vm10, %v6339_v9, %v5604_v62  ;;  %s11384_s11 = smov 90   ;;  %vm11389_vm10 = vcmask 834560   ;;  %v3981_v26 = vrot.slane %v3967_v32, %v7068_v5  ;;  %v11398_v39 = vld [vmem:[#allocation54_spill] sm:$0xff]  ;;  %v3929_v9 = vcombine.high %v3877_v25, %v3909_v7 }
 0x3f4   : > { %v5620_v14 = vpop.permute.xlu0 %5619  ;;  %v4030_v4 = vcombine.low %v3974_v23, %v3990_v61  ;;  %v4031_v53 = vcombine.high %v3974_v23, %v3990_v61  ;;  %v11399_v8 = vcombine.low %v11397_v16, %v11398_v39  ;;  %v11407_v61 = vld [vmem:[#allocation135_spill] sm:$0xff] }
 0x3f5   : > { %v5608_v37 = vpop.permute.xlu1 %5607  ;;  %v4047_v7 = vcombine.high %v3981_v26, %v3997_v44 }
 0x3f6   : > { %5851 = vrot.lane.b32.xlu0 %v3926_v22, %s11381_s19  ;;  %v6341_v34 = vsel %vm11383_vm11, %v6340_v49, %v5608_v37  ;;  %s11388_s19 = smov 100   ;;  %vm11390_vm11 = vcmask 850944   ;;  %v4038_v19 = vrot.slane %v4030_v4, %v8473_v48  ;;  %v4006_v63 = vrot.slane %v11399_v8, %v8473_v48  ;;  %v11402_v22 = vld [vmem:[#allocation160_spill] sm:$0xff] }
 0x3f7   : > { %5839 = vrot.lane.b32.xlu1 %v3795_v54, %s11384_s11  ;;  %v6342_v52 = vsel %vm11389_vm10, %v6341_v34, %v5612_v12  ;;  %s11391_s11 = smov 94   ;;  %vm11394_vm10 = vcmask 867328   ;;  %v4118_v10 = vcombine.low %v11402_v22, %v8713_v60  ;;  %v4045_v38 = vrot.slane %v4031_v53, %v8473_v48  ;;  %v11406_v54 = vld [vmem:[#allocation189_spill] sm:$0xff] }
 0x3f8   : > { %v5628_v36 = vpop.permute.xlu0 %5627  ;;  %v4062_v58 = vcombine.low %v4006_v63, %v4038_v19  ;;  %v11405_v49 = vcombine.high %v11397_v16, %v11398_v39 }
 0x3f9   : > { %v5616_v62 = vpop.permute.xlu1 %5615  ;;  %v4126_v31 = vrot.slane %v4118_v10, %v7068_v5  ;;  %v11423_v10 = vld [vmem:[#allocation162_spill] sm:$0xff] }
 0x3fa   : > { %5859 = vrot.lane.b32.xlu0 %v3928_v24, %s11388_s19  ;;  %v6343_v3 = vsel %vm11390_vm11, %v6342_v52, %v5616_v62  ;;  %s11393_s19 = smov 104   ;;  %vm11395_vm11 = vcmask 883712   ;;  %v4013_v37 = vrot.slane %v11405_v49, %v8473_v48  ;;  %v3931_v24 = vcombine.high %v3886_v46, %v3918_v27  ;;  %v11412_v52 = vld [vmem:[#allocation36_spill] sm:$0xff]  ;;  %v11413_v62 = vld [vmem:[#allocation103_spill] sm:$0xff] }
 0x3fb   : > { %5847 = vrot.lane.b32.xlu1 %v3797_v47, %s11391_s11  ;;  %v6344_v57 = vsel %vm11394_vm10, %v6343_v3, %v5620_v14  ;;  %s11396_s11 = smov 98   ;;  %v4046_v14 = vcombine.low %v3981_v26, %v3997_v44  ;;  %vm11401_vm10 = vcmask 900096   ;;  %v11414_v47 = vcombine.low %v11412_v52, %v11413_v62 }
 0x3fc   : > { %v5636_v43 = vpop.permute.xlu0 %5635  ;;  %v4064_v23 = vcombine.low %v4013_v37, %v4045_v38  ;;  %v4119_v27 = vcombine.high %v11402_v22, %v8713_v60  ;;  %v4103_v60 = vcombine.high %v11407_v61, %v11406_v54 }
 0x3fd   : > { %v5624_v12 = vpop.permute.xlu1 %5623  ;;  %v4054_v15 = vrot.slane %v4046_v14, %v8473_v48  ;;  %v4022_v4 = vrot.slane %v11414_v47, %v8473_v48 }
 0x3fe   : > { %5867 = vrot.lane.b32.xlu0 %v3930_v59, %s11393_s19  ;;  %v6345_v6 = vsel %vm11395_vm11, %v6344_v57, %v5624_v12  ;;  %s11400_s19 = smov 108   ;;  %vm11403_vm11 = vcmask 916480   ;;  %v3933_v59 = vcombine.high %v3893_v28, %v3925_v21  ;;  %v4061_v12 = vrot.slane %v4047_v7, %v8473_v48 }
 0x3ff   : > { %5855 = vrot.lane.b32.xlu1 %v3927_v20, %s11396_s11  ;;  %v6346_v33 = vsel %vm11401_vm10, %v6345_v6, %v5628_v36  ;;  %s11404_s11 = smov 102   ;;  %v4102_v36 = vcombine.low %v11407_v61, %v11406_v54  ;;  %vm11409_vm10 = vcmask 932864   ;;  %v4066_v57 = vcombine.low %v4022_v4, %v4054_v15 }
 0x400   : > { %v5644_v35 = vpop.permute.xlu0 %5643  ;;  %v11417_v20 = vcombine.high %v11412_v52, %v11413_v62  ;;  %v4133_v21 = vrot.slane %v4119_v27, %v7068_v5  ;;  %v4063_v6 = vcombine.high %v4006_v63, %v4038_v19  ;;  %v4117_v19 = vrot.slane %v4103_v60, %v7068_v5  ;;  %v11431_v27 = vld [vmem:[#allocation104_spill] sm:$0xff] }
 0x401   : > { %v5632_v45 = vpop.permute.xlu1 %5631  ;;  %v4110_v3 = vrot.slane %v4102_v36, %v7068_v5  ;;  %v3110_v63 = vcombine.low %v9333_v50, %v9322_v13 }
 0x402   : > { %5875 = vrot.lane.b32.xlu0 %v3932_v0, %s11400_s19  ;;  %v6347_v40 = vsel %vm11403_vm11, %v6346_v33, %v5632_v45  ;;  %s11408_s19 = smov 112   ;;  %vm11410_vm11 = vcmask 949248   ;;  %v4029_v53 = vrot.slane %v11417_v20, %v8473_v48  ;;  %v11419_v33 = vld [vmem:[#allocation39_spill] sm:$0xff]  ;;  %v4182_v49 = vcombine.low %v4117_v19, %v4133_v21 }
 0x403   : > { %5863 = vrot.lane.b32.xlu1 %v3929_v9, %s11404_s11  ;;  %v6348_v25 = vsel %vm11409_vm10, %v6347_v40, %v5636_v43  ;;  %s11411_s11 = smov 106   ;;  %vm11415_vm10 = vcmask 965632   ;;  %v4166_v32 = vcombine.low %v4110_v3, %v4126_v31  ;;  %v4167_v0 = vcombine.high %v4110_v3, %v4126_v31  ;;  %v11420_v45 = vld [vmem:[#allocation55_spill] sm:$0xff]  ;;  %v11430_v3 = vld [vmem:[#allocation38_spill] sm:$0xff] }
 0x404   : > { %v5652_v56 = vpop.permute.xlu0 %5651  ;;  %v4068_v8 = vcombine.low %v4029_v53, %v4061_v12  ;;  %v11421_v9 = vcombine.low %v11419_v33, %v11420_v45  ;;  %v11425_v13 = vcombine.high %v11419_v33, %v11420_v45  ;;  %v4190_v47 = vrot.slane %v4182_v49, %v8473_v48  ;;  %v11438_v45 = vld [vmem:[#allocation41_spill] sm:$0xff] }
 0x405   : > { %v5640_v34 = vpop.permute.xlu1 %5639  ;;  %v9684_v26 = vrot.slane %v4166_v32, %v8473_v48  ;;  %v4181_v7 = vrot.slane %v4167_v0, %v8473_v48 }
 0x406   : > { %5883 = vrot.lane.b32.xlu0 %v4062_v58, %s11408_s19  ;;  %v6349_v11 = vsel %vm11410_vm11, %v6348_v25, %v5640_v34  ;;  %s11416_s19 = smov 110   ;;  %v9693_v22 = vrot.slane %v11421_v9, %v8473_v48  ;;  %v4065_v58 = vcombine.high %v4013_v37, %v4045_v38  ;;  %v4149_v50 = vrot.slane %v11425_v13, %v8473_v48  ;;  %v11426_v25 = vld [vmem:[#allocation192_spill] sm:$0xff]  ;;  %v11427_v34 = vld [vmem:[#allocation137_spill] sm:$0xff] }
 0x407   : > { %5871 = vrot.lane.b32.xlu1 %v3931_v24, %s11411_s11  ;;  %v6350_v46 = vsel %vm11415_vm10, %v6349_v11, %v5644_v35  ;;  %v4238_v24 = vcombine.low %v11427_v34, %v11426_v25  ;;  %v4183_v38 = vcombine.high %v4117_v19, %v4133_v21  ;;  %v11439_v9 = vld [vmem:[#allocation56_spill] sm:$0xff]  ;;  %vm11447_vm11 = vcmask 179200  }
 0x408   : > { %v5660_v30 = vpop.permute.xlu0 %5659  ;;  %v4199_v36 = vcombine.high %v9693_v22, %v9684_v26  ;;  %v4201_v62 = vcombine.high %v4149_v50, %v4181_v7  ;;  %v4200_v0 = vcombine.low %v4149_v50, %v4181_v7  ;;  %v11440_v19 = vcombine.low %v11438_v45, %v11439_v9 }
 0x409   : > { %v5648_v43 = vpop.permute.xlu1 %5647  ;;  %v4197_v21 = vrot.slane %v4183_v38, %v8473_v48  ;;  %v11446_v38 = vld [vmem:[#allocation139_spill] sm:$0xff]  ;;  %vm11452_vm10 = vcmask 195584  }
 0x40a   : > { %5891 = vrot.lane.b32.xlu0 %v4064_v23, %s11249_s21  ;;  %v6351_v44 = vsel %vm6284_vm12, %v6350_v46, %v5648_v43  ;;  %s11418_s21 = smov 114   ;;  %v11432_v46 = vcombine.low %v11430_v3, %v11431_v27 }
 0x40b   : > { %5879 = vrot.lane.b32.xlu1 %v3933_v59, %s11416_s19  ;;  %v6352_v28 = vsel %vm6286_vm15, %v6351_v44, %v5652_v56  ;;  %v4254_v56 = vcombine.low %v11423_v10, %v8734_v1  ;;  %v4246_v59 = vrot.slane %v4238_v24, %v7068_v5  ;;  %v11445_v24 = vld [vmem:[#allocation194_spill] sm:$0xff] }
 0x40c   : > { %v5668_v51 = vpop.permute.xlu0 %5667  ;;  %v4158_v43 = vrot.slane %v11432_v46, %v8473_v48  ;;  %v11449_v46 = vld [vmem:[#allocation40_spill] sm:$0xff] }
 0x40d   : > { %v5656_v35 = vpop.permute.xlu1 %5655  ;;  %v4262_v11 = vrot.slane %v4254_v56, %v7068_v5  ;;  %v11442_v56 = vld [vmem:[#allocation164_spill] sm:$0xff] }
 0x40e   : > { %5899 = vrot.lane.b32.xlu0 %v4066_v57, %s11257_s1  ;;  %v6353_v39 = vsel %vm6288_vm13, %v6352_v28, %v5656_v35  ;;  %s11422_s1 = smov 124   ;;  %v4203_v60 = vcombine.high %v4158_v43, %v4190_v47  ;;  %v11435_v28 = vcombine.high %v11430_v3, %v11431_v27 }
 0x40f   : > { %v6354_v14 = vsel %vm6290_vm14, %v6353_v39, %v5660_v30  ;;  %5887 = vrot.lane.b32.xlu1 %v4063_v6, %s11418_s21  ;;  %s11424_s21 = smov 118   ;;  %v4067_v30 = vcombine.high %v4022_v4, %v4054_v15  ;;  %v4255_v15 = vcombine.high %v11423_v10, %v8734_v1  ;;  %v4302_v44 = vcombine.low %v4246_v59, %v4262_v11 }
 0x410   : > { %v5676_v16 = vpop.permute.xlu0 %5675  ;;  %6482 = vst [vmem:[%s9296_s7 + $0x8] sm:$0xff] %v6354_v14  ;;  %s11429_s7 = smov 122   ;;  %v4165_v35 = vrot.slane %v11435_v28, %v8473_v48  ;;  %v4239_v1 = vcombine.high %v11427_v34, %v11426_v25  ;;  %v11444_v25 = vcombine.high %v11438_v45, %v11439_v9 }
 0x411   : > { %v5664_v40 = vpop.permute.xlu1 %5663  ;;  %v4310_v33 = vrot.slane %v4302_v44, %v8473_v48 }
 0x412   : > { %5907 = vrot.lane.b32.xlu0 %v4068_v8, %s11422_s1  ;;  %v6355_v61 = vsel %vm6166_vm0, %v3110_v63, %v5664_v40  ;;  %s11428_s1 = smov 2   ;;  %v4205_v14 = vcombine.high %v4165_v35, %v4197_v21  ;;  %v4278_v63 = vrot.slane %v11440_v19, %v8473_v48  ;;  %v4253_v10 = vrot.slane %v4239_v1, %v7068_v5  ;;  %v11459_v19 = vld [vmem:[#allocation43_spill] sm:$0xff] }
 0x413   : > { %5895 = vrot.lane.b32.xlu1 %v4065_v58, %s11424_s21  ;;  %v6356_v37 = vsel %vm6168_vm1, %v6355_v61, %v5668_v51  ;;  %v4069_v51 = vcombine.high %v4029_v53, %v4061_v12  ;;  %v4269_v12 = vrot.slane %v4255_v15, %v7068_v5  ;;  %v4390_v40 = vcombine.low %v11442_v56, %v8751_v2 }
 0x414   : > { %v5684_v54 = vpop.permute.xlu0 %5683  ;;  %v4335_v13 = vcombine.high %v4278_v63, %v4310_v33  ;;  %v4285_v34 = vrot.slane %v11444_v25, %v8473_v48  ;;  %v4375_v1 = vcombine.high %v11446_v38, %v11445_v24 }
 0x415   : > { %v5672_v31 = vpop.permute.xlu1 %5671  ;;  %v4318_v61 = vcombine.low %v4253_v10, %v4269_v12 }
 0x416   : > { %5915 = vrot.lane.b32.xlu0 %v4199_v36, %s11428_s1  ;;  %v6357_v52 = vsel %vm6170_vm2, %v6356_v37, %v5672_v31  ;;  %s11433_s1 = smov 6   ;;  %v4374_v37 = vcombine.low %v11446_v38, %v11445_v24  ;;  %v4319_v31 = vcombine.high %v4253_v10, %v4269_v12  ;;  %v4389_v9 = vrot.slane %v4375_v1, %v7068_v5  ;;  %v11467_v38 = vld [vmem:[#allocation19_spill] sm:$0xff] }
 0x417   : > { %5903 = vrot.lane.b32.xlu1 %v4067_v30, %s11429_s7  ;;  %v6358_v4 = vsel %vm6172_vm3, %v6357_v52, %v5676_v16  ;;  %s11434_s7 = smov 126   ;;  %v4303_v16 = vcombine.high %v4246_v59, %v4262_v11  ;;  %v4398_v52 = vrot.slane %v4390_v40, %v7068_v5  ;;  %v4326_v27 = vrot.slane %v4318_v61, %v8473_v48  ;;  %v11463_v61 = vld [vmem:[#allocation166_spill] sm:$0xff] }
 0x418   : > { %v5692_v23 = vpop.permute.xlu0 %5691 }
 0x419   : > { %v5680_v32 = vpop.permute.xlu1 %5679  ;;  %v4317_v50 = vrot.slane %v4303_v16, %v8473_v48 }
 0x41a   : > { %5923 = vrot.lane.b32.xlu0 %v4201_v62, %s11433_s1  ;;  %v6359_v20 = vsel %vm6174_vm4, %v6358_v4, %v5680_v32  ;;  %s11436_s1 = smov 10   ;;  %v4382_v4 = vrot.slane %v4374_v37, %v7068_v5  ;;  %v4391_v32 = vcombine.high %v11442_v56, %v8751_v2  ;;  %v11468_v37 = vld [vmem:[#allocation141_spill] sm:$0xff] }
 0x41b   : > { %5911 = vrot.lane.b32.xlu1 %v4069_v51, %s11434_s7  ;;  %v6360_v53 = vsel %vm6176_vm5, %v6359_v20, %v5684_v54  ;;  %s11437_s7 = smov 4   ;;  %v4202_v54 = vcombine.low %v4158_v43, %v4190_v47  ;;  %v4337_v3 = vcombine.high %v4285_v34, %v4317_v50  ;;  %v11450_v43 = vld [vmem:[#allocation106_spill] sm:$0xff]  ;;  %v4336_v16 = vcombine.low %v4285_v34, %v4317_v50 }
 0x41c   : > { %v5700_v57 = vpop.permute.xlu0 %5699  ;;  %v11451_v59 = vcombine.low %v11449_v46, %v11450_v43  ;;  %v4438_v20 = vcombine.low %v4382_v4, %v4398_v52  ;;  %v11455_v2 = vcombine.high %v11449_v46, %v11450_v43  ;;  %v11472_v43 = vld [vmem:[#allocation42_spill] sm:$0xff] }
 0x41d   : > { %v5688_v6 = vpop.permute.xlu1 %5687 }
 0x41e   : > { %5931 = vrot.lane.b32.xlu0 %v4203_v60, %s11436_s1  ;;  %v6361_v8 = vsel %vm6178_vm6, %v6360_v53, %v5688_v6  ;;  %s11441_s1 = smov 14   ;;  %v4294_v15 = vrot.slane %v11451_v59, %v8473_v48  ;;  %v4301_v12 = vrot.slane %v11455_v2, %v8473_v48  ;;  %v4405_v53 = vrot.slane %v4391_v32, %v7068_v5  ;;  %v11473_v59 = vld [vmem:[#allocation109_spill] sm:$0xff] }
 0x41f   : > { %5919 = vrot.lane.b32.xlu1 %v4200_v0, %s11437_s7  ;;  %v6362_v58 = vsel %vm6180_vm7, %v6361_v8, %v5692_v23  ;;  %s11443_s7 = smov 8   ;;  %v4204_v23 = vcombine.low %v4165_v35, %v4197_v21  ;;  %v4333_v35 = vrot.slane %v4319_v31, %v8473_v48  ;;  %v4446_v45 = vrot.slane %v4438_v20, %v8473_v48 }
 0x420   : > { %v5708_v39 = vpop.permute.xlu0 %5707  ;;  %v4339_v28 = vcombine.high %v4294_v15, %v4326_v27  ;;  %v4454_v40 = vcombine.low %v4389_v9, %v4405_v53  ;;  %v4510_v31 = vcombine.low %v11468_v37, %v11467_v38  ;;  %v11478_v2 = vcombine.high %v11472_v43, %v11473_v59 }
 0x421   : > { %v5696_v49 = vpop.permute.xlu1 %5695 }
 0x422   : > { %5939 = vrot.lane.b32.xlu0 %v4205_v14, %s11441_s1  ;;  %v6363_v7 = vsel %vm6182_vm8, %v6362_v58, %v5696_v49  ;;  %s11448_s1 = smov 12   ;;  %v4462_v46 = vrot.slane %v4454_v40, %v8473_v48  ;;  %v4518_v32 = vrot.slane %v4510_v31, %v7068_v5  ;;  %v11485_v40 = vld [vmem:[#allocation168_spill] sm:$0xff] }
 0x423   : > { %5927 = vrot.lane.b32.xlu1 %v4202_v54, %s11443_s7  ;;  %v6364_v30 = vsel %vm10740_vm9, %v6363_v7, %v5700_v57  ;;  %v4334_v57 = vcombine.low %v4278_v63, %v4310_v33  ;;  %v4341_v33 = vcombine.high %v4301_v12, %v4333_v35  ;;  %v11460_v63 = vld [vmem:[#allocation58_spill] sm:$0xff]  ;;  %v4338_v54 = vcombine.low %v4294_v15, %v4326_v27  ;;  %s11641_s7 = sld [smem:[#allocation18_spill]] }
 0x424   : > { %v5716_v36 = vpop.permute.xlu0 %5715  ;;  %v11461_v10 = vcombine.low %v11459_v19, %v11460_v63  ;;  %v11466_v34 = vcombine.high %v11459_v19, %v11460_v63  ;;  %v11474_v15 = vcombine.low %v11472_v43, %v11473_v59  ;;  %v11483_v19 = vld [vmem:[#allocation113_spill] sm:$0xff]  ;;  %v11493_v43 = vld [vmem:[#allocation44_spill] sm:$0xff]  ;;  %v11494_v59 = vld [vmem:[#allocation114_spill] sm:$0xff]  ;;  %vm11577_vm9 = vcmask 949248  }
 0x425   : > { %v5704_v11 = vpop.permute.xlu1 %5703 }
 0x426   : > { %5947 = vrot.lane.b32.xlu0 %v4335_v13, %s11287_s26  ;;  %v6365_v47 = vsel %vm11447_vm11, %v6364_v30, %v5704_v11  ;;  %vm11453_vm11 = vcmask 211968   ;;  %s11454_s26 = smov 16   ;;  %v4414_v56 = vrot.slane %v11461_v10, %v8473_v48  ;;  %v4421_v24 = vrot.slane %v11466_v34, %v8473_v48 }
 0x427   : > { %5935 = vrot.lane.b32.xlu1 %v4204_v23, %s11448_s1  ;;  %v6366_v51 = vsel %vm11452_vm10, %v6365_v47, %v5708_v39  ;;  %vm11456_vm10 = vcmask 228352   ;;  %v4439_v39 = vcombine.high %v4382_v4, %v4398_v52  ;;  %v4455_v30 = vcombine.high %v4389_v9, %v4405_v53  ;;  %v11482_v9 = vld [vmem:[#allocation45_spill] sm:$0xff]  ;;  %s11643_s1 = sld [smem:[#allocation15_spill]] }
 0x428   : > { %v5724_v62 = vpop.permute.xlu0 %5723  ;;  %v4471_v50 = vcombine.high %v4414_v56, %v4446_v45  ;;  %v4340_v52 = vcombine.low %v4301_v12, %v4333_v35  ;;  %v4430_v4 = vrot.slane %v11474_v15, %v8473_v48  ;;  %v4470_v20 = vcombine.low %v4414_v56, %v4446_v45 }
 0x429   : > { %v5712_v44 = vpop.permute.xlu1 %5711  ;;  %v4453_v25 = vrot.slane %v4439_v39, %v8473_v48  ;;  %v4469_v1 = vrot.slane %v4455_v30, %v8473_v48  ;;  %v4437_v12 = vrot.slane %v11478_v2, %v8473_v48  ;;  %v11484_v63 = vcombine.low %v11482_v9, %v11483_v19 }
 0x42a   : > { %5955 = vrot.lane.b32.xlu0 %v4337_v3, %s11294_s9  ;;  %v6367_v21 = vsel %vm11453_vm11, %v6366_v51, %v5712_v44  ;;  %vm11457_vm11 = vcmask 244736   ;;  %s11458_s9 = smov 20   ;;  %v4527_v51 = vcombine.high %v11463_v61, %v8773_v17  ;;  %v4475_v35 = vcombine.high %v4430_v4, %v4462_v46 }
 0x42b   : > { %5943 = vrot.lane.b32.xlu1 %v4334_v57, %s11454_s26  ;;  %v6368_v6 = vsel %vm11456_vm10, %v6367_v21, %v5716_v36  ;;  %vm11462_vm10 = vcmask 261120   ;;  %v4526_v36 = vcombine.low %v11463_v61, %v8773_v17  ;;  %v4473_v27 = vcombine.high %v4421_v24, %v4453_v25 }
 0x42c   : > { %v5732_v60 = vpop.permute.xlu0 %5731  ;;  %v4511_v17 = vcombine.high %v11468_v37, %v11467_v38  ;;  %v4541_v53 = vrot.slane %v4527_v51, %v7068_v5  ;;  %v4550_v10 = vrot.slane %v11484_v63, %v8473_v48  ;;  %v4474_v61 = vcombine.low %v4430_v4, %v4462_v46  ;;  %v11489_v38 = vld [vmem:[#allocation197_spill] sm:$0xff]  ;;  %v11490_v37 = vld [vmem:[#allocation143_spill] sm:$0xff] }
 0x42d   : > { %v5720_v0 = vpop.permute.xlu1 %5719  ;;  %v11488_v34 = vcombine.high %v11482_v9, %v11483_v19  ;;  %v4646_v31 = vcombine.low %v11490_v37, %v11489_v38  ;;  %v11495_v15 = vcombine.low %v11493_v43, %v11494_v59  ;;  %v4663_v51 = vcombine.high %v11485_v40, %v8789_v42  ;;  %v11502_v9 = vld [vmem:[#allocation60_spill] sm:$0xff]  ;;  %p11645_p9 = scmp.ne.s32.totalorder %s11643_s1, 0 }
 0x42e   : > { %5963 = vrot.lane.b32.xlu0 %v4339_v28, %s11300_s4  ;;  %v6369_v14 = vsel %vm11457_vm11, %v6368_v6, %v5720_v0  ;;  %vm11464_vm11 = vcmask 277504   ;;  %s11465_s4 = smov 24   ;;  %v4525_v56 = vrot.slane %v4511_v17, %v7068_v5  ;;  %v11498_v2 = vcombine.high %v11493_v43, %v11494_v59 }
 0x42f   : > { %5951 = vrot.lane.b32.xlu1 %v4336_v16, %s11458_s9  ;;  %v6370_v58 = vsel %vm11462_vm10, %v6369_v14, %v5724_v62  ;;  %vm11469_vm10 = vcmask 293888   ;;  %v4534_v62 = vrot.slane %v4526_v36, %v7068_v5  ;;  %v4472_v16 = vcombine.low %v4421_v24, %v4453_v25 }
 0x430   : > { %v5740_v8 = vpop.permute.xlu0 %5739  ;;  %v4590_v36 = vcombine.low %v4525_v56, %v4541_v53  ;;  %v4557_v24 = vrot.slane %v11488_v34, %v8473_v48  ;;  %v4591_v30 = vcombine.high %v4525_v56, %v4541_v53  ;;  %v4566_v4 = vrot.slane %v11495_v15, %v8473_v48  ;;  %v11504_v56 = vld [vmem:[#allocation170_spill] sm:$0xff] }
 0x431   : > { %v5728_v49 = vpop.permute.xlu1 %5727  ;;  %v4575_v39 = vcombine.high %v4518_v32, %v4534_v62  ;;  %v4677_v17 = vrot.slane %v4663_v51, %v7068_v5 }
 0x432   : > { %5971 = vrot.lane.b32.xlu0 %v4341_v33, %s11306_s25  ;;  %v6371_v13 = vsel %vm11464_vm11, %v6370_v58, %v5728_v49  ;;  %vm11470_vm11 = vcmask 310272   ;;  %s11471_s25 = smov 28   ;;  %v4477_v33 = vcombine.high %v4437_v12, %v4469_v1  ;;  %v4662_v58 = vcombine.low %v11485_v40, %v8789_v42 }
 0x433   : > { %5959 = vrot.lane.b32.xlu1 %v4338_v54, %s11465_s4  ;;  %v6372_v11 = vsel %vm11469_vm10, %v6371_v13, %v5732_v60  ;;  %vm11475_vm10 = vcmask 326656   ;;  %v4574_v60 = vcombine.low %v4518_v32, %v4534_v62  ;;  %v4589_v25 = vrot.slane %v4575_v39, %v8473_v48 }
 0x434   : > { %v5748_v7 = vpop.permute.xlu0 %5747  ;;  %v4670_v62 = vrot.slane %v4662_v58, %v7068_v5  ;;  %v4598_v46 = vrot.slane %v4590_v36, %v8473_v48  ;;  %v4654_v32 = vrot.slane %v4646_v31, %v7068_v5  ;;  %v4647_v42 = vcombine.high %v11490_v37, %v11489_v38 }
 0x435   : > { %v5736_v23 = vpop.permute.xlu1 %5735  ;;  %v4582_v45 = vrot.slane %v4574_v60, %v8473_v48  ;;  %v4798_v40 = vcombine.low %v11504_v56, %v8810_v41 }
 0x436   : > { %5979 = vrot.lane.b32.xlu0 %v4471_v50, %s11310_s17  ;;  %v6373_v3 = vsel %vm11470_vm11, %v6372_v11, %v5736_v23  ;;  %vm11476_vm11 = vcmask 343040   ;;  %s11477_s17 = smov 32   ;;  %v4710_v60 = vcombine.low %v4654_v32, %v4670_v62 }
 0x437   : > { %5967 = vrot.lane.b32.xlu1 %v4340_v52, %s11471_s25  ;;  %v6374_v44 = vsel %vm11475_vm10, %v6373_v3, %v5740_v8  ;;  %vm11479_vm10 = vcmask 359424   ;;  %v4607_v50 = vcombine.high %v4550_v10, %v4582_v45  ;;  %v4476_v52 = vcombine.low %v4437_v12, %v4469_v1 }
 0x438   : > { %v5756_v47 = vpop.permute.xlu0 %5755  ;;  %v4605_v1 = vrot.slane %v4591_v30, %v8473_v48  ;;  %v4573_v12 = vrot.slane %v11498_v2, %v8473_v48 }
 0x439   : > { %v5744_v57 = vpop.permute.xlu1 %5743 }
 0x43a   : > { %5987 = vrot.lane.b32.xlu0 %v4473_v27, %s11147_s3  ;;  %v6375_v28 = vsel %vm11476_vm11, %v6374_v44, %v5744_v57  ;;  %vm11480_vm11 = vcmask 375808   ;;  %s11481_s3 = smov 36   ;;  %v4609_v27 = vcombine.high %v4557_v24, %v4589_v25 }
 0x43b   : > { %5975 = vrot.lane.b32.xlu1 %v4470_v20, %s11477_s17  ;;  %v6376_v6 = vsel %vm11479_vm10, %v6375_v28, %v5748_v7  ;;  %vm11486_vm10 = vcmask 392192   ;;  %v4606_v20 = vcombine.low %v4550_v10, %v4582_v45  ;;  %v11501_v45 = vld [vmem:[#allocation47_spill] sm:$0xff]  ;;  %v4661_v10 = vrot.slane %v4647_v42, %v7068_v5  ;;  %s11644_s17 = sld [smem:[#allocation201_spill]] }
 0x43c   : > { %v5764_v21 = vpop.permute.xlu0 %5763  ;;  %v11503_v19 = vcombine.low %v11501_v45, %v11502_v9 }
 0x43d   : > { %v5752_v0 = vpop.permute.xlu1 %5751  ;;  %v4727_v37 = vcombine.high %v4661_v10, %v4677_v17 }
 0x43e   : > { %5995 = vrot.lane.b32.xlu0 %v4475_v35, %s11150_s23  ;;  %v6377_v14 = vsel %vm11480_vm11, %v6376_v6, %v5752_v0  ;;  %vm11487_vm11 = vcmask 408576   ;;  %v4611_v35 = vcombine.high %v4566_v4, %v4598_v46  ;;  %v4608_v0 = vcombine.low %v4557_v24, %v4589_v25  ;;  %v11508_v24 = vld [vmem:[#allocation145_spill] sm:$0xff]  ;;  %s11590_s23 = smov 124  }
 0x43f   : > { %5983 = vrot.lane.b32.xlu1 %v4472_v16, %s11481_s3  ;;  %v6378_v49 = vsel %vm11486_vm10, %v6377_v14, %v5756_v47  ;;  %vm11491_vm10 = vcmask 424960   ;;  %v4711_v16 = vcombine.high %v4654_v32, %v4670_v62  ;;  %v4613_v14 = vcombine.high %v4573_v12, %v4605_v1 }
 0x440   : > { %v5772_v8 = vpop.permute.xlu0 %5771  ;;  %v4686_v63 = vrot.slane %v11503_v19, %v8473_v48  ;;  %v11507_v25 = vcombine.high %v11501_v45, %v11502_v9  ;;  %v4782_v38 = vcombine.low %v11508_v24, %v8521_v29 }
 0x441   : > { %v5760_v54 = vpop.permute.xlu1 %5759 }
 0x442   : > { %6003 = vrot.lane.b32.xlu0 %v4477_v33, %s11155_s15  ;;  %v6379_v13 = vsel %vm11487_vm11, %v6378_v49, %v5760_v54  ;;  %vm11492_vm11 = vcmask 441344   ;;  %v4718_v33 = vrot.slane %v4710_v60, %v8473_v48  ;;  %v4610_v54 = vcombine.low %v4566_v4, %v4598_v46  ;;  %v11512_v46 = vld [vmem:[#allocation118_spill] sm:$0xff]  ;;  %s11586_s15 = smov 122  }
 0x443   : > { %5991 = vrot.lane.b32.xlu1 %v4474_v61, %s11159_s16  ;;  %v6380_v11 = vsel %vm11491_vm10, %v6379_v13, %v5764_v21  ;;  %vm11496_vm10 = vcmask 457728   ;;  %v4726_v61 = vcombine.low %v4661_v10, %v4677_v17  ;;  %v4693_v34 = vrot.slane %v11507_v25, %v8473_v48  ;;  %s11588_s16 = smov 126  }
 0x444   : > { %v5780_v7 = vpop.permute.xlu0 %5779  ;;  %v4743_v13 = vcombine.high %v4686_v63, %v4718_v33  ;;  %v4790_v15 = vrot.slane %v4782_v38, %v7068_v5  ;;  %v4799_v4 = vcombine.high %v11504_v56, %v8810_v41  ;;  %v11523_v56 = vld [vmem:[#allocation172_spill] sm:$0xff] }
 0x445   : > { %v5768_v23 = vpop.permute.xlu1 %5767 }
 0x446   : > { %6011 = vrot.lane.b32.xlu0 %v4607_v50, %s11161_s13  ;;  %v6381_v3 = vsel %vm11492_vm11, %v6380_v11, %v5768_v23  ;;  %vm11497_vm11 = vcmask 474112   ;;  %v4725_v50 = vrot.slane %v4711_v16, %v8473_v48  ;;  %v4612_v11 = vcombine.low %v4573_v12, %v4605_v1  ;;  %s11584_s13 = smov 112  }
 0x447   : > { %5999 = vrot.lane.b32.xlu1 %v4476_v52, %s11162_s12  ;;  %v6382_v44 = vsel %vm11496_vm10, %v6381_v3, %v5772_v8  ;;  %vm11499_vm10 = vcmask 490496   ;;  %v4806_v23 = vrot.slane %v4798_v40, %v7068_v5  ;;  %v4734_v3 = vrot.slane %v4726_v61, %v8473_v48  ;;  %s11583_s12 = sld [smem:[#allocation199_spill]] }
 0x448   : > { %v5788_v47 = vpop.permute.xlu0 %5787  ;;  %v4813_v2 = vrot.slane %v4799_v4, %v7068_v5  ;;  %v4744_v17 = vcombine.low %v4693_v34, %v4725_v50  ;;  %v4934_v40 = vcombine.low %v11523_v56, %v8827_v55 }
 0x449   : > { %v5776_v57 = vpop.permute.xlu1 %5775 }
 0x44a   : > { %6019 = vrot.lane.b32.xlu0 %v4609_v27, %s11166_s2  ;;  %v6383_v28 = vsel %vm11497_vm11, %v6382_v44, %v5776_v57  ;;  %vm11500_vm11 = vcmask 506880   ;;  %v11511_v27 = vld [vmem:[#allocation46_spill] sm:$0xff]  ;;  %v4742_v44 = vcombine.low %v4686_v63, %v4718_v33  ;;  %v4846_v57 = vcombine.low %v4790_v15, %v4806_v23  ;;  %s11568_s2 = smov 100  }
 0x44b   : > { %6007 = vrot.lane.b32.xlu1 %v4606_v20, %s11167_s30  ;;  %v6384_v53 = vsel %vm11499_vm10, %v6383_v28, %v5780_v7  ;;  %vm11505_vm10 = vcmask 523264   ;;  %v11513_v43 = vcombine.low %v11511_v27, %v11512_v46  ;;  %v4741_v28 = vrot.slane %v4727_v37, %v8473_v48  ;;  %s11564_s30 = smov 96  }
 0x44c   : > { %v5796_v21 = vpop.permute.xlu0 %5795  ;;  %v11516_v41 = vcombine.high %v11511_v27, %v11512_v46  ;;  %v4854_v16 = vrot.slane %v4846_v57, %v8473_v48 }
 0x44d   : > { %v5784_v6 = vpop.permute.xlu1 %5783  ;;  %v4702_v59 = vrot.slane %v11513_v43, %v8473_v48  ;;  %v4935_v43 = vcombine.high %v11523_v56, %v8827_v55  ;;  %s6504_s9 = sshll.u32 %s11583_s12, 4  ;;  %s10142_s9 = int_to_ptr.vmem [resolvable:$true] %s6504_s9 }
 0x44e   : > { %6027 = vrot.lane.b32.xlu0 %v4611_v35, %s11169_s29  ;;  %v6385_v8 = vsel %vm11500_vm11, %v6384_v53, %v5784_v6  ;;  %vm11506_vm11 = vcmask 539648   ;;  %v4783_v35 = vcombine.high %v11508_v24, %v8521_v29  ;;  %v4709_v1 = vrot.slane %v11516_v41, %v8473_v48  ;;  %s11558_s29 = smov 102  }
 0x44f   : > { %6015 = vrot.lane.b32.xlu1 %v4608_v0, %s11170_s5  ;;  %v6386_v58 = vsel %vm11505_vm10, %v6385_v8, %v5788_v47  ;;  %vm11509_vm10 = vcmask 556032   ;;  %v4745_v47 = vcombine.high %v4693_v34, %v4725_v50  ;;  %v4847_v53 = vcombine.high %v4790_v15, %v4806_v23  ;;  %v11519_v8 = vld [vmem:[#allocation49_spill] sm:$0xff]  ;;  %v11527_v50 = vld [vmem:[#allocation147_spill] sm:$0xff]  ;;  %s11576_s5 = smov 114  }
 0x450   : > { %v5804_v39 = vpop.permute.xlu0 %5803  ;;  %v4749_v29 = vcombine.high %v4709_v1, %v4741_v28  ;;  %v4746_v10 = vcombine.low %v4702_v59, %v4734_v3  ;;  %v4748_v37 = vcombine.low %v4709_v1, %v4741_v28  ;;  %v4949_v28 = vrot.slane %v4935_v43, %v7068_v5 }
 0x451   : > { %v5792_v49 = vpop.permute.xlu1 %5791  ;;  %v4861_v61 = vrot.slane %v4847_v53, %v8473_v48 }
 0x452   : > { %6035 = vrot.lane.b32.xlu0 %v4613_v14, %s11174_s27  ;;  %v6387_v7 = vsel %vm11506_vm11, %v6386_v58, %v5792_v49  ;;  %vm11510_vm11 = vcmask 572416   ;;  %v11520_v14 = vld [vmem:[#allocation62_spill] sm:$0xff]  ;;  %s11557_s27 = smov 92  }
 0x453   : > { %6023 = vrot.lane.b32.xlu1 %v4610_v54, %s11178_s18  ;;  %v6388_v31 = vsel %vm11509_vm10, %v6387_v7, %v5796_v21  ;;  %vm11514_vm10 = vcmask 588800   ;;  %v4747_v21 = vcombine.high %v4702_v59, %v4734_v3  ;;  %v11521_v33 = vcombine.low %v11519_v8, %v11520_v14  ;;  %s11553_s18 = smov 98  }
 0x454   : > { %v5812_v36 = vpop.permute.xlu0 %5811 }
 0x455   : > { %v5800_v30 = vpop.permute.xlu1 %5799  ;;  %v4822_v45 = vrot.slane %v11521_v33, %v8473_v48 }
 0x456   : > { %6043 = vrot.lane.b32.xlu0 %v4743_v13, %s11180_s24  ;;  %v6389_v62 = vsel %vm11510_vm11, %v6388_v31, %v5800_v30  ;;  %vm11515_vm11 = vcmask 605184   ;;  %v11526_v13 = vld [vmem:[#allocation65_spill] sm:$0xff]  ;;  %v4942_v31 = vrot.slane %v4934_v40, %v7068_v5  ;;  %s11634_s24 = sld [smem:[#allocation11_spill]] }
 0x457   : > { %6031 = vrot.lane.b32.xlu1 %v4612_v11, %s11181_s28  ;;  %v6390_v32 = vsel %vm11514_vm10, %v6389_v62, %v5804_v39  ;;  %vm11517_vm10 = vcmask 621568   ;;  %v4797_v39 = vrot.slane %v4783_v35, %v7068_v5  ;;  %v4879_v54 = vcombine.high %v4822_v45, %v4854_v16  ;;  %v11531_v62 = vld [vmem:[#allocation48_spill] sm:$0xff]  ;;  %s11550_s28 = smov 88  }
 0x458   : > { %v5820_v52 = vpop.permute.xlu0 %5819  ;;  %v4918_v25 = vcombine.low %v11527_v50, %v11526_v13  ;;  %v4878_v4 = vcombine.low %v4822_v45, %v4854_v16  ;;  %v4919_v55 = vcombine.high %v11527_v50, %v11526_v13 }
 0x459   : > { %v5808_v51 = vpop.permute.xlu1 %5807  ;;  %v4862_v9 = vcombine.low %v4797_v39, %v4813_v2  ;;  %v4863_v34 = vcombine.high %v4797_v39, %v4813_v2 }
 0x45a   : > { %6051 = vrot.lane.b32.xlu0 %v4745_v47, %s11185_s22  ;;  %v6391_v60 = vsel %vm11515_vm11, %v6390_v32, %v5808_v51  ;;  %vm11518_vm11 = vcmask 637952   ;;  %v11532_v47 = vld [vmem:[#allocation50_spill] sm:$0xff]  ;;  %v4926_v46 = vrot.slane %v4918_v25, %v7068_v5  ;;  %s11589_s22 = smov 120  }
 0x45b   : > { %6039 = vrot.lane.b32.xlu1 %v4742_v44, %s11186_s0  ;;  %v6392_v12 = vsel %vm11517_vm10, %v6391_v60, %v5812_v36  ;;  %vm11522_vm10 = vcmask 654336   ;;  %v11525_v36 = vcombine.high %v11519_v8, %v11520_v14  ;;  %s11530_s0 = smov 76   ;;  %v11533_v3 = vcombine.low %v11531_v62, %v11532_v47  ;;  %v11547_v8 = vld [vmem:[#allocation174_spill] sm:$0xff] }
 0x45c   : > { %v5828_v20 = vpop.permute.xlu0 %5827  ;;  %v4982_v32 = vcombine.low %v4926_v46, %v4942_v31  ;;  %v11538_v60 = vcombine.high %v11531_v62, %v11532_v47  ;;  %v4983_v2 = vcombine.high %v4926_v46, %v4942_v31  ;;  %v5070_v14 = vcombine.low %v11547_v8, %v8849_v18  ;;  %s6611_s26 = sshll.u32 %s11634_s24, 9 }
 0x45d   : > { %v5816_v42 = vpop.permute.xlu1 %5815  ;;  %v4829_v7 = vrot.slane %v11525_v36, %v8473_v48  ;;  %v4838_v27 = vrot.slane %v11533_v3, %v8473_v48  ;;  %v5071_v47 = vcombine.high %v11547_v8, %v8849_v18  ;;  %s10140_s3 = scalar_lea.hbm %s11644_s17, %s6611_s26 }
 0x45e   : > { %6059 = vrot.lane.b32.xlu0 %v4747_v21, %s11188_s14  ;;  %v6393_v0 = vsel %vm11518_vm11, %v6392_v12, %v5816_v42  ;;  %vm11524_vm11 = vcmask 670720   ;;  %v4845_v21 = vrot.slane %v11538_v60, %v8473_v48  ;;  %v4990_v53 = vrot.slane %v4982_v32, %v8473_v48  ;;  %s11542_s14 = smov 84  }
 0x45f   : > { %6047 = vrot.lane.b32.xlu1 %v4744_v17, %s11189_s10  ;;  %v6394_v19 = vsel %vm11522_vm10, %v6393_v0, %v5820_v52  ;;  %vm11528_vm10 = vcmask 687104   ;;  %v4881_v23 = vcombine.high %v4829_v7, %v4861_v61  ;;  %v4870_v52 = vrot.slane %v4862_v9, %v8473_v48  ;;  %s11539_s10 = smov 90   ;;  %v11544_v0 = vld [vmem:[#allocation51_spill] sm:$0xff] }
 0x460   : > { %v5836_v6 = vpop.permute.xlu0 %5835  ;;  %v4880_v1 = vcombine.low %v4829_v7, %v4861_v61  ;;  %v4997_v40 = vrot.slane %v4983_v2, %v8473_v48  ;;  %v11569_v2 = vld [vmem:[#allocation52_spill] sm:$0xff] }
 0x461   : > { %v5824_v63 = vpop.permute.xlu1 %5823  ;;  %v4883_v57 = vcombine.high %v4838_v27, %v4870_v52  ;;  %v4882_v9 = vcombine.low %v4838_v27, %v4870_v52 }
 0x462   : > { %6067 = vrot.lane.b32.xlu0 %v4749_v29, %s11193_s20  ;;  %v6395_v49 = vsel %vm11524_vm11, %v6394_v19, %v5824_v63  ;;  %vm11529_vm11 = vcmask 703488   ;;  %s11543_s20 = smov 94   ;;  %v11545_v29 = vld [vmem:[#allocation126_spill] sm:$0xff] }
 0x463   : > { %6055 = vrot.lane.b32.xlu1 %v4746_v10, %s11197_s8  ;;  %v6396_v24 = vsel %vm11528_vm10, %v6395_v49, %v5828_v20  ;;  %vm11535_vm10 = vcmask 719872   ;;  %v4877_v20 = vrot.slane %v4863_v34, %v8473_v48  ;;  %s11537_s8 = smov 80   ;;  %v11546_v16 = vcombine.low %v11544_v0, %v11545_v29  ;;  %v11552_v49 = vld [vmem:[#allocation149_spill] sm:$0xff] }
 0x464   : > { %v5844_v58 = vpop.permute.xlu0 %5843  ;;  %v11554_v61 = vcombine.high %v11544_v0, %v11545_v29  ;;  %v5078_v34 = vrot.slane %v5070_v14, %v7068_v5 }
 0x465   : > { %v5832_v38 = vpop.permute.xlu1 %5831  ;;  %v4885_v17 = vcombine.high %v4845_v21, %v4877_v20  ;;  %v4958_v39 = vrot.slane %v11546_v16, %v8473_v48  ;;  %v4884_v25 = vcombine.low %v4845_v21, %v4877_v20 }
 0x466   : > { %6075 = vrot.lane.b32.xlu0 %v4879_v54, %s11369_s6  ;;  %v6397_v11 = vsel %vm11529_vm11, %v6396_v24, %v5832_v38  ;;  %s11534_s6 = smov 86   ;;  %vm11536_vm11 = vcmask 736256   ;;  %v4965_v36 = vrot.slane %v11554_v61, %v8473_v48  ;;  %v11581_v61 = vld [vmem:[#allocation133_spill] sm:$0xff] }
 0x467   : > { %6063 = vrot.lane.b32.xlu1 %v4748_v37, %s11530_s0  ;;  %v6398_v59 = vsel %vm11535_vm10, %v6397_v11, %v5836_v6  ;;  %vm11540_vm10 = vcmask 752640   ;;  %v4933_v6 = vrot.slane %v4919_v55, %v7068_v5  ;;  %v5015_v56 = vcombine.high %v4958_v39, %v4990_v53  ;;  %v11559_v11 = vld [vmem:[#allocation124_spill] sm:$0xff]  ;;  %s6486_s0 = scalar_lea.sflag [#allocation4], %s11641_s7 }
 0x468   : > { %v5852_v30 = vpop.permute.xlu0 %5851  ;;  %v5017_v37 = vcombine.high %v4965_v36, %v4997_v40  ;;  %v5014_v46 = vcombine.low %v4958_v39, %v4990_v53  ;;  %v5016_v21 = vcombine.low %v4965_v36, %v4997_v40 }
 0x469   : > { %v5840_v15 = vpop.permute.xlu1 %5839  ;;  %v4998_v19 = vcombine.low %v4933_v6, %v4949_v28  ;;  %v4999_v7 = vcombine.high %v4933_v6, %v4949_v28 }
 0x46a   : > { %6083 = vrot.lane.b32.xlu0 %v4881_v23, %s11534_s6  ;;  %v6399_v44 = vsel %vm11536_vm11, %v6398_v59, %v5840_v15  ;;  %vm11541_vm11 = vcmask 769024   ;;  %v11560_v23 = vld [vmem:[#allocation127_spill] sm:$0xff]  ;;  %s6778_s6 = scalar_lea.vmem %s10142_s9, 512 }
 0x46b   : > { %6071 = vrot.lane.b32.xlu1 %v4878_v4, %s11537_s8  ;;  %v6400_v35 = vsel %vm11540_vm10, %v6399_v44, %v5844_v58  ;;  %vm11548_vm10 = vcmask 785408   ;;  %v11551_v58 = vld [vmem:[#allocation198_spill] sm:$0xff]  ;;  %v5006_v31 = vrot.slane %v4998_v19, %v8473_v48  ;;  %v11561_v52 = vcombine.low %v11559_v11, %v11560_v23  ;;  %p6779_p8 = scmp.ne.s32.totalorder %s10142_s9, %s6778_s6  ;;  %s6930_s8 = smov [#allocation5]  }
 0x46c   : > { %v5860_v51 = vpop.permute.xlu0 %5859  ;;  %v5054_v54 = vcombine.low %v11552_v49, %v11551_v58  ;;  %v5013_v32 = vrot.slane %v4999_v7, %v8473_v48  ;;  %v11565_v18 = vcombine.high %v11559_v11, %v11560_v23 }
 0x46d   : > { %v5848_v41 = vpop.permute.xlu1 %5847  ;;  %v4974_v62 = vrot.slane %v11561_v52, %v8473_v48  ;;  %p6780_p11 = pnand %p6779_p8, %p11645_p9 }
 0x46e   : > { %6091 = vrot.lane.b32.xlu0 %v4883_v57, %s11539_s10  ;;  %v6401_v42 = vsel %vm11541_vm11, %v6400_v35, %v5848_v41  ;;  %vm11549_vm11 = vcmask 801792   ;;  %v4981_v44 = vrot.slane %v11565_v18, %v8473_v48  ;;  %v5085_v57 = vrot.slane %v5071_v47, %v7068_v5  ;;  %s6782_s10 = sshll.u32 %s6930_s8, 4  ;;  %s6783_s10 = int_to_ptr.vmem [resolvable:$false] %s6782_s10 }
 0x46f   : > { %6079 = vrot.lane.b32.xlu1 %v4880_v1, %s11542_s14  ;;  %v6402_v33 = vsel %vm11548_vm10, %v6401_v42, %v5852_v30  ;;  %vm11555_vm10 = vcmask 818176   ;;  %v5062_v30 = vrot.slane %v5054_v54, %v7068_v5  ;;  %v5019_v4 = vcombine.high %v4974_v62, %v5006_v31  ;;  %v11580_v54 = vld [vmem:[#allocation64_spill] sm:$0xff]  ;;  %p6781_p0 = pneg %p6780_p11  ;;  %s6784_s14 = scalar_lea.vmem %s6783_s10, 1024 }
 0x470   : > { %v5868_v12 = vpop.permute.xlu0 %5867  ;;  %v5021_v41 = vcombine.high %v4981_v44, %v5013_v32  ;;  %v5018_v29 = vcombine.low %v4974_v62, %v5006_v31  ;;  %v11582_v36 = vcombine.low %v11580_v54, %v11581_v61  ;;  %v11585_v31 = vcombine.high %v11580_v54, %v11581_v61  ;;  %p6785_p6 = scmp.lt.s32.totalorder %s10142_s9, %s6783_s10  ;;  %p6786_p13 = scmp.lt.s32.totalorder %s6784_s14, %s6778_s6 }
 0x471   : > { %v5856_v45 = vpop.permute.xlu1 %5855  ;;  %v5118_v43 = vcombine.low %v5062_v30, %v5078_v34  ;;  %v5119_v55 = vcombine.high %v5062_v30, %v5078_v34 }
 0x472   : > { %6099 = vrot.lane.b32.xlu0 %v4885_v17, %s11543_s20  ;;  %v6403_v10 = vsel %vm11549_vm11, %v6402_v33, %v5856_v45  ;;  %vm11556_vm11 = vcmask 834560   ;;  %v5110_v7 = vrot.slane %v11582_v36, %v8473_v48  ;;  %v5117_v30 = vrot.slane %v11585_v31, %v8473_v48  ;;  %p6787_p2 = por %p6786_p13, %p6785_p6 }
 0x473   : > { %6087 = vrot.lane.b32.xlu1 %v4882_v9, %s11550_s28  ;;  %v6404_v13 = vsel %vm11555_vm10, %v6403_v10, %v5860_v51  ;;  %vm11562_vm10 = vcmask 850944   ;;  %v5055_v51 = vcombine.high %v11552_v49, %v11551_v58  ;;  %v5126_v1 = vrot.slane %v5118_v43, %v8473_v48 }
 0x474   : > { %v5876_v63 = vpop.permute.xlu0 %5875  ;;  %v5133_v33 = vrot.slane %v5119_v55, %v8473_v48  ;;  %p6788_p5 = pnand %p6787_p2, %p6781_p0 }
 0x475   : > { %v5864_v50 = vpop.permute.xlu1 %5863  ;;  %v5069_v53 = vrot.slane %v5055_v51, %v7068_v5 }
 0x476   : > { %6107 = vrot.lane.b32.xlu0 %v5015_v56, %s11553_s18  ;;  %v6405_v38 = vsel %vm11556_vm11, %v6404_v13, %v5864_v50  ;;  %vm11563_vm11 = vcmask 867328  }
 0x477   : > { %6095 = vrot.lane.b32.xlu1 %v4884_v25, %s11557_s27  ;;  %v6406_v3 = vsel %vm11562_vm10, %v6405_v38, %v5868_v12  ;;  %vm11566_vm10 = vcmask 883712   ;;  %v11570_v12 = vld [vmem:[#allocation132_spill] sm:$0xff]  ;;  %v5134_v16 = vcombine.low %v5069_v53, %v5085_v57  ;;  %v5135_v10 = vcombine.high %v5069_v53, %v5085_v57 }
 0x478   : > { %v5884_v24 = vpop.permute.xlu0 %5883  ;;  %v11571_v42 = vcombine.low %v11569_v2, %v11570_v12  ;;  %v11575_v45 = vcombine.high %v11569_v2, %v11570_v12 }
 0x479   : > { %v5872_v27 = vpop.permute.xlu1 %5871  ;;  %v5142_v49 = vrot.slane %v5134_v16, %v8473_v48 }
 0x47a   : > { %6115 = vrot.lane.b32.xlu0 %v5017_v37, %s11558_s29  ;;  %v6407_v15 = vsel %vm11563_vm11, %v6406_v3, %v5872_v27  ;;  %vm11567_vm11 = vcmask 900096   ;;  %v5094_v17 = vrot.slane %v11571_v42, %v8473_v48  ;;  %v5101_v5 = vrot.slane %v11575_v45, %v8473_v48 }
 0x47b   : > { %6103 = vrot.lane.b32.xlu1 %v5014_v46, %s11564_s30  ;;  %v6408_v20 = vsel %vm11566_vm10, %v6407_v15, %v5876_v63  ;;  %vm11572_vm10 = vcmask 916480   ;;  %v5020_v63 = vcombine.low %v4981_v44, %v5013_v32  ;;  %v5155_v38 = vcombine.high %v5110_v7, %v5142_v49 }
 0x47c   : > { %v5892_v59 = vpop.permute.xlu0 %5891  ;;  %v5151_v14 = vcombine.high %v5094_v17, %v5126_v1  ;;  %v5153_v58 = vcombine.high %v5101_v5, %v5133_v33  ;;  %v5150_v25 = vcombine.low %v5094_v17, %v5126_v1  ;;  %v5149_v37 = vrot.slane %v5135_v10, %v8473_v48 }
 0x47d   : > { %v5880_v60 = vpop.permute.xlu1 %5879  ;;  %v5152_v52 = vcombine.low %v5101_v5, %v5133_v33  ;;  %v4198_v27 = vcombine.low %v9693_v22, %v9684_v26  ;;  %v5154_v43 = vcombine.low %v5110_v7, %v5142_v49 }
 0x47e   : > { %6123 = vrot.lane.b32.xlu0 %v5019_v4, %s11411_s11  ;;  %v6409_v35 = vsel %vm11567_vm11, %v6408_v20, %v5880_v60  ;;  %vm11573_vm11 = vcmask 932864   ;;  %s11574_s11 = smov 104   ;;  %v5157_v3 = vcombine.high %v5117_v30, %v5149_v37  ;;  %v5156_v51 = vcombine.low %v5117_v30, %v5149_v37 }
 0x47f   : > { %6111 = vrot.lane.b32.xlu1 %v5016_v21, %s11568_s2  ;;  %v6410_v6 = vsel %vm11572_vm10, %v6409_v35, %v5884_v24  ;;  %vm11578_vm10 = vcmask 965632  }
 0x480   : > { %v5900_v28 = vpop.permute.xlu0 %5899 }
 0x481   : > { %v5888_v0 = vpop.permute.xlu1 %5887 }
 0x482   : > { %6131 = vrot.lane.b32.xlu0 %v5021_v41, %s11416_s19  ;;  %v6411_v8 = vsel %vm11573_vm11, %v6410_v6, %v5888_v0  ;;  %s11579_s19 = smov 108   ;;  %vm11601_vm11 = vcmask 326656  }
 0x483   : > { %6119 = vrot.lane.b32.xlu1 %v5018_v29, %s11574_s11  ;;  %v6412_v9 = vsel %vm11577_vm9, %v6411_v8, %v5892_v59  ;;  %vm11600_vm9 = vcmask 310272  }
 0x484   : > { %v5908_v39 = vpop.permute.xlu0 %5907 }
 0x485   : > { %v5896_v19 = vpop.permute.xlu1 %5895 }
 0x486   : > { %6139 = vrot.lane.b32.xlu0 %v5151_v14, %s11576_s5  ;;  %v6413_v40 = vsel %vm11578_vm10, %v6412_v9, %v5896_v19  ;;  %vm11602_vm10 = vcmask 343040  }
 0x487   : > { %6127 = vrot.lane.b32.xlu1 %v5020_v63, %s11579_s19  ;;  %v6414_v13 = vsel %vm6284_vm12, %v6413_v40, %v5900_v28 }
 0x488   : > { %v5916_v56 = vpop.permute.xlu0 %5915 }
 0x489   : > { %v5904_v50 = vpop.permute.xlu1 %5903  ;;  %v6418_v48 = vsel %vm6166_vm0, %v4198_v27, %v5916_v56  ;;  %vm11591_vm0 = vcmask 162816  }
 0x48a   : > { %6147 = vrot.lane.b32.xlu0 %v5153_v58, %s11424_s21  ;;  %v6415_v24 = vsel %vm6286_vm15, %v6414_v13, %v5904_v50  ;;  %s11587_s21 = smov 116  }
 0x48b   : > { %6135 = vrot.lane.b32.xlu1 %v5150_v25, %s11584_s13  ;;  %v6416_v11 = vsel %vm6288_vm13, %v6415_v24, %v5908_v39 }
 0x48c   : > { %v5924_v34 = vpop.permute.xlu0 %5923 }
 0x48d   : > { %v5912_v23 = vpop.permute.xlu1 %5911 }
 0x48e   : > { %6155 = vrot.lane.b32.xlu0 %v5155_v38, %s11586_s15  ;;  %v6417_v47 = vsel %vm6290_vm14, %v6416_v11, %v5912_v23 }
 0x48f   : > { %6483 = vst [vmem:[%s11583_s12 + $0x10] sm:$0xff] %v6417_v47  ;;  %6143 = vrot.lane.b32.xlu1 %v5152_v52, %s11587_s21 }
 0x490   : > { %v5932_v62 = vpop.permute.xlu0 %5931 }
 0x491   : > { %v5920_v46 = vpop.permute.xlu1 %5919 }
 0x492   : > { %6163 = vrot.lane.b32.xlu0 %v5157_v3, %s11588_s16  ;;  %v6419_v15 = vsel %vm6168_vm1, %v6418_v48, %v5920_v46  ;;  %vm11592_vm1 = vcmask 179200  }
 0x493   : > { %6151 = vrot.lane.b32.xlu1 %v5154_v43, %s11589_s22  ;;  %v6420_v4 = vsel %vm6170_vm2, %v6419_v15, %v5924_v34  ;;  %vm11593_vm2 = vcmask 195584  }
 0x494   : > { %v5940_v59 = vpop.permute.xlu0 %5939 }
 0x495   : > { %v5928_v32 = vpop.permute.xlu1 %5927 }
 0x496   : > { %v6421_v26 = vsel %vm6172_vm3, %v6420_v4, %v5928_v32  ;;  %vm11594_vm3 = vcmask 211968  }
 0x497   : > { %6159 = vrot.lane.b32.xlu1 %v5156_v51, %s11590_s23  ;;  %v6422_v22 = vsel %vm6174_vm4, %v6421_v26, %v5932_v62  ;;  %vm11595_vm4 = vcmask 228352  }
 0x498   : > { %v5948_v18 = vpop.permute.xlu0 %5947 }
 0x499   : > { %v5936_v44 = vpop.permute.xlu1 %5935 }
 0x49a   : > { %v6423_v20 = vsel %vm6176_vm5, %v6422_v22, %v5936_v44  ;;  %vm11596_vm5 = vcmask 244736  }
 0x49b   : > { %v6424_v60 = vsel %vm6178_vm6, %v6423_v20, %v5940_v59  ;;  %vm11597_vm6 = vcmask 261120  }
 0x49c   : > { %v5956_v57 = vpop.permute.xlu0 %5955 }
 0x49d   : > { %v5944_v21 = vpop.permute.xlu1 %5943 }
 0x49e   : > { %v6425_v28 = vsel %vm6180_vm7, %v6424_v60, %v5944_v21  ;;  %vm11598_vm7 = vcmask 277504  }
 0x49f   : > { %v6426_v35 = vsel %vm6182_vm8, %v6425_v28, %v5948_v18  ;;  %vm11599_vm8 = vcmask 293888  }
 0x4a0   : > { %v5964_v55 = vpop.permute.xlu0 %5963 }
 0x4a1   : > { %v5952_v41 = vpop.permute.xlu1 %5951 }
 0x4a2   : > { %v6427_v2 = vsel %vm11591_vm0, %v6426_v35, %v5952_v41  ;;  %vm11603_vm0 = vcmask 359424  }
 0x4a3   : > { %v6428_v12 = vsel %vm11592_vm1, %v6427_v2, %v5956_v57  ;;  %vm11604_vm1 = vcmask 375808  }
 0x4a4   : > { %v5972_v1 = vpop.permute.xlu0 %5971 }
 0x4a5   : > { %v5960_v42 = vpop.permute.xlu1 %5959 }
 0x4a6   : > { %v6429_v53 = vsel %vm11593_vm2, %v6428_v12, %v5960_v42  ;;  %vm11605_vm2 = vcmask 392192  }
 0x4a7   : > { %v6430_v6 = vsel %vm11594_vm3, %v6429_v53, %v5964_v55  ;;  %vm11606_vm3 = vcmask 408576  }
 0x4a8   : > { %v5980_v17 = vpop.permute.xlu0 %5979 }
 0x4a9   : > { %v5968_v0 = vpop.permute.xlu1 %5967 }
 0x4aa   : > { %v6431_v16 = vsel %vm11595_vm4, %v6430_v6, %v5968_v0  ;;  %vm11607_vm4 = vcmask 424960  }
 0x4ab   : > { %v6432_v39 = vsel %vm11596_vm5, %v6431_v16, %v5972_v1  ;;  %vm11608_vm5 = vcmask 441344  }
 0x4ac   : > { %v5988_v29 = vpop.permute.xlu0 %5987 }
 0x4ad   : > { %v5976_v8 = vpop.permute.xlu1 %5975 }
 0x4ae   : > { %v6433_v33 = vsel %vm11597_vm6, %v6432_v39, %v5976_v8  ;;  %vm11609_vm6 = vcmask 457728  }
 0x4af   : > { %v6434_v45 = vsel %vm11598_vm7, %v6433_v33, %v5980_v17  ;;  %vm11610_vm7 = vcmask 474112  }
 0x4b0   : > { %v5996_v14 = vpop.permute.xlu0 %5995 }
 0x4b1   : > { %v5984_v5 = vpop.permute.xlu1 %5983 }
 0x4b2   : > { %v6435_v19 = vsel %vm11599_vm8, %v6434_v45, %v5984_v5  ;;  %vm11611_vm8 = vcmask 490496  }
 0x4b3   : > { %v6436_v63 = vsel %vm11600_vm9, %v6435_v19, %v5988_v29  ;;  %vm11612_vm9 = vcmask 506880  }
 0x4b4   : > { %v6004_v9 = vpop.permute.xlu0 %6003 }
 0x4b5   : > { %v5992_v10 = vpop.permute.xlu1 %5991 }
 0x4b6   : > { %v6437_v40 = vsel %vm11601_vm11, %v6436_v63, %v5992_v10  ;;  %vm11613_vm11 = vcmask 523264  }
 0x4b7   : > { %v6438_v58 = vsel %vm11602_vm10, %v6437_v40, %v5996_v14  ;;  %vm11614_vm10 = vcmask 539648  }
 0x4b8   : > { %v6012_v56 = vpop.permute.xlu0 %6011 }
 0x4b9   : > { %v6000_v49 = vpop.permute.xlu1 %5999 }
 0x4ba   : > { %v6439_v61 = vsel %vm11603_vm0, %v6438_v58, %v6000_v49  ;;  %vm11615_vm0 = vcmask 556032  }
 0x4bb   : > { %v6440_v36 = vsel %vm11604_vm1, %v6439_v61, %v6004_v9  ;;  %vm11616_vm1 = vcmask 572416  }
 0x4bc   : > { %v6020_v54 = vpop.permute.xlu0 %6019 }
 0x4bd   : > { %v6008_v7 = vpop.permute.xlu1 %6007 }
 0x4be   : > { %v6441_v50 = vsel %vm11605_vm2, %v6440_v36, %v6008_v7  ;;  %vm11617_vm2 = vcmask 588800  }
 0x4bf   : > { %v6442_v25 = vsel %vm11606_vm3, %v6441_v50, %v6012_v56  ;;  %vm11618_vm3 = vcmask 605184  }
 0x4c0   : > { %v6028_v13 = vpop.permute.xlu0 %6027 }
 0x4c1   : > { %v6016_v34 = vpop.permute.xlu1 %6015 }
 0x4c2   : > { %v6443_v38 = vsel %vm11607_vm4, %v6442_v25, %v6016_v34  ;;  %vm11619_vm4 = vcmask 621568  }
 0x4c3   : > { %v6444_v37 = vsel %vm11608_vm5, %v6443_v38, %v6020_v54  ;;  %vm11620_vm5 = vcmask 637952  }
 0x4c4   : > { %v6036_v24 = vpop.permute.xlu0 %6035 }
 0x4c5   : > { %v6024_v31 = vpop.permute.xlu1 %6023 }
 0x4c6   : > { %v6445_v11 = vsel %vm11609_vm6, %v6444_v37, %v6024_v31  ;;  %vm11621_vm6 = vcmask 654336  }
 0x4c7   : > { %v6446_v23 = vsel %vm11610_vm7, %v6445_v11, %v6028_v13  ;;  %vm11622_vm7 = vcmask 670720  }
 0x4c8   : > { %v6044_v30 = vpop.permute.xlu0 %6043 }
 0x4c9   : > { %v6032_v52 = vpop.permute.xlu1 %6031 }
 0x4ca   : > { %v6447_v47 = vsel %vm11611_vm8, %v6446_v23, %v6032_v52  ;;  %vm11623_vm8 = vcmask 687104  }
 0x4cb   : > { %v6448_v3 = vsel %vm11612_vm9, %v6447_v47, %v6036_v24  ;;  %vm11624_vm9 = vcmask 703488  }
 0x4cc   : > { %v6052_v62 = vpop.permute.xlu0 %6051 }
 0x4cd   : > { %v6040_v27 = vpop.permute.xlu1 %6039 }
 0x4ce   : > { %v6449_v46 = vsel %vm11613_vm11, %v6448_v3, %v6040_v27  ;;  %vm11625_vm11 = vcmask 719872  }
 0x4cf   : > { %v6450_v43 = vsel %vm11614_vm10, %v6449_v46, %v6044_v30  ;;  %vm11626_vm10 = vcmask 736256  }
 0x4d0   : > { %v6060_v48 = vpop.permute.xlu0 %6059 }
 0x4d1   : > { %v6048_v59 = vpop.permute.xlu1 %6047 }
 0x4d2   : > { %v6451_v4 = vsel %vm11615_vm0, %v6450_v43, %v6048_v59  ;;  %vm11627_vm0 = vcmask 752640  }
 0x4d3   : > { %v6452_v32 = vsel %vm11616_vm1, %v6451_v4, %v6052_v62  ;;  %vm11628_vm1 = vcmask 769024  }
 0x4d4   : > { %v6068_v15 = vpop.permute.xlu0 %6067 }
 0x4d5   : > { %v6056_v51 = vpop.permute.xlu1 %6055 }
 0x4d6   : > { %v6453_v26 = vsel %vm11617_vm2, %v6452_v32, %v6056_v51  ;;  %vm11629_vm2 = vcmask 785408  }
 0x4d7   : > { %v6454_v22 = vsel %vm11618_vm3, %v6453_v26, %v6060_v48  ;;  %vm11630_vm3 = vcmask 801792  }
 0x4d8   : > { %v6076_v18 = vpop.permute.xlu0 %6075 }
 0x4d9   : > { %v6064_v44 = vpop.permute.xlu1 %6063 }
 0x4da   : > { %v6455_v20 = vsel %vm11619_vm4, %v6454_v22, %v6064_v44  ;;  %vm11631_vm4 = vcmask 818176  }
 0x4db   : > { %v6456_v60 = vsel %vm11620_vm5, %v6455_v20, %v6068_v15  ;;  %vm11632_vm5 = vcmask 834560  }
 0x4dc   : > { %v6084_v57 = vpop.permute.xlu0 %6083 }
 0x4dd   : > { %v6072_v21 = vpop.permute.xlu1 %6071 }
 0x4de   : > { %v6457_v28 = vsel %vm11621_vm6, %v6456_v60, %v6072_v21  ;;  %vm11633_vm6 = vcmask 850944  }
 0x4df   : > { %v6458_v35 = vsel %vm11622_vm7, %v6457_v28, %v6076_v18  ;;  %vm11635_vm7 = vcmask 867328  }
 0x4e0   : > { %v6092_v55 = vpop.permute.xlu0 %6091 }
 0x4e1   : > { %v6080_v41 = vpop.permute.xlu1 %6079 }
 0x4e2   : > { %v6459_v2 = vsel %vm11623_vm8, %v6458_v35, %v6080_v41  ;;  %vm11636_vm8 = vcmask 883712  }
 0x4e3   : > { %v6460_v12 = vsel %vm11624_vm9, %v6459_v2, %v6084_v57  ;;  %vm11637_vm9 = vcmask 900096  }
 0x4e4   : > { %v6100_v1 = vpop.permute.xlu0 %6099 }
 0x4e5   : > { %v6088_v42 = vpop.permute.xlu1 %6087 }
 0x4e6   : > { %v6461_v53 = vsel %vm11625_vm11, %v6460_v12, %v6088_v42  ;;  %vm11638_vm11 = vcmask 916480  }
 0x4e7   : > { %v6462_v6 = vsel %vm11626_vm10, %v6461_v53, %v6092_v55  ;;  %vm11639_vm10 = vcmask 932864  }
 0x4e8   : > { %v6108_v17 = vpop.permute.xlu0 %6107 }
 0x4e9   : > { %v6096_v0 = vpop.permute.xlu1 %6095 }
 0x4ea   : > { %v6463_v16 = vsel %vm11627_vm0, %v6462_v6, %v6096_v0  ;;  %vm11640_vm0 = vcmask 949248  }
 0x4eb   : > { %v6464_v39 = vsel %vm11628_vm1, %v6463_v16, %v6100_v1  ;;  %vm11642_vm1 = vcmask 965632  }
 0x4ec   : > { %v6116_v29 = vpop.permute.xlu0 %6115 }
 0x4ed   : > { %v6104_v8 = vpop.permute.xlu1 %6103 }
 0x4ee   : > { %v6465_v33 = vsel %vm11629_vm2, %v6464_v39, %v6104_v8 }
 0x4ef   : > { %v6466_v45 = vsel %vm11630_vm3, %v6465_v33, %v6108_v17 }
 0x4f0   : > { %v6124_v14 = vpop.permute.xlu0 %6123 }
 0x4f1   : > { %v6112_v5 = vpop.permute.xlu1 %6111 }
 0x4f2   : > { %v6467_v19 = vsel %vm11631_vm4, %v6466_v45, %v6112_v5 }
 0x4f3   : > { %v6468_v63 = vsel %vm11632_vm5, %v6467_v19, %v6116_v29 }
 0x4f4   : > { %v6132_v9 = vpop.permute.xlu0 %6131 }
 0x4f5   : > { %v6120_v10 = vpop.permute.xlu1 %6119 }
 0x4f6   : > { %v6469_v56 = vsel %vm11633_vm6, %v6468_v63, %v6120_v10 }
 0x4f7   : > { %v6470_v58 = vsel %vm11635_vm7, %v6469_v56, %v6124_v14 }
 0x4f8   : > { %v6140_v40 = vpop.permute.xlu0 %6139 }
 0x4f9   : > { %v6128_v49 = vpop.permute.xlu1 %6127 }
 0x4fa   : > { %v6471_v54 = vsel %vm11636_vm8, %v6470_v58, %v6128_v49 }
 0x4fb   : > { %v6472_v61 = vsel %vm11637_vm9, %v6471_v54, %v6132_v9 }
 0x4fc   : > { %v6148_v7 = vpop.permute.xlu0 %6147 }
 0x4fd   : > { %v6136_v36 = vpop.permute.xlu1 %6135 }
 0x4fe   : > { %v6473_v13 = vsel %vm11638_vm11, %v6472_v61, %v6136_v36 }
 0x4ff   : > { %v6474_v50 = vsel %vm11639_vm10, %v6473_v13, %v6140_v40 }
 0x500   : > { %v6156_v24 = vpop.permute.xlu0 %6155 }
 0x501   : > { %v6144_v25 = vpop.permute.xlu1 %6143 }
 0x502   : > { %v6475_v34 = vsel %vm11640_vm0, %v6474_v50, %v6144_v25 }
 0x503   : > { %v6476_v38 = vsel %vm11642_vm1, %v6475_v34, %v6148_v7 }
 0x504   : > { %v6164_v23 = vpop.permute.xlu0 %6163 }
 0x505   : > { %v6152_v37 = vpop.permute.xlu1 %6151 }
 0x506   : > { %v6477_v31 = vsel %vm6284_vm12, %v6476_v38, %v6152_v37 }
 0x507   : > { %v6478_v30 = vsel %vm6286_vm15, %v6477_v31, %v6156_v24 }
 0x509   : > { %v6160_v11 = vpop.permute.xlu1 %6159 }
 0x50a   : > { %v6479_v52 = vsel %vm6288_vm13, %v6478_v30, %v6160_v11 }
 0x50b   : > { %v6480_v62 = vsel %vm6290_vm14, %v6479_v52, %v6164_v23 }
 0x50c   : > { %6484 = vst [vmem:[%s11583_s12 + $0x18] sm:$0xff] %v6480_v62 }
 0x50d   : > { %6791 = shalt.err (!%p6788_p5)
}
 0x50e   : > { %s6792_s20 = scalar_lea.hbm %s10140_s3, 512  ;;  %s6796_s27 = scalar_lea.hbm %s11644_s17, 1024 }
 0x50f   : > { %p6793_p4 = scmp.ne.s32.totalorder %s10140_s3, %s6792_s20  ;;  %p6797_p12 = scmp.lt.u32.totalorder %s10140_s3, %s11644_s17 }
 0x510   : > { %p6798_p1 = scmp.lt.u32.totalorder %s6796_s27, %s6792_s20  ;;  %p6800_p8 = scmp.lt.u32.totalorder %s6792_s20, %s10140_s3 }
 0x511   : > { %p6794_p7 = pnand %p6793_p4, %p11645_p9 }
 0x512   : > { %p6799_p3 = por %p6798_p1, %p6797_p12 }
 0x513   : > { %p6795_p10 = pneg %p6794_p7 }
 0x514   : > { %p6801_p11 = por %p6800_p8, %p6799_p3 }
 0x516   : > { %p6802_p0 = pnand %p6801_p11, %p6795_p10 }
 0x518   : > { %6805 = shalt.err (!%p6802_p0)
}
 0x519   : > { %6614 = dma.vmem_to_hbm [thread:$0]  (%p11645_p9), %s10142_s9, 512, %s10140_s3, %s6486_s0  }
 0x51a PF: > { %s11646_s2 = sld [smem:[#allocation8_spill]]  ;;  %s11647_s11 = sld [smem:[#allocation17_spill]] }
 0x51b   : > { %s11648_s5 = sld [smem:[#allocation13_spill]] }
 0x520   : > { %s6516_s19 = sand.u32 1, %s11646_s2   ;;  %p11649_p6 = scmp.ne.s32.totalorder %s11647_s11, 0 }
 0x521   : > { %p11650_p13 = scmp.ge.s32.totalorder %s11648_s5, 2  ;;  %s6517_s12 = scalar_lea.sflag [#allocation4], %s6516_s19 }
 0x523   : > { %p6621_p2 = pnand %p11650_p13, %p11649_p6 }
 0x525   : > { %6835 = dma.done.wait (!%p6621_p2), %s6517_s12, 512  }
 0x526   : > { %6837 = vsyncadd (!%p6621_p2), %s6517_s12, 4294966784  ;;  %s17_s11 = sadd.s32 1, %s11648_s5   ;;  %s11651_s6 = sld [smem:[#allocation9_spill]] }
 0x527   : > { %p14_p5 = scmp.ge.s32.totalorder %s17_s11, 4   ;;  %s11652_s7 = sld [smem:[#allocation10_spill]] }
 0x528   : > { %s11653_s8 = sld [smem:[#allocation16_spill]]  ;;  %s11654_s9 = sld [smem:[#allocation12_spill]] }
 0x529   : > { %s11655_s10 = sld [smem:[#allocation14_spill]]  ;;  %16 = sbr.rel (!%p14_p5) target bundleno = 9 (0x9), region = 69 }
 0x530   :  { %6522 = vsyncpa [#allocation3], 1 }
 0x531   :  { %6524 = vsyncpa [#allocation3 + $0x1], 1 }
 0x532   :  { %6525 = vsyncpa [#allocation4], 1 }
 0x533   :  { %6527 = vsyncpa [#allocation4 + $0x1], 1 }

</bundles_post_ra>
